<compile_context>
chip_gen: v6e
topology: v6e:2x2x1
jax: 0.10.0
libtpu: 0.0.40
codegen_flags: <defaults>
</compile_context>

<pallas_src>
import functools

import jax
import jax.numpy as jnp
from jax.experimental import pallas as pl
from jax.experimental.pallas import tpu as pltpu


_VMEM_LIMIT = 48 * 1024 * 1024  # raise v5e's 16 MiB default; < v7x 64 MiB phys.


def _round_up(x, m):
    return (x + m - 1) // m * m


# ---------------------------------------------------------------------------
# Kernel 1: 1x3x3 "same" conv (stride 1) as 9 shifted matmuls, one frame/step
# ---------------------------------------------------------------------------
def _spatial_conv_kernel(x_ref, w_ref, o_ref, *, h, s):
    """x_ref: ((h+3)*s, cin) bf16  - zero-padded frame, rows flattened, s=W+2
       w_ref: (9, cin, cout_p) bf16 - tap index kh*3+kw
       o_ref: (h*s, cout_p)         - output in padded-row-stride layout
                                      (2 junk columns/row dropped by caller)"""
    m = h * s
    cout = o_ref.shape[-1]
    acc = jnp.zeros((m, cout), jnp.float32)
    for kh in range(3):
        for kw in range(3):
            off = kh * s + kw
            acc = acc + jnp.dot(x_ref[off:off + m, :], w_ref[kh * 3 + kw],
                                preferred_element_type=jnp.float32)
    o_ref[...] = acc.astype(o_ref.dtype)


def spatial_conv(xp_flat, w, *, h, s):
    """xp_flat: (N*T, (h+3)*s, cin) bf16 -> (N*T, h*s, cout_p) bf16."""
    nt, rs, cin = xp_flat.shape
    cout_p = w.shape[-1]
    m = h * s
    return pl.pallas_call(
        functools.partial(_spatial_conv_kernel, h=h, s=s),
        out_shape=jax.ShapeDtypeStruct((nt, m, cout_p), jnp.bfloat16),
        grid_spec=pltpu.PrefetchScalarGridSpec(
            num_scalar_prefetch=0,
            grid=(nt,),
            in_specs=[
                pl.BlockSpec((None, rs, cin), lambda f: (f, 0, 0)),
                pl.BlockSpec((9, cin, cout_p), lambda f: (0, 0, 0)),
            ],
            out_specs=pl.BlockSpec((None, m, cout_p), lambda f: (f, 0, 0)),
        ),
        compiler_params=pltpu.CompilerParams(
            dimension_semantics=("parallel",),
            vmem_limit_bytes=_VMEM_LIMIT),
    )(xp_flat, w)


# ---------------------------------------------------------------------------
# Kernel 2: 3x1x1 temporal conv fused with BN (+ residual) + ReLU epilogue
# ---------------------------------------------------------------------------
def _temporal_kernel(x_ref, w_ref, s_ref, b_ref, o_ref):
    """x_ref: (T+2, bhw, cin) bf16 (temporally zero-padded tile)
       w_ref: (3, cin, cp) bf16; s_ref/b_ref: (1, cp) f32 folded BN
       o_ref: (T, bhw, cp)."""
    tp2, bhw, cin = x_ref.shape
    t_out = tp2 - 2
    if bhw % 8 == 0:
        # 3 big shifted dots (M = T*bhw) instead of 3 per output frame.
        m = t_out * bhw
        xf = x_ref[...].reshape(tp2 * bhw, cin)
        acc = jnp.dot(xf[:m], w_ref[0], preferred_element_type=jnp.float32)
        acc = acc + jnp.dot(xf[bhw:bhw + m], w_ref[1],
                            preferred_element_type=jnp.float32)
        acc = acc + jnp.dot(xf[2 * bhw:2 * bhw + m], w_ref[2],
                            preferred_element_type=jnp.float32)
        y = acc * s_ref[...] + b_ref[...]
        o_ref[...] = jnp.maximum(y, 0.0).reshape(
            t_out, bhw, -1).astype(o_ref.dtype)
    else:
        for t in range(t_out):
            acc = jnp.dot(x_ref[t], w_ref[0],
                          preferred_element_type=jnp.float32)
            acc = acc + jnp.dot(x_ref[t + 1], w_ref[1],
                                preferred_element_type=jnp.float32)
            acc = acc + jnp.dot(x_ref[t + 2], w_ref[2],
                                preferred_element_type=jnp.float32)
            y = acc * s_ref[...] + b_ref[...]
            o_ref[t] = jnp.maximum(y, 0.0).astype(o_ref.dtype)


def _temporal_res_kernel(x_ref, w_ref, s_ref, b_ref, r_ref, o_ref):
    tp2, bhw, cin = x_ref.shape
    t_out = tp2 - 2
    if bhw % 8 == 0:
        m = t_out * bhw
        xf = x_ref[...].reshape(tp2 * bhw, cin)
        acc = jnp.dot(xf[:m], w_ref[0], preferred_element_type=jnp.float32)
        acc = acc + jnp.dot(xf[bhw:bhw + m], w_ref[1],
                            preferred_element_type=jnp.float32)
        acc = acc + jnp.dot(xf[2 * bhw:2 * bhw + m], w_ref[2],
                            preferred_element_type=jnp.float32)
        rf = r_ref[...].reshape(m, -1).astype(jnp.float32)
        y = acc * s_ref[...] + b_ref[...] + rf
        o_ref[...] = jnp.maximum(y, 0.0).reshape(
            t_out, bhw, -1).astype(o_ref.dtype)
    else:
        for t in range(t_out):
            acc = jnp.dot(x_ref[t], w_ref[0],
                          preferred_element_type=jnp.float32)
            acc = acc + jnp.dot(x_ref[t + 1], w_ref[1],
                                preferred_element_type=jnp.float32)
            acc = acc + jnp.dot(x_ref[t + 2], w_ref[2],
                                preferred_element_type=jnp.float32)
            y = acc * s_ref[...] + b_ref[...] + r_ref[t].astype(jnp.float32)
            o_ref[t] = jnp.maximum(y, 0.0).astype(o_ref.dtype)


def _pick_hw_tile(hw, bytes_per_row, budget=8 << 20):
    """Largest tile of the H*W axis (divisor of hw, multiple of 8 or full).
    Falls back to the full extent if no multiple-of-8 divisor fits."""
    if bytes_per_row * hw <= budget:
        return hw
    want = max(8, budget // max(bytes_per_row, 1))
    best = hw
    for d in range(8, min(want, hw) + 1, 8):
        if hw % d == 0:
            best = d
    return best


def temporal_conv_bn_relu(xt, w, scale, bias, residual=None, *,
                          out_dtype=jnp.bfloat16):
    """xt: (N, T+2, H*W, cin) bf16 (temporally zero-padded)
       w : (3, cin, cp) bf16;  scale/bias: (cp,) f32 folded BN
       residual: optional (N, T, H*W, cp) with residual.dtype == out_dtype
       -> (N, T, H*W, cp) with BN (+res) + ReLU applied."""
    n, tp2, hw, cin = xt.shape
    t_out = tp2 - 2
    cp = w.shape[-1]

    # per-(hw row) VMEM estimate: input (x2 bufs) + out (x2) + f32 acc + res.
    row_bytes = (tp2 * cin * 2) * 2 \
        + (t_out * cp * jnp.dtype(out_dtype).itemsize) * 2 \
        + t_out * cp * 4 + cp * 4
    if residual is not None:
        row_bytes += t_out * cp * 4 * 2
    bhw = _pick_hw_tile(hw, row_bytes)
    grid = (n, hw // bhw)

    in_specs = [
        pl.BlockSpec((None, tp2, bhw, cin), lambda i, j: (i, 0, j, 0)),
        pl.BlockSpec((3, cin, cp), lambda i, j: (0, 0, 0)),
        pl.BlockSpec((1, cp), lambda i, j: (0, 0)),
        pl.BlockSpec((1, cp), lambda i, j: (0, 0)),
    ]
    args = [xt, w, scale.reshape(1, cp), bias.reshape(1, cp)]
    if residual is None:
        kern = _temporal_kernel
        aliases = {}
    else:
        in_specs.append(pl.BlockSpec((None, t_out, bhw, cp),
                                     lambda i, j: (i, 0, j, 0)))
        args.append(residual)
        kern = _temporal_res_kernel
        aliases = {4: 0}   # write output in place over the residual buffer

    return pl.pallas_call(
        kern,
        out_shape=jax.ShapeDtypeStruct((n, t_out, hw, cp), out_dtype),
        grid_spec=pltpu.PrefetchScalarGridSpec(
            num_scalar_prefetch=0,
            grid=grid,
            in_specs=in_specs,
            out_specs=pl.BlockSpec((None, t_out, bhw, cp),
                                   lambda i, j: (i, 0, j, 0)),
        ),
        input_output_aliases=aliases,
        compiler_params=pltpu.CompilerParams(
            dimension_semantics=("parallel", "parallel"),
            vmem_limit_bytes=_VMEM_LIMIT),
    )(*args)


# ---------------------------------------------------------------------------
# Weight / BN preparation (pad channels to 128, bf16 taps)
# ---------------------------------------------------------------------------
def _prep_w_spatial(w, cin_pad, cout_pad):
    """PyTorch (Cout, Cin, 1, 3, 3) -> (9, cin_pad, cout_pad) bf16, tap=kh*3+kw."""
    cout, cin = w.shape[0], w.shape[1]
    wt = jnp.transpose(w[:, :, 0], (2, 3, 1, 0)).reshape(9, cin, cout)
    wt = jnp.pad(wt, ((0, 0), (0, cin_pad - cin), (0, cout_pad - cout)))
    return wt.astype(jnp.bfloat16)


def _prep_w_temporal(w, cin_pad, cout_pad):
    """PyTorch (Cout, Cin, 3, 1, 1) -> (3, cin_pad, cout_pad) bf16."""
    cout, cin = w.shape[0], w.shape[1]
    wt = jnp.transpose(w[:, :, :, 0, 0], (2, 1, 0))
    wt = jnp.pad(wt, ((0, 0), (0, cin_pad - cin), (0, cout_pad - cout)))
    return wt.astype(jnp.bfloat16)


def _pad_vec(v, cp):
    return jnp.pad(v, (0, cp - v.shape[0])).astype(jnp.float32)


def init_params(key, inplanes, planes, eps=1e-5):
    inside = planes * 9 // 4
    cp_in = _round_up(inside, 128)    # "inside" channel pad
    cp_out = _round_up(planes, 128)   # "planes" channel pad
    k1, k2, k3, k4 = jax.random.split(key, 4)
    raw = {
        "w1":  0.1 * jax.random.normal(k1, (inside, inplanes, 1, 3, 3), jnp.float32),
        "w1t": 0.1 * jax.random.normal(k2, (planes, inside, 3, 1, 1), jnp.float32),
        "w2":  0.1 * jax.random.normal(k3, (inside, planes, 1, 3, 3), jnp.float32),
        "w2t": 0.1 * jax.random.normal(k4, (planes, inside, 3, 1, 1), jnp.float32),
        "g1": jnp.linspace(0.8, 1.2, planes, dtype=jnp.float32),
        "b1": jnp.linspace(-0.05, 0.05, planes, dtype=jnp.float32),
        "m1": jnp.linspace(-0.1, 0.1, planes, dtype=jnp.float32),
        "v1": jnp.linspace(0.5, 1.5, planes, dtype=jnp.float32),
        "g2": jnp.linspace(1.1, 0.9, planes, dtype=jnp.float32),
        "b2": jnp.linspace(0.05, -0.05, planes, dtype=jnp.float32),
        "m2": jnp.linspace(0.1, -0.1, planes, dtype=jnp.float32),
        "v2": jnp.linspace(1.5, 0.5, planes, dtype=jnp.float32),
        "eps": eps,
    }
    s1 = raw["g1"] / jnp.sqrt(raw["v1"] + eps)
    s2 = raw["g2"] / jnp.sqrt(raw["v2"] + eps)
    kernel_params = {
        "w1":  _prep_w_spatial(raw["w1"], inplanes, cp_in),
        "w1t": _prep_w_temporal(raw["w1t"], cp_in, cp_out),
        "w2":  _prep_w_spatial(raw["w2"], cp_out, cp_in),
        "w2t": _prep_w_temporal(raw["w2t"], cp_in, cp_out),
        "bn1_scale": _pad_vec(s1, cp_out),
        "bn1_bias":  _pad_vec(raw["b1"] - raw["m1"] * s1, cp_out),
        "bn2_scale": _pad_vec(s2, cp_out),
        "bn2_bias":  _pad_vec(raw["b2"] - raw["m2"] * s2, cp_out),
    }
    return raw, kernel_params


# ---------------------------------------------------------------------------
# BasicBlock forward (stride=1, downsample=None)
# ---------------------------------------------------------------------------
def basic_block_forward(x_ncdhw, p, *, planes, stride=1):
    if stride != 1:
        # TODO(synk): strided conv1 + downsample path (arbitrary nn.Module).
        raise NotImplementedError("only stride=1 / downsample=None supported")
    n, cin, t, h, w = x_ncdhw.shape
    cp_in = p["w1"].shape[-1]
    cp_out = p["w1t"].shape[-1]
    s = w + 2

    x_cl = jnp.transpose(x_ncdhw, (0, 2, 3, 4, 1)).astype(jnp.float32)

    def spatial_in(a):
        # (N,T,H,W,C) -> zero-padded (top1/bot2, left1/right1), rows flattened.
        a = jnp.pad(a.astype(jnp.bfloat16),
                    ((0, 0), (0, 0), (1, 2), (1, 1), (0, 0)))
        return a.reshape(n * t, (h + 3) * s, a.shape[-1])

    def spatial_out(y, c):
        # (N*T, H*(W+2), C) -> (N,T,H,W,C): drop the 2 junk columns per row.
        return y.reshape(n, t, h, s, c)[:, :, :, :w, :]

    def temporal_in(a):
        # (N,T,H,W,C) -> temporally zero-padded (N, T+2, H*W, C).
        a = jnp.pad(a.astype(jnp.bfloat16),
                    ((0, 0), (1, 1), (0, 0), (0, 0), (0, 0)))
        return a.reshape(n, t + 2, h * w, a.shape[-1])

    # residual (downsample=None -> identity), channel-padded to CP_OUT, f32
    identity = jnp.pad(x_cl, ((0, 0),) * 4 + ((0, cp_out - cin),))
    identity = identity.reshape(n, t, h * w, cp_out)

    # conv1 (1x3x3)  ->  conv1_t (3x1x1) fused with bn1 + relu
    out = spatial_out(spatial_conv(spatial_in(x_cl), p["w1"], h=h, s=s), cp_in)
    out = temporal_conv_bn_relu(temporal_in(out), p["w1t"],
                                p["bn1_scale"], p["bn1_bias"],
                                out_dtype=jnp.bfloat16)
    out = out.reshape(n, t, h, w, cp_out)

    # conv2 (1x3x3)  ->  conv2_t (3x1x1) fused with bn2 + residual add + relu
    out = spatial_out(spatial_conv(spatial_in(out), p["w2"], h=h, s=s), cp_in)
    out = temporal_conv_bn_relu(temporal_in(out), p["w2t"],
                                p["bn2_scale"], p["bn2_bias"],
                                residual=identity, out_dtype=jnp.float32)

    out = out.reshape(n, t, h, w, cp_out)[..., :planes]
    return jnp.transpose(out, (0, 4, 1, 2, 3))          # back to NCDHW


# ---------------------------------------------------------------------------
# Pure-JAX reference (eval-mode BN), NCDHW
# ---------------------------------------------------------------------------
def reference_forward(x, raw):
    conv = functools.partial(
        jax.lax.conv_general_dilated,
        dimension_numbers=("NCDHW", "OIDHW", "NCDHW"),
        precision=jax.lax.Precision.HIGHEST)

    def bn(y, g, b, m, v):
        sh = (1, -1, 1, 1, 1)
        return (y - m.reshape(sh)) / jnp.sqrt(v.reshape(sh) + raw["eps"]) \
               * g.reshape(sh) + b.reshape(sh)

    identity = x
    out = conv(x, raw["w1"], (1, 1, 1), [(0, 0), (1, 1), (1, 1)])
    out = conv(out, raw["w1t"], (1, 1, 1), [(1, 1), (0, 0), (0, 0)])
    out = jnp.maximum(bn(out, raw["g1"], raw["b1"], raw["m1"], raw["v1"]), 0.0)
    out = conv(out, raw["w2"], (1, 1, 1), [(0, 0), (1, 1), (1, 1)])
    out = conv(out, raw["w2t"], (1, 1, 1), [(1, 1), (0, 0), (0, 0)])
    out = bn(out, raw["g2"], raw["b2"], raw["m2"], raw["v2"]) + identity
    return jnp.maximum(out, 0.0)


# ---------------------------------------------------------------------------
if __name__ == "__main__":
    N, inplanes, T, H, W = 2, 8, 4, 8, 8
    planes = 8  # == inplanes so the identity residual is well-formed

    key = jax.random.PRNGKey(0)
    kx, kp = jax.random.split(key)
    x = jax.random.normal(kx, (N, inplanes, T, H, W), jnp.float32)

    raw, params = init_params(kp, inplanes, planes)

    fwd = jax.jit(functools.partial(basic_block_forward, planes=planes))
    out = jax.block_until_ready(fwd(x, params))

    ref = jax.block_until_ready(reference_forward(x, raw))
    assert out.shape == ref.shape == (N, planes, T, H, W), (out.shape, ref.shape)
    assert bool(jnp.allclose(out, ref, atol=5e-2, rtol=5e-2)), \
        float(jnp.max(jnp.abs(out - ref)))

    print("KERNEL_OK")
</pallas_src>

<mosaic_0001>
module attributes {stable_mosaic.version = 11 : i64} {
  func.func @_spatial_conv_kernel(%arg0: i32, %arg1: memref<1x110x8xbf16, #tpu.memory_space<vmem>>, %arg2: memref<9x8x128xbf16, #tpu.memory_space<vmem>>, %arg3: memref<1x80x128xbf16, #tpu.memory_space<vmem>>) attributes {dimension_semantics = [#tpu.dimension_semantics<parallel>], iteration_bounds = array<i64: 8>, scalar_prefetch = 0 : i64, scratch_operands = 0 : i64, tpu.core_type = #tpu.core_type<tc>, window_params = [{transform_indices = @transform_0, window_bounds = array<i64: 1, 110, 8>}, {pipeline_mode = #tpu.pipeline_mode<synchronous>, transform_indices = @transform_1, window_bounds = array<i64: 9, 8, 128>}, {transform_indices = @transform_2, window_bounds = array<i64: 1, 80, 128>}]} {
    %cst = arith.constant 0.000000e+00 : f32
    %0 = vector.broadcast %cst : f32 to vector<80x128xf32>
    %c0 = arith.constant 0 : index
    %c0_0 = arith.constant 0 : index
    %c0_1 = arith.constant 0 : index
    %1 = vector.load %arg1[%c0, %c0_0, %c0_1] : memref<1x110x8xbf16, #tpu.memory_space<vmem>>, vector<1x80x8xbf16>
    %2 = vector.shape_cast %1 : vector<1x80x8xbf16> to vector<80x8xbf16>
    %c0_2 = arith.constant 0 : index
    %c0_3 = arith.constant 0 : index
    %c0_4 = arith.constant 0 : index
    %3 = vector.load %arg2[%c0_2, %c0_3, %c0_4] : memref<9x8x128xbf16, #tpu.memory_space<vmem>>, vector<1x8x128xbf16>
    %4 = vector.shape_cast %3 : vector<1x8x128xbf16> to vector<8x128xbf16>
    %cst_5 = arith.constant dense<0.000000e+00> : vector<80x128xf32>
    %5 = tpu.matmul %2, %4, %cst_5 {dimension_numbers = #tpu.dot_dimension_numbers<[1], [0], [0], [1], [0, 0, 1, 1], [], []>} : vector<80x8xbf16>, vector<8x128xbf16>, vector<80x128xf32> -> vector<80x128xf32>
    %6 = arith.addf %0, %5 : vector<80x128xf32>
    %c0_6 = arith.constant 0 : index
    %c1 = arith.constant 1 : index
    %c0_7 = arith.constant 0 : index
    %7 = vector.load %arg1[%c0_6, %c1, %c0_7] : memref<1x110x8xbf16, #tpu.memory_space<vmem>>, vector<1x80x8xbf16>
    %8 = vector.shape_cast %7 : vector<1x80x8xbf16> to vector<80x8xbf16>
    %c1_8 = arith.constant 1 : index
    %c0_9 = arith.constant 0 : index
    %c0_10 = arith.constant 0 : index
    %9 = vector.load %arg2[%c1_8, %c0_9, %c0_10] : memref<9x8x128xbf16, #tpu.memory_space<vmem>>, vector<1x8x128xbf16>
    %10 = vector.shape_cast %9 : vector<1x8x128xbf16> to vector<8x128xbf16>
    %cst_11 = arith.constant dense<0.000000e+00> : vector<80x128xf32>
    %11 = tpu.matmul %8, %10, %cst_11 {dimension_numbers = #tpu.dot_dimension_numbers<[1], [0], [0], [1], [0, 0, 1, 1], [], []>} : vector<80x8xbf16>, vector<8x128xbf16>, vector<80x128xf32> -> vector<80x128xf32>
    %12 = arith.addf %6, %11 : vector<80x128xf32>
    %c0_12 = arith.constant 0 : index
    %c2 = arith.constant 2 : index
    %c0_13 = arith.constant 0 : index
    %13 = vector.load %arg1[%c0_12, %c2, %c0_13] : memref<1x110x8xbf16, #tpu.memory_space<vmem>>, vector<1x80x8xbf16>
    %14 = vector.shape_cast %13 : vector<1x80x8xbf16> to vector<80x8xbf16>
    %c2_14 = arith.constant 2 : index
    %c0_15 = arith.constant 0 : index
    %c0_16 = arith.constant 0 : index
    %15 = vector.load %arg2[%c2_14, %c0_15, %c0_16] : memref<9x8x128xbf16, #tpu.memory_space<vmem>>, vector<1x8x128xbf16>
    %16 = vector.shape_cast %15 : vector<1x8x128xbf16> to vector<8x128xbf16>
    %cst_17 = arith.constant dense<0.000000e+00> : vector<80x128xf32>
    %17 = tpu.matmul %14, %16, %cst_17 {dimension_numbers = #tpu.dot_dimension_numbers<[1], [0], [0], [1], [0, 0, 1, 1], [], []>} : vector<80x8xbf16>, vector<8x128xbf16>, vector<80x128xf32> -> vector<80x128xf32>
    %18 = arith.addf %12, %17 : vector<80x128xf32>
    %c0_18 = arith.constant 0 : index
    %c10 = arith.constant 10 : index
    %c0_19 = arith.constant 0 : index
    %19 = vector.load %arg1[%c0_18, %c10, %c0_19] : memref<1x110x8xbf16, #tpu.memory_space<vmem>>, vector<1x80x8xbf16>
    %20 = vector.shape_cast %19 : vector<1x80x8xbf16> to vector<80x8xbf16>
    %c3 = arith.constant 3 : index
    %c0_20 = arith.constant 0 : index
    %c0_21 = arith.constant 0 : index
    %21 = vector.load %arg2[%c3, %c0_20, %c0_21] : memref<9x8x128xbf16, #tpu.memory_space<vmem>>, vector<1x8x128xbf16>
    %22 = vector.shape_cast %21 : vector<1x8x128xbf16> to vector<8x128xbf16>
    %cst_22 = arith.constant dense<0.000000e+00> : vector<80x128xf32>
    %23 = tpu.matmul %20, %22, %cst_22 {dimension_numbers = #tpu.dot_dimension_numbers<[1], [0], [0], [1], [0, 0, 1, 1], [], []>} : vector<80x8xbf16>, vector<8x128xbf16>, vector<80x128xf32> -> vector<80x128xf32>
    %24 = arith.addf %18, %23 : vector<80x128xf32>
    %c0_23 = arith.constant 0 : index
    %c11 = arith.constant 11 : index
    %c0_24 = arith.constant 0 : index
    %25 = vector.load %arg1[%c0_23, %c11, %c0_24] : memref<1x110x8xbf16, #tpu.memory_space<vmem>>, vector<1x80x8xbf16>
    %26 = vector.shape_cast %25 : vector<1x80x8xbf16> to vector<80x8xbf16>
    %c4 = arith.constant 4 : index
    %c0_25 = arith.constant 0 : index
    %c0_26 = arith.constant 0 : index
    %27 = vector.load %arg2[%c4, %c0_25, %c0_26] : memref<9x8x128xbf16, #tpu.memory_space<vmem>>, vector<1x8x128xbf16>
    %28 = vector.shape_cast %27 : vector<1x8x128xbf16> to vector<8x128xbf16>
    %cst_27 = arith.constant dense<0.000000e+00> : vector<80x128xf32>
    %29 = tpu.matmul %26, %28, %cst_27 {dimension_numbers = #tpu.dot_dimension_numbers<[1], [0], [0], [1], [0, 0, 1, 1], [], []>} : vector<80x8xbf16>, vector<8x128xbf16>, vector<80x128xf32> -> vector<80x128xf32>
    %30 = arith.addf %24, %29 : vector<80x128xf32>
    %c0_28 = arith.constant 0 : index
    %c12 = arith.constant 12 : index
    %c0_29 = arith.constant 0 : index
    %31 = vector.load %arg1[%c0_28, %c12, %c0_29] : memref<1x110x8xbf16, #tpu.memory_space<vmem>>, vector<1x80x8xbf16>
    %32 = vector.shape_cast %31 : vector<1x80x8xbf16> to vector<80x8xbf16>
    %c5 = arith.constant 5 : index
    %c0_30 = arith.constant 0 : index
    %c0_31 = arith.constant 0 : index
    %33 = vector.load %arg2[%c5, %c0_30, %c0_31] : memref<9x8x128xbf16, #tpu.memory_space<vmem>>, vector<1x8x128xbf16>
    %34 = vector.shape_cast %33 : vector<1x8x128xbf16> to vector<8x128xbf16>
    %cst_32 = arith.constant dense<0.000000e+00> : vector<80x128xf32>
    %35 = tpu.matmul %32, %34, %cst_32 {dimension_numbers = #tpu.dot_dimension_numbers<[1], [0], [0], [1], [0, 0, 1, 1], [], []>} : vector<80x8xbf16>, vector<8x128xbf16>, vector<80x128xf32> -> vector<80x128xf32>
    %36 = arith.addf %30, %35 : vector<80x128xf32>
    %c0_33 = arith.constant 0 : index
    %c20 = arith.constant 20 : index
    %c0_34 = arith.constant 0 : index
    %37 = vector.load %arg1[%c0_33, %c20, %c0_34] : memref<1x110x8xbf16, #tpu.memory_space<vmem>>, vector<1x80x8xbf16>
    %38 = vector.shape_cast %37 : vector<1x80x8xbf16> to vector<80x8xbf16>
    %c6 = arith.constant 6 : index
    %c0_35 = arith.constant 0 : index
    %c0_36 = arith.constant 0 : index
    %39 = vector.load %arg2[%c6, %c0_35, %c0_36] : memref<9x8x128xbf16, #tpu.memory_space<vmem>>, vector<1x8x128xbf16>
    %40 = vector.shape_cast %39 : vector<1x8x128xbf16> to vector<8x128xbf16>
    %cst_37 = arith.constant dense<0.000000e+00> : vector<80x128xf32>
    %41 = tpu.matmul %38, %40, %cst_37 {dimension_numbers = #tpu.dot_dimension_numbers<[1], [0], [0], [1], [0, 0, 1, 1], [], []>} : vector<80x8xbf16>, vector<8x128xbf16>, vector<80x128xf32> -> vector<80x128xf32>
    %42 = arith.addf %36, %41 : vector<80x128xf32>
    %c0_38 = arith.constant 0 : index
    %c21 = arith.constant 21 : index
    %c0_39 = arith.constant 0 : index
    %43 = vector.load %arg1[%c0_38, %c21, %c0_39] : memref<1x110x8xbf16, #tpu.memory_space<vmem>>, vector<1x80x8xbf16>
    %44 = vector.shape_cast %43 : vector<1x80x8xbf16> to vector<80x8xbf16>
    %c7 = arith.constant 7 : index
    %c0_40 = arith.constant 0 : index
    %c0_41 = arith.constant 0 : index
    %45 = vector.load %arg2[%c7, %c0_40, %c0_41] : memref<9x8x128xbf16, #tpu.memory_space<vmem>>, vector<1x8x128xbf16>
    %46 = vector.shape_cast %45 : vector<1x8x128xbf16> to vector<8x128xbf16>
    %cst_42 = arith.constant dense<0.000000e+00> : vector<80x128xf32>
    %47 = tpu.matmul %44, %46, %cst_42 {dimension_numbers = #tpu.dot_dimension_numbers<[1], [0], [0], [1], [0, 0, 1, 1], [], []>} : vector<80x8xbf16>, vector<8x128xbf16>, vector<80x128xf32> -> vector<80x128xf32>
    %48 = arith.addf %42, %47 : vector<80x128xf32>
    %c0_43 = arith.constant 0 : index
    %c22 = arith.constant 22 : index
    %c0_44 = arith.constant 0 : index
    %49 = vector.load %arg1[%c0_43, %c22, %c0_44] : memref<1x110x8xbf16, #tpu.memory_space<vmem>>, vector<1x80x8xbf16>
    %50 = vector.shape_cast %49 : vector<1x80x8xbf16> to vector<80x8xbf16>
    %c8 = arith.constant 8 : index
    %c0_45 = arith.constant 0 : index
    %c0_46 = arith.constant 0 : index
    %51 = vector.load %arg2[%c8, %c0_45, %c0_46] : memref<9x8x128xbf16, #tpu.memory_space<vmem>>, vector<1x8x128xbf16>
    %52 = vector.shape_cast %51 : vector<1x8x128xbf16> to vector<8x128xbf16>
    %cst_47 = arith.constant dense<0.000000e+00> : vector<80x128xf32>
    %53 = tpu.matmul %50, %52, %cst_47 {dimension_numbers = #tpu.dot_dimension_numbers<[1], [0], [0], [1], [0, 0, 1, 1], [], []>} : vector<80x8xbf16>, vector<8x128xbf16>, vector<80x128xf32> -> vector<80x128xf32>
    %54 = arith.addf %48, %53 : vector<80x128xf32>
    %55 = arith.truncf %54 : vector<80x128xf32> to vector<80x128xbf16>
    %c0_48 = arith.constant 0 : index
    %c0_49 = arith.constant 0 : index
    %c0_50 = arith.constant 0 : index
    %56 = vector.load %arg3[%c0_48, %c0_49, %c0_50] : memref<1x80x128xbf16, #tpu.memory_space<vmem>>, vector<1x80x128xbf16>
    %57 = vector.shape_cast %56 : vector<1x80x128xbf16> to vector<80x128xbf16>
    %58 = vector.shape_cast %55 : vector<80x128xbf16> to vector<1x80x128xbf16>
    tpu.vector_store %arg3[%c0_48, %c0_49, %c0_50], %58 {strides = array<i32>} : memref<1x80x128xbf16, #tpu.memory_space<vmem>>, vector<1x80x128xbf16>,
    return
  }
  func.func @transform_0(%arg0: i32) -> (i32, i32, i32) {
    %c0_i32 = arith.constant 0 : i32
    %c0_i32_0 = arith.constant 0 : i32
    %c0_i32_1 = arith.constant 0 : i32
    return %arg0, %c0_i32, %c0_i32_0 : i32, i32, i32
  }
  func.func @transform_1(%arg0: i32) -> (i32, i32, i32) {
    %c0_i32 = arith.constant 0 : i32
    %c0_i32_0 = arith.constant 0 : i32
    %c0_i32_1 = arith.constant 0 : i32
    %c0_i32_2 = arith.constant 0 : i32
    return %c0_i32, %c0_i32_0, %c0_i32_1 : i32, i32, i32
  }
  func.func @transform_2(%arg0: i32) -> (i32, i32, i32) {
    %c0_i32 = arith.constant 0 : i32
    %c0_i32_0 = arith.constant 0 : i32
    %c0_i32_1 = arith.constant 0 : i32
    return %arg0, %c0_i32, %c0_i32_0 : i32, i32, i32
  }
}

module attributes {stable_mosaic.version = 11 : i64} {
  func.func @_temporal_kernel(%arg0: i32, %arg1: i32, %arg2: memref<1x6x64x128xbf16, #tpu.memory_space<vmem>>, %arg3: memref<3x128x128xbf16, #tpu.memory_space<vmem>>, %arg4: memref<1x128xf32, #tpu.memory_space<vmem>>, %arg5: memref<1x128xf32, #tpu.memory_space<vmem>>, %arg6: memref<1x4x64x128xbf16, #tpu.memory_space<vmem>>) attributes {dimension_semantics = [#tpu.dimension_semantics<parallel>, #tpu.dimension_semantics<parallel>], iteration_bounds = array<i64: 2, 1>, scalar_prefetch = 0 : i64, scratch_operands = 0 : i64, tpu.core_type = #tpu.core_type<tc>, window_params = [{transform_indices = @transform_0, window_bounds = array<i64: 1, 6, 64, 128>}, {pipeline_mode = #tpu.pipeline_mode<synchronous>, transform_indices = @transform_1, window_bounds = array<i64: 3, 128, 128>}, {pipeline_mode = #tpu.pipeline_mode<synchronous>, transform_indices = @transform_2, window_bounds = array<i64: 1, 128>}, {pipeline_mode = #tpu.pipeline_mode<synchronous>, transform_indices = @transform_3, window_bounds = array<i64: 1, 128>}, {transform_indices = @transform_4, window_bounds = array<i64: 1, 4, 64, 128>}]} {
    %c0 = arith.constant 0 : index
    %c0_0 = arith.constant 0 : index
    %c0_1 = arith.constant 0 : index
    %c0_2 = arith.constant 0 : index
    %0 = vector.load %arg2[%c0, %c0_0, %c0_1, %c0_2] : memref<1x6x64x128xbf16, #tpu.memory_space<vmem>>, vector<1x6x64x128xbf16>
    %1 = vector.shape_cast %0 : vector<1x6x64x128xbf16> to vector<6x64x128xbf16>
    %2 = vector.shape_cast %1 : vector<6x64x128xbf16> to vector<384x128xbf16>
    %3 = vector.extract_strided_slice %2 {offsets = [0, 0], sizes = [256, 128], strides = [1, 1]} : vector<384x128xbf16> to vector<256x128xbf16>
    %c0_3 = arith.constant 0 : index
    %c0_4 = arith.constant 0 : index
    %c0_5 = arith.constant 0 : index
    %4 = vector.load %arg3[%c0_3, %c0_4, %c0_5] : memref<3x128x128xbf16, #tpu.memory_space<vmem>>, vector<1x128x128xbf16>
    %5 = vector.shape_cast %4 : vector<1x128x128xbf16> to vector<128x128xbf16>
    %cst = arith.constant dense<0.000000e+00> : vector<256x128xf32>
    %6 = tpu.matmul %3, %5, %cst {dimension_numbers = #tpu.dot_dimension_numbers<[1], [0], [0], [1], [0, 0, 1, 1], [], []>} : vector<256x128xbf16>, vector<128x128xbf16>, vector<256x128xf32> -> vector<256x128xf32>
    %7 = vector.extract_strided_slice %2 {offsets = [64, 0], sizes = [256, 128], strides = [1, 1]} : vector<384x128xbf16> to vector<256x128xbf16>
    %c1 = arith.constant 1 : index
    %c0_6 = arith.constant 0 : index
    %c0_7 = arith.constant 0 : index
    %8 = vector.load %arg3[%c1, %c0_6, %c0_7] : memref<3x128x128xbf16, #tpu.memory_space<vmem>>, vector<1x128x128xbf16>
    %9 = vector.shape_cast %8 : vector<1x128x128xbf16> to vector<128x128xbf16>
    %cst_8 = arith.constant dense<0.000000e+00> : vector<256x128xf32>
    %10 = tpu.matmul %7, %9, %cst_8 {dimension_numbers = #tpu.dot_dimension_numbers<[1], [0], [0], [1], [0, 0, 1, 1], [], []>} : vector<256x128xbf16>, vector<128x128xbf16>, vector<256x128xf32> -> vector<256x128xf32>
    %11 = arith.addf %6, %10 : vector<256x128xf32>
    %12 = vector.extract_strided_slice %2 {offsets = [128, 0], sizes = [256, 128], strides = [1, 1]} : vector<384x128xbf16> to vector<256x128xbf16>
    %c2 = arith.constant 2 : index
    %c0_9 = arith.constant 0 : index
    %c0_10 = arith.constant 0 : index
    %13 = vector.load %arg3[%c2, %c0_9, %c0_10] : memref<3x128x128xbf16, #tpu.memory_space<vmem>>, vector<1x128x128xbf16>
    %14 = vector.shape_cast %13 : vector<1x128x128xbf16> to vector<128x128xbf16>
    %cst_11 = arith.constant dense<0.000000e+00> : vector<256x128xf32>
    %15 = tpu.matmul %12, %14, %cst_11 {dimension_numbers = #tpu.dot_dimension_numbers<[1], [0], [0], [1], [0, 0, 1, 1], [], []>} : vector<256x128xbf16>, vector<128x128xbf16>, vector<256x128xf32> -> vector<256x128xf32>
    %16 = arith.addf %11, %15 : vector<256x128xf32>
    %c0_12 = arith.constant 0 : index
    %c0_13 = arith.constant 0 : index
    %17 = vector.load %arg4[%c0_12, %c0_13] : memref<1x128xf32, #tpu.memory_space<vmem>>, vector<1x128xf32>
    %18 = vector.broadcast %17 : vector<1x128xf32> to vector<256x128xf32>
    %19 = arith.mulf %16, %18 : vector<256x128xf32>
    %c0_14 = arith.constant 0 : index
    %c0_15 = arith.constant 0 : index
    %20 = vector.load %arg5[%c0_14, %c0_15] : memref<1x128xf32, #tpu.memory_space<vmem>>, vector<1x128xf32>
    %21 = vector.broadcast %20 : vector<1x128xf32> to vector<256x128xf32>
    %22 = arith.addf %19, %21 : vector<256x128xf32>
    %cst_16 = arith.constant 0.000000e+00 : f32
    %23 = vector.broadcast %cst_16 : f32 to vector<256x128xf32>
    %24 = arith.maximumf %22, %23 : vector<256x128xf32>
    %25 = vector.shape_cast %24 : vector<256x128xf32> to vector<4x64x128xf32>
    %26 = arith.truncf %25 : vector<4x64x128xf32> to vector<4x64x128xbf16>
    %c0_17 = arith.constant 0 : index
    %c0_18 = arith.constant 0 : index
    %c0_19 = arith.constant 0 : index
    %c0_20 = arith.constant 0 : index
    %27 = vector.load %arg6[%c0_17, %c0_18, %c0_19, %c0_20] : memref<1x4x64x128xbf16, #tpu.memory_space<vmem>>, vector<1x4x64x128xbf16>
    %28 = vector.shape_cast %27 : vector<1x4x64x128xbf16> to vector<4x64x128xbf16>
    %29 = vector.shape_cast %26 : vector<4x64x128xbf16> to vector<1x4x64x128xbf16>
    tpu.vector_store %arg6[%c0_17, %c0_18, %c0_19, %c0_20], %29 {strides = array<i32>} : memref<1x4x64x128xbf16, #tpu.memory_space<vmem>>, vector<1x4x64x128xbf16>,
    return
  }
  func.func @transform_0(%arg0: i32, %arg1: i32) -> (i32, i32, i32, i32) {
    %c0_i32 = arith.constant 0 : i32
    %c0_i32_0 = arith.constant 0 : i32
    %c0_i32_1 = arith.constant 0 : i32
    return %arg0, %c0_i32, %arg1, %c0_i32_0 : i32, i32, i32, i32
  }
  func.func @transform_1(%arg0: i32, %arg1: i32) -> (i32, i32, i32) {
    %c0_i32 = arith.constant 0 : i32
    %c0_i32_0 = arith.constant 0 : i32
    %c0_i32_1 = arith.constant 0 : i32
    %c0_i32_2 = arith.constant 0 : i32
    return %c0_i32, %c0_i32_0, %c0_i32_1 : i32, i32, i32
  }
  func.func @transform_2(%arg0: i32, %arg1: i32) -> (i32, i32) {
    %c0_i32 = arith.constant 0 : i32
    %c0_i32_0 = arith.constant 0 : i32
    %c0_i32_1 = arith.constant 0 : i32
    return %c0_i32, %c0_i32_0 : i32, i32
  }
  func.func @transform_3(%arg0: i32, %arg1: i32) -> (i32, i32) {
    %c0_i32 = arith.constant 0 : i32
    %c0_i32_0 = arith.constant 0 : i32
    %c0_i32_1 = arith.constant 0 : i32
    return %c0_i32, %c0_i32_0 : i32, i32
  }
  func.func @transform_4(%arg0: i32, %arg1: i32) -> (i32, i32, i32, i32) {
    %c0_i32 = arith.constant 0 : i32
    %c0_i32_0 = arith.constant 0 : i32
    %c0_i32_1 = arith.constant 0 : i32
    return %arg0, %c0_i32, %arg1, %c0_i32_0 : i32, i32, i32, i32
  }
}

module attributes {stable_mosaic.version = 11 : i64} {
  func.func @_spatial_conv_kernel(%arg0: i32, %arg1: memref<1x110x128xbf16, #tpu.memory_space<vmem>>, %arg2: memref<9x128x128xbf16, #tpu.memory_space<vmem>>, %arg3: memref<1x80x128xbf16, #tpu.memory_space<vmem>>) attributes {dimension_semantics = [#tpu.dimension_semantics<parallel>], iteration_bounds = array<i64: 8>, scalar_prefetch = 0 : i64, scratch_operands = 0 : i64, tpu.core_type = #tpu.core_type<tc>, window_params = [{transform_indices = @transform_0, window_bounds = array<i64: 1, 110, 128>}, {pipeline_mode = #tpu.pipeline_mode<synchronous>, transform_indices = @transform_1, window_bounds = array<i64: 9, 128, 128>}, {transform_indices = @transform_2, window_bounds = array<i64: 1, 80, 128>}]} {
    %cst = arith.constant 0.000000e+00 : f32
    %0 = vector.broadcast %cst : f32 to vector<80x128xf32>
    %c0 = arith.constant 0 : index
    %c0_0 = arith.constant 0 : index
    %c0_1 = arith.constant 0 : index
    %1 = vector.load %arg1[%c0, %c0_0, %c0_1] : memref<1x110x128xbf16, #tpu.memory_space<vmem>>, vector<1x80x128xbf16>
    %2 = vector.shape_cast %1 : vector<1x80x128xbf16> to vector<80x128xbf16>
    %c0_2 = arith.constant 0 : index
    %c0_3 = arith.constant 0 : index
    %c0_4 = arith.constant 0 : index
    %3 = vector.load %arg2[%c0_2, %c0_3, %c0_4] : memref<9x128x128xbf16, #tpu.memory_space<vmem>>, vector<1x128x128xbf16>
    %4 = vector.shape_cast %3 : vector<1x128x128xbf16> to vector<128x128xbf16>
    %cst_5 = arith.constant dense<0.000000e+00> : vector<80x128xf32>
    %5 = tpu.matmul %2, %4, %cst_5 {dimension_numbers = #tpu.dot_dimension_numbers<[1], [0], [0], [1], [0, 0, 1, 1], [], []>} : vector<80x128xbf16>, vector<128x128xbf16>, vector<80x128xf32> -> vector<80x128xf32>
    %6 = arith.addf %0, %5 : vector<80x128xf32>
    %c0_6 = arith.constant 0 : index
    %c1 = arith.constant 1 : index
    %c0_7 = arith.constant 0 : index
    %7 = vector.load %arg1[%c0_6, %c1, %c0_7] : memref<1x110x128xbf16, #tpu.memory_space<vmem>>, vector<1x80x128xbf16>
    %8 = vector.shape_cast %7 : vector<1x80x128xbf16> to vector<80x128xbf16>
    %c1_8 = arith.constant 1 : index
    %c0_9 = arith.constant 0 : index
    %c0_10 = arith.constant 0 : index
    %9 = vector.load %arg2[%c1_8, %c0_9, %c0_10] : memref<9x128x128xbf16, #tpu.memory_space<vmem>>, vector<1x128x128xbf16>
    %10 = vector.shape_cast %9 : vector<1x128x128xbf16> to vector<128x128xbf16>
    %cst_11 = arith.constant dense<0.000000e+00> : vector<80x128xf32>
    %11 = tpu.matmul %8, %10, %cst_11 {dimension_numbers = #tpu.dot_dimension_numbers<[1], [0], [0], [1], [0, 0, 1, 1], [], []>} : vector<80x128xbf16>, vector<128x128xbf16>, vector<80x128xf32> -> vector<80x128xf32>
    %12 = arith.addf %6, %11 : vector<80x128xf32>
    %c0_12 = arith.constant 0 : index
    %c2 = arith.constant 2 : index
    %c0_13 = arith.constant 0 : index
    %13 = vector.load %arg1[%c0_12, %c2, %c0_13] : memref<1x110x128xbf16, #tpu.memory_space<vmem>>, vector<1x80x128xbf16>
    %14 = vector.shape_cast %13 : vector<1x80x128xbf16> to vector<80x128xbf16>
    %c2_14 = arith.constant 2 : index
    %c0_15 = arith.constant 0 : index
    %c0_16 = arith.constant 0 : index
    %15 = vector.load %arg2[%c2_14, %c0_15, %c0_16] : memref<9x128x128xbf16, #tpu.memory_space<vmem>>, vector<1x128x128xbf16>
    %16 = vector.shape_cast %15 : vector<1x128x128xbf16> to vector<128x128xbf16>
    %cst_17 = arith.constant dense<0.000000e+00> : vector<80x128xf32>
    %17 = tpu.matmul %14, %16, %cst_17 {dimension_numbers = #tpu.dot_dimension_numbers<[1], [0], [0], [1], [0, 0, 1, 1], [], []>} : vector<80x128xbf16>, vector<128x128xbf16>, vector<80x128xf32> -> vector<80x128xf32>
    %18 = arith.addf %12, %17 : vector<80x128xf32>
    %c0_18 = arith.constant 0 : index
    %c10 = arith.constant 10 : index
    %c0_19 = arith.constant 0 : index
    %19 = vector.load %arg1[%c0_18, %c10, %c0_19] : memref<1x110x128xbf16, #tpu.memory_space<vmem>>, vector<1x80x128xbf16>
    %20 = vector.shape_cast %19 : vector<1x80x128xbf16> to vector<80x128xbf16>
    %c3 = arith.constant 3 : index
    %c0_20 = arith.constant 0 : index
    %c0_21 = arith.constant 0 : index
    %21 = vector.load %arg2[%c3, %c0_20, %c0_21] : memref<9x128x128xbf16, #tpu.memory_space<vmem>>, vector<1x128x128xbf16>
    %22 = vector.shape_cast %21 : vector<1x128x128xbf16> to vector<128x128xbf16>
    %cst_22 = arith.constant dense<0.000000e+00> : vector<80x128xf32>
    %23 = tpu.matmul %20, %22, %cst_22 {dimension_numbers = #tpu.dot_dimension_numbers<[1], [0], [0], [1], [0, 0, 1, 1], [], []>} : vector<80x128xbf16>, vector<128x128xbf16>, vector<80x128xf32> -> vector<80x128xf32>
    %24 = arith.addf %18, %23 : vector<80x128xf32>
    %c0_23 = arith.constant 0 : index
    %c11 = arith.constant 11 : index
    %c0_24 = arith.constant 0 : index
    %25 = vector.load %arg1[%c0_23, %c11, %c0_24] : memref<1x110x128xbf16, #tpu.memory_space<vmem>>, vector<1x80x128xbf16>
    %26 = vector.shape_cast %25 : vector<1x80x128xbf16> to vector<80x128xbf16>
    %c4 = arith.constant 4 : index
    %c0_25 = arith.constant 0 : index
    %c0_26 = arith.constant 0 : index
    %27 = vector.load %arg2[%c4, %c0_25, %c0_26] : memref<9x128x128xbf16, #tpu.memory_space<vmem>>, vector<1x128x128xbf16>
    %28 = vector.shape_cast %27 : vector<1x128x128xbf16> to vector<128x128xbf16>
    %cst_27 = arith.constant dense<0.000000e+00> : vector<80x128xf32>
    %29 = tpu.matmul %26, %28, %cst_27 {dimension_numbers = #tpu.dot_dimension_numbers<[1], [0], [0], [1], [0, 0, 1, 1], [], []>} : vector<80x128xbf16>, vector<128x128xbf16>, vector<80x128xf32> -> vector<80x128xf32>
    %30 = arith.addf %24, %29 : vector<80x128xf32>
    %c0_28 = arith.constant 0 : index
    %c12 = arith.constant 12 : index
    %c0_29 = arith.constant 0 : index
    %31 = vector.load %arg1[%c0_28, %c12, %c0_29] : memref<1x110x128xbf16, #tpu.memory_space<vmem>>, vector<1x80x128xbf16>
    %32 = vector.shape_cast %31 : vector<1x80x128xbf16> to vector<80x128xbf16>
    %c5 = arith.constant 5 : index
    %c0_30 = arith.constant 0 : index
    %c0_31 = arith.constant 0 : index
    %33 = vector.load %arg2[%c5, %c0_30, %c0_31] : memref<9x128x128xbf16, #tpu.memory_space<vmem>>, vector<1x128x128xbf16>
    %34 = vector.shape_cast %33 : vector<1x128x128xbf16> to vector<128x128xbf16>
    %cst_32 = arith.constant dense<0.000000e+00> : vector<80x128xf32>
    %35 = tpu.matmul %32, %34, %cst_32 {dimension_numbers = #tpu.dot_dimension_numbers<[1], [0], [0], [1], [0, 0, 1, 1], [], []>} : vector<80x128xbf16>, vector<128x128xbf16>, vector<80x128xf32> -> vector<80x128xf32>
    %36 = arith.addf %30, %35 : vector<80x128xf32>
    %c0_33 = arith.constant 0 : index
    %c20 = arith.constant 20 : index
    %c0_34 = arith.constant 0 : index
    %37 = vector.load %arg1[%c0_33, %c20, %c0_34] : memref<1x110x128xbf16, #tpu.memory_space<vmem>>, vector<1x80x128xbf16>
    %38 = vector.shape_cast %37 : vector<1x80x128xbf16> to vector<80x128xbf16>
    %c6 = arith.constant 6 : index
    %c0_35 = arith.constant 0 : index
    %c0_36 = arith.constant 0 : index
    %39 = vector.load %arg2[%c6, %c0_35, %c0_36] : memref<9x128x128xbf16, #tpu.memory_space<vmem>>, vector<1x128x128xbf16>
    %40 = vector.shape_cast %39 : vector<1x128x128xbf16> to vector<128x128xbf16>
    %cst_37 = arith.constant dense<0.000000e+00> : vector<80x128xf32>
    %41 = tpu.matmul %38, %40, %cst_37 {dimension_numbers = #tpu.dot_dimension_numbers<[1], [0], [0], [1], [0, 0, 1, 1], [], []>} : vector<80x128xbf16>, vector<128x128xbf16>, vector<80x128xf32> -> vector<80x128xf32>
    %42 = arith.addf %36, %41 : vector<80x128xf32>
    %c0_38 = arith.constant 0 : index
    %c21 = arith.constant 21 : index
    %c0_39 = arith.constant 0 : index
    %43 = vector.load %arg1[%c0_38, %c21, %c0_39] : memref<1x110x128xbf16, #tpu.memory_space<vmem>>, vector<1x80x128xbf16>
    %44 = vector.shape_cast %43 : vector<1x80x128xbf16> to vector<80x128xbf16>
    %c7 = arith.constant 7 : index
    %c0_40 = arith.constant 0 : index
    %c0_41 = arith.constant 0 : index
    %45 = vector.load %arg2[%c7, %c0_40, %c0_41] : memref<9x128x128xbf16, #tpu.memory_space<vmem>>, vector<1x128x128xbf16>
    %46 = vector.shape_cast %45 : vector<1x128x128xbf16> to vector<128x128xbf16>
    %cst_42 = arith.constant dense<0.000000e+00> : vector<80x128xf32>
    %47 = tpu.matmul %44, %46, %cst_42 {dimension_numbers = #tpu.dot_dimension_numbers<[1], [0], [0], [1], [0, 0, 1, 1], [], []>} : vector<80x128xbf16>, vector<128x128xbf16>, vector<80x128xf32> -> vector<80x128xf32>
    %48 = arith.addf %42, %47 : vector<80x128xf32>
    %c0_43 = arith.constant 0 : index
    %c22 = arith.constant 22 : index
    %c0_44 = arith.constant 0 : index
    %49 = vector.load %arg1[%c0_43, %c22, %c0_44] : memref<1x110x128xbf16, #tpu.memory_space<vmem>>, vector<1x80x128xbf16>
    %50 = vector.shape_cast %49 : vector<1x80x128xbf16> to vector<80x128xbf16>
    %c8 = arith.constant 8 : index
    %c0_45 = arith.constant 0 : index
    %c0_46 = arith.constant 0 : index
    %51 = vector.load %arg2[%c8, %c0_45, %c0_46] : memref<9x128x128xbf16, #tpu.memory_space<vmem>>, vector<1x128x128xbf16>
    %52 = vector.shape_cast %51 : vector<1x128x128xbf16> to vector<128x128xbf16>
    %cst_47 = arith.constant dense<0.000000e+00> : vector<80x128xf32>
    %53 = tpu.matmul %50, %52, %cst_47 {dimension_numbers = #tpu.dot_dimension_numbers<[1], [0], [0], [1], [0, 0, 1, 1], [], []>} : vector<80x128xbf16>, vector<128x128xbf16>, vector<80x128xf32> -> vector<80x128xf32>
    %54 = arith.addf %48, %53 : vector<80x128xf32>
    %55 = arith.truncf %54 : vector<80x128xf32> to vector<80x128xbf16>
    %c0_48 = arith.constant 0 : index
    %c0_49 = arith.constant 0 : index
    %c0_50 = arith.constant 0 : index
    %56 = vector.load %arg3[%c0_48, %c0_49, %c0_50] : memref<1x80x128xbf16, #tpu.memory_space<vmem>>, vector<1x80x128xbf16>
    %57 = vector.shape_cast %56 : vector<1x80x128xbf16> to vector<80x128xbf16>
    %58 = vector.shape_cast %55 : vector<80x128xbf16> to vector<1x80x128xbf16>
    tpu.vector_store %arg3[%c0_48, %c0_49, %c0_50], %58 {strides = array<i32>} : memref<1x80x128xbf16, #tpu.memory_space<vmem>>, vector<1x80x128xbf16>,
    return
  }
  func.func @transform_0(%arg0: i32) -> (i32, i32, i32) {
    %c0_i32 = arith.constant 0 : i32
    %c0_i32_0 = arith.constant 0 : i32
    %c0_i32_1 = arith.constant 0 : i32
    return %arg0, %c0_i32, %c0_i32_0 : i32, i32, i32
  }
  func.func @transform_1(%arg0: i32) -> (i32, i32, i32) {
    %c0_i32 = arith.constant 0 : i32
    %c0_i32_0 = arith.constant 0 : i32
    %c0_i32_1 = arith.constant 0 : i32
    %c0_i32_2 = arith.constant 0 : i32
    return %c0_i32, %c0_i32_0, %c0_i32_1 : i32, i32, i32
  }
  func.func @transform_2(%arg0: i32) -> (i32, i32, i32) {
    %c0_i32 = arith.constant 0 : i32
    %c0_i32_0 = arith.constant 0 : i32
    %c0_i32_1 = arith.constant 0 : i32
    return %arg0, %c0_i32, %c0_i32_0 : i32, i32, i32
  }
}

module attributes {stable_mosaic.version = 11 : i64} {
  func.func @_temporal_res_kernel(%arg0: i32, %arg1: i32, %arg2: memref<1x6x64x128xbf16, #tpu.memory_space<vmem>>, %arg3: memref<3x128x128xbf16, #tpu.memory_space<vmem>>, %arg4: memref<1x128xf32, #tpu.memory_space<vmem>>, %arg5: memref<1x128xf32, #tpu.memory_space<vmem>>, %arg6: memref<1x4x64x128xf32, #tpu.memory_space<vmem>>, %arg7: memref<1x4x64x128xf32, #tpu.memory_space<vmem>>) attributes {dimension_semantics = [#tpu.dimension_semantics<parallel>, #tpu.dimension_semantics<parallel>], iteration_bounds = array<i64: 2, 1>, scalar_prefetch = 0 : i64, scratch_operands = 0 : i64, tpu.core_type = #tpu.core_type<tc>, window_params = [{transform_indices = @transform_0, window_bounds = array<i64: 1, 6, 64, 128>}, {pipeline_mode = #tpu.pipeline_mode<synchronous>, transform_indices = @transform_1, window_bounds = array<i64: 3, 128, 128>}, {pipeline_mode = #tpu.pipeline_mode<synchronous>, transform_indices = @transform_2, window_bounds = array<i64: 1, 128>}, {pipeline_mode = #tpu.pipeline_mode<synchronous>, transform_indices = @transform_3, window_bounds = array<i64: 1, 128>}, {transform_indices = @transform_4, window_bounds = array<i64: 1, 4, 64, 128>}, {transform_indices = @transform_5, window_bounds = array<i64: 1, 4, 64, 128>}]} {
    %c0 = arith.constant 0 : index
    %c0_0 = arith.constant 0 : index
    %c0_1 = arith.constant 0 : index
    %c0_2 = arith.constant 0 : index
    %0 = vector.load %arg2[%c0, %c0_0, %c0_1, %c0_2] : memref<1x6x64x128xbf16, #tpu.memory_space<vmem>>, vector<1x6x64x128xbf16>
    %1 = vector.shape_cast %0 : vector<1x6x64x128xbf16> to vector<6x64x128xbf16>
    %2 = vector.shape_cast %1 : vector<6x64x128xbf16> to vector<384x128xbf16>
    %3 = vector.extract_strided_slice %2 {offsets = [0, 0], sizes = [256, 128], strides = [1, 1]} : vector<384x128xbf16> to vector<256x128xbf16>
    %c0_3 = arith.constant 0 : index
    %c0_4 = arith.constant 0 : index
    %c0_5 = arith.constant 0 : index
    %4 = vector.load %arg3[%c0_3, %c0_4, %c0_5] : memref<3x128x128xbf16, #tpu.memory_space<vmem>>, vector<1x128x128xbf16>
    %5 = vector.shape_cast %4 : vector<1x128x128xbf16> to vector<128x128xbf16>
    %cst = arith.constant dense<0.000000e+00> : vector<256x128xf32>
    %6 = tpu.matmul %3, %5, %cst {dimension_numbers = #tpu.dot_dimension_numbers<[1], [0], [0], [1], [0, 0, 1, 1], [], []>} : vector<256x128xbf16>, vector<128x128xbf16>, vector<256x128xf32> -> vector<256x128xf32>
    %7 = vector.extract_strided_slice %2 {offsets = [64, 0], sizes = [256, 128], strides = [1, 1]} : vector<384x128xbf16> to vector<256x128xbf16>
    %c1 = arith.constant 1 : index
    %c0_6 = arith.constant 0 : index
    %c0_7 = arith.constant 0 : index
    %8 = vector.load %arg3[%c1, %c0_6, %c0_7] : memref<3x128x128xbf16, #tpu.memory_space<vmem>>, vector<1x128x128xbf16>
    %9 = vector.shape_cast %8 : vector<1x128x128xbf16> to vector<128x128xbf16>
    %cst_8 = arith.constant dense<0.000000e+00> : vector<256x128xf32>
    %10 = tpu.matmul %7, %9, %cst_8 {dimension_numbers = #tpu.dot_dimension_numbers<[1], [0], [0], [1], [0, 0, 1, 1], [], []>} : vector<256x128xbf16>, vector<128x128xbf16>, vector<256x128xf32> -> vector<256x128xf32>
    %11 = arith.addf %6, %10 : vector<256x128xf32>
    %12 = vector.extract_strided_slice %2 {offsets = [128, 0], sizes = [256, 128], strides = [1, 1]} : vector<384x128xbf16> to vector<256x128xbf16>
    %c2 = arith.constant 2 : index
    %c0_9 = arith.constant 0 : index
    %c0_10 = arith.constant 0 : index
    %13 = vector.load %arg3[%c2, %c0_9, %c0_10] : memref<3x128x128xbf16, #tpu.memory_space<vmem>>, vector<1x128x128xbf16>
    %14 = vector.shape_cast %13 : vector<1x128x128xbf16> to vector<128x128xbf16>
    %cst_11 = arith.constant dense<0.000000e+00> : vector<256x128xf32>
    %15 = tpu.matmul %12, %14, %cst_11 {dimension_numbers = #tpu.dot_dimension_numbers<[1], [0], [0], [1], [0, 0, 1, 1], [], []>} : vector<256x128xbf16>, vector<128x128xbf16>, vector<256x128xf32> -> vector<256x128xf32>
    %16 = arith.addf %11, %15 : vector<256x128xf32>
    %c0_12 = arith.constant 0 : index
    %c0_13 = arith.constant 0 : index
    %c0_14 = arith.constant 0 : index
    %c0_15 = arith.constant 0 : index
    %17 = vector.load %arg6[%c0_12, %c0_13, %c0_14, %c0_15] : memref<1x4x64x128xf32, #tpu.memory_space<vmem>>, vector<1x4x64x128xf32>
    %18 = vector.shape_cast %17 : vector<1x4x64x128xf32> to vector<4x64x128xf32>
    %19 = vector.shape_cast %18 : vector<4x64x128xf32> to vector<256x128xf32>
    %c0_16 = arith.constant 0 : index
    %c0_17 = arith.constant 0 : index
    %20 = vector.load %arg4[%c0_16, %c0_17] : memref<1x128xf32, #tpu.memory_space<vmem>>, vector<1x128xf32>
    %21 = vector.broadcast %20 : vector<1x128xf32> to vector<256x128xf32>
    %22 = arith.mulf %16, %21 : vector<256x128xf32>
    %c0_18 = arith.constant 0 : index
    %c0_19 = arith.constant 0 : index
    %23 = vector.load %arg5[%c0_18, %c0_19] : memref<1x128xf32, #tpu.memory_space<vmem>>, vector<1x128xf32>
    %24 = vector.broadcast %23 : vector<1x128xf32> to vector<256x128xf32>
    %25 = arith.addf %22, %24 : vector<256x128xf32>
    %26 = arith.addf %25, %19 : vector<256x128xf32>
    %cst_20 = arith.constant 0.000000e+00 : f32
    %27 = vector.broadcast %cst_20 : f32 to vector<256x128xf32>
    %28 = arith.maximumf %26, %27 : vector<256x128xf32>
    %29 = vector.shape_cast %28 : vector<256x128xf32> to vector<4x64x128xf32>
    %c0_21 = arith.constant 0 : index
    %c0_22 = arith.constant 0 : index
    %c0_23 = arith.constant 0 : index
    %c0_24 = arith.constant 0 : index
    %30 = vector.load %arg7[%c0_21, %c0_22, %c0_23, %c0_24] : memref<1x4x64x128xf32, #tpu.memory_space<vmem>>, vector<1x4x64x128xf32>
    %31 = vector.shape_cast %30 : vector<1x4x64x128xf32> to vector<4x64x128xf32>
    %32 = vector.shape_cast %29 : vector<4x64x128xf32> to vector<1x4x64x128xf32>
    tpu.vector_store %arg7[%c0_21, %c0_22, %c0_23, %c0_24], %32 {strides = array<i32>} : memref<1x4x64x128xf32, #tpu.memory_space<vmem>>, vector<1x4x64x128xf32>,
    return
  }
  func.func @transform_0(%arg0: i32, %arg1: i32) -> (i32, i32, i32, i32) {
    %c0_i32 = arith.constant 0 : i32
    %c0_i32_0 = arith.constant 0 : i32
    %c0_i32_1 = arith.constant 0 : i32
    return %arg0, %c0_i32, %arg1, %c0_i32_0 : i32, i32, i32, i32
  }
  func.func @transform_1(%arg0: i32, %arg1: i32) -> (i32, i32, i32) {
    %c0_i32 = arith.constant 0 : i32
    %c0_i32_0 = arith.constant 0 : i32
    %c0_i32_1 = arith.constant 0 : i32
    %c0_i32_2 = arith.constant 0 : i32
    return %c0_i32, %c0_i32_0, %c0_i32_1 : i32, i32, i32
  }
  func.func @transform_2(%arg0: i32, %arg1: i32) -> (i32, i32) {
    %c0_i32 = arith.constant 0 : i32
    %c0_i32_0 = arith.constant 0 : i32
    %c0_i32_1 = arith.constant 0 : i32
    return %c0_i32, %c0_i32_0 : i32, i32
  }
  func.func @transform_3(%arg0: i32, %arg1: i32) -> (i32, i32) {
    %c0_i32 = arith.constant 0 : i32
    %c0_i32_0 = arith.constant 0 : i32
    %c0_i32_1 = arith.constant 0 : i32
    return %c0_i32, %c0_i32_0 : i32, i32
  }
  func.func @transform_4(%arg0: i32, %arg1: i32) -> (i32, i32, i32, i32) {
    %c0_i32 = arith.constant 0 : i32
    %c0_i32_0 = arith.constant 0 : i32
    %c0_i32_1 = arith.constant 0 : i32
    return %arg0, %c0_i32, %arg1, %c0_i32_0 : i32, i32, i32, i32
  }
  func.func @transform_5(%arg0: i32, %arg1: i32) -> (i32, i32, i32, i32) {
    %c0_i32 = arith.constant 0 : i32
    %c0_i32_0 = arith.constant 0 : i32
    %c0_i32_1 = arith.constant 0 : i32
    return %arg0, %c0_i32, %arg1, %c0_i32_0 : i32, i32, i32, i32
  }
}

</mosaic_0001>

<bundles_post_ra>
// kernel: basic_block_forward.4
= control target key start
LH: loop header
LB: loop body
LE: loop exit
PB: predicated region body
PF: predicated region fallthrough
CT: control target
= control target key end

     0   :  { %s1949_s9 = smov 0   ;;  %s2394_s0 = inlined_call_operand.vmem [shape: bf16[8,110,8], index: 0, kind: input, shape index: {}]   ;;  %s2395_s1 = inlined_call_operand.vmem [shape: bf16[9,8,128], index: 1, kind: input, shape index: {}]   ;;  %s2396_s2 = inlined_call_operand.vmem [shape: bf16[8,80,128], index: 2, kind: output, shape index: {}]  }
   0x1 LB: > { %s1501_s10 = sadd.s32 4294967295, %s1930_s9   ;;  %p1505_p0 = scmp.ge.s32.totalorder %s1930_s9, 1  ;;  %s1930_s9 = sphi %s1949_s9, %s12_s9  }
   0x2   : > { %p112_p1 = scmp.lt.s32.totalorder %s1930_s9, 9 }
   0x4   : > { %p113_p2 = pnand %p1505_p0, %p112_p1 }
   0x5   : > { %p134_p3 = scmp.lt.s32.totalorder (!%p113_p2), %s1501_s10, 7 }
   0x6   : > { %116 = sbr.rel (%p113_p2) target bundleno = 403 (0x193), region = 28 }
   0xb   : > { %v1508_v0 = vld [vmem:[%s2395_s1 + $0x4] sm:$0xf]  ;;  %vm248_vm0 = vcmask 1043456   ;;  %v1932_v1 = vmov 0.0   ;;  %s2398_s10 = smov (!%p134_p3, %s1501_s10), 7  ;;  %vm1933_vm1 = vmmov 0  }
   0xc   : > { %1689 = vmatprep.subr.bf16.mxu0 %v1932_v1  ;;  %1887 = vmatprep.subr.bf16.mxu1 %v1932_v1  ;;  %v250_v2 = vsel %vm248_vm0, %v1508_v0, 0  ;;  %s1889_s13 = smul.u32 56, %s2398_s10  ;;  %vm187_vm2 = vsmask.f32 7424  ;;  %v1525_v13 = vld [vmem:[%s2395_s1 + $0x8] sm:$0xf] }
   0xd   : > { %1690 = vmatpush3.bf16.msra.mxu0 %v250_v2  ;;  %1888 = vmatpush3.bf16.msra.mxu1 %v250_v2  ;;  %vm232_vm3 = vcmask 64512   ;;  %v155_v22 = vld [vmem:[%s2395_s1] sm:$0xf]  ;;  %v445_v26 = vsel %vm248_vm0, %v1525_v13, 0  ;;  %vm417_vm4 = vcmask 1046528   ;;  %vm850_vm6 = vcmask 1045504  }
   0xe   : > { %1691 = vmatprep.mubr.msk.bf16.mxu0 %vm1933_vm1, %v1932_v1  ;;  %1703 = vmatprep.mubr.msk.bf16.mxu1 %vm1933_vm1, %v1932_v1  ;;  %s1975_s16 = scalar_lea.vmem %s2394_s0, %s1889_s13  ;;  %v336_v31 = vsel %vm248_vm0, %v155_v22, 0  ;;  %v1532_v48 = vld [vmem:[%s2395_s1 + $0xc] sm:$0xf]  ;;  %v1544_v53 = vld [vmem:[%s2395_s1 + $0x10] sm:$0xf]  ;;  %vm1283_vm8 = vcmask 1044480  }
   0xf   : > { %1733 = vmatprep.subr.bf16.mxu0 %v1932_v1  ;;  %1711 = vmatprep.subr.bf16.mxu1 %v1932_v1  ;;  %v145_v3 = vld [vmem:[%s1975_s16] sm:$0xf]  ;;  %v1979_v4 = vld [vmem:[%s1975_s16 + $0x4] sm:$0xf]  ;;  %v1985_v6 = vld [vmem:[%s1975_s16 + $0x8] sm:$0xff]   ;;  %v598_v50 = vsel %vm248_vm0, %v1532_v48, 0 }
  0x10   : > { %v1982_v5 = vcombine.low %v145_v3, %v1979_v4  ;;  %v196_v9 = vshll.u32 %v1985_v6, 16  ;;  %v1991_v10 = vld [vmem:[%s1975_s16 + $0x18] sm:$0xff]   ;;  %v1994_v11 = vld [vmem:[%s1975_s16 + $0x20] sm:$0xff]   ;;  %v1997_v12 = vld [vmem:[%s1975_s16 + $0x10] sm:$0xff]   ;;  %v200_v23 = vshrl.u32 %v1985_v6, 16  ;;  %v419_v52 = vrot.slane %v1985_v6, 1 }
  0x11   : > { %v212_v16 = vshll.u32 %v1991_v10, 16  ;;  %v216_v17 = vshrl.u32 %v1991_v10, 16  ;;  %v220_v18 = vshll.u32 %v1994_v11, 16  ;;  %v2006_v19 = vld [vmem:[%s1975_s16 + $0x28] ss:$0 sps:$4 sm:$0x11]  }
  0x12   : > { %v189_v7 = vshrl.u32 %v1982_v5, 16  ;;  %v191_v8 = vshll.u32 %v1982_v5, 16  ;;  %v198_v15 = vrot.slane %v196_v9, 1  ;;  %v204_v24 = vshll.u32 %v1997_v12, 16  ;;  %v2030_v39 = vld [vmem:[%s1975_s16 + $0x24] sm:$0xff]   ;;  %v2101_v2 = vld [vmem:[%s1975_s16 + $0xc] sm:$0xff]  }
  0x13   : > { %v214_v21 = vrot.slane %v212_v16, 1  ;;  %v222_v25 = vrot.slane %v220_v18, 1  ;;  %v224_v29 = vshrl.u32 %v1994_v11, 16  ;;  %v228_v30 = vshll.u32 %v2006_v19, 16  ;;  %v411_v43 = vld [vmem:[%s1975_s16] sm:$0xe] }
  0x14   : > { %v193_v14 = vrot.slane %v191_v8, 1  ;;  %v202_v33 = vor.u32 %v200_v23, %v198_v15  ;;  %v206_v34 = vrot.slane %v204_v24, 1  ;;  %v208_v38 = vshrl.u32 %v1997_v12, 16  ;;  %v1913_v40 = vld [vmem:[%s1975_s16 + $0x2c] ss:$0 sps:$4 sm:$0x11]  }
  0x15   : > { %v218_v28 = vor.u32 %v216_v17, %v214_v21  ;;  %v226_v35 = vor.u32 %v224_v29, %v222_v25  ;;  %v230_v36 = vrot.slane %v228_v30, 1  ;;  %v578_v44 = vrot.slane %v2030_v39, 1  ;;  %v530_v61 = vld [vmem:[%s1975_s16 + $0x4] sm:$0xe]  ;;  %v2096_v62 = vld [vmem:[%s1975_s16 + $0x8] sm:$0xf] }
  0x16   : > { %v194_v20 = vor.u32 %v193_v14, %v189_v7  ;;  %v207_v37 = vsel %vm187_vm2, %v202_v33, %v206_v34  ;;  %v210_v42 = vor.u32 %v208_v38, %v206_v34  ;;  %v580_v45 = vrot.slane %v1913_v40, 1  ;;  %v2120_v18 = vld [vmem:[%s1975_s16 + $0x14] sm:$0xff]   ;;  %v2140_v30 = vld [vmem:[%s1975_s16 + $0x1c] sm:$0xff]   ;;  %v2164_v48 = vld [vmem:[%s1975_s16 + $0x2c] ss:$0 sps:$4 sm:$0x33]  }
  0x17   : > { %v223_v32 = vsel %vm187_vm2, %v218_v28, %v222_v25  ;;  %v231_v41 = vsel %vm187_vm2, %v226_v35, %v230_v36  ;;  %v1526_v49 = vcombine.low %v411_v43, %v1979_v4  ;;  %v759_v55 = vsel %vm248_vm0, %v1544_v53, 0  ;;  %v1558_v24 = vld [vmem:[%s2395_s1 + $0x18] sm:$0xf]  ;;  %v844_v53 = vld [vmem:[%s1975_s16 + $0x4] sm:$0xc]  ;;  %s1890_s5 = smul.u32 40, %s2398_s10 }
  0x18   : > { %v199_v27 = vsel %vm187_vm2, %v194_v20, %v198_v15  ;;  %1704 = vmatmul.mubr.msk.bf16.vlgmr.msra.gmra.mxu1 %vm232_vm3, %v223_v32  ;;  %v2045_v46 = vsel %vm417_vm4, %v578_v44, %v580_v45  ;;  %v215_v47 = vsel %vm187_vm2, %v210_v42, %v214_v21  ;;  %v421_v56 = vrot.slane %v1997_v12, 1 }
  0x19   : > { %1692 = vmatmul.mubr.msk.bf16.vlgmr.msra.gmra.mxu0 %vm232_vm3, %v199_v27  ;;  %1712 = vmatpush3.bf16.msra.mxu1 %v336_v31  ;;  %v418_v51 = vrot.slane %v1526_v49, 1  ;;  %v423_v58 = vrot.slane %v1991_v10, 1  ;;  %v425_v60 = vrot.slane %v1994_v11, 1  ;;  %v1533_v0 = vcombine.low %v530_v61, %v2096_v62  ;;  %s2365_s8 = scalar_lea.vmem %s2396_s2, %s1890_s5 }
  0x1a   : > { %1734 = vmatpush3.bf16.msra.mxu0 %v445_v26  ;;  %1695 = vmatprep.mubr.msk.bf16.mxu0 %vm1933_vm1, %v1932_v1  ;;  %v422_v57 = vsel %vm417_vm4, %v419_v52, %v421_v56  ;;  %v427_v3 = vrot.slane %v2006_v19, 1  ;;  %v702_v7 = vshll.u32 %v2101_v2, 16  ;;  %v572_v9 = vrot.slane %v2101_v2, 1 }
  0x1b   : > { %1777 = vmatprep.subr.bf16.mxu0 %v1932_v1  ;;  %1707 = vmatprep.mubr.msk.bf16.mxu1 %vm1933_vm1, %v1932_v1  ;;  %v420_v54 = vsel %vm417_vm4, %v418_v51, %v419_v52  ;;  %v424_v59 = vsel %vm417_vm4, %v421_v56, %v423_v58  ;;  %v426_v63 = vsel %vm417_vm4, %v423_v58, %v425_v60  ;;  %v691_v4 = vshrl.u32 %v1533_v0, 16  ;;  %v963_v58 = vld [vmem:[%s1975_s16 + $0x8] sm:$0xc] }
  0x1c   : > { %1755 = vmatprep.subr.bf16.mxu1 %v1932_v1  ;;  %v571_v8 = vrot.slane %v1533_v0, 1  ;;  %v704_v16 = vrot.slane %v702_v7, 2  ;;  %v708_v21 = vshrl.u32 %v2120_v18, 16  ;;  %v711_v22 = vshll.u32 %v2120_v18, 16  ;;  %v1577_v7 = vld [vmem:[%s2395_s1 + $0x20] sm:$0xf] }
  0x1d   : > { %v693_v13 = vrot.slane %v691_v4, 1  ;;  %vm689_vm5 = vsmask.f32 6400  ;;  %v574_v23 = vrot.slane %v2120_v18, 1  ;;  %v1031_v28 = vsel %vm248_vm0, %v1558_v24, 0 }
  0x1e   : > { %v573_v17 = vsel %vm417_vm4, %v571_v8, %v572_v9  ;;  %v710_v26 = vrot.slane %v708_v21, 1  ;;  %v713_v27 = vrot.slane %v711_v22, 2  ;;  %v717_v32 = vshrl.u32 %v2140_v30, 16 }
  0x1f   : > { %v575_v29 = vsel %vm417_vm4, %v572_v9, %v574_v23  ;;  %v720_v33 = vshll.u32 %v2140_v30, 16  ;;  %v576_v34 = vrot.slane %v2140_v30, 1  ;;  %v729_v42 = vshll.u32 %v2030_v39, 16  ;;  %v2215_v9 = vld [vmem:[%s1975_s16 + $0x18] sm:$0xff]  }
  0x20   : > { %1708 = vmatmul.mubr.msk.bf16.gmra.mxu1 %vm232_vm3, %v231_v41  ;;  %v714_v31 = vor.u32 %v713_v27, %v710_v26  ;;  %v719_v36 = vrot.slane %v717_v32, 1  ;;  %v726_v41 = vshrl.u32 %v2030_v39, 16  ;;  %v735_v51 = vshrl.u32 %v2164_v48, 16 }
  0x21   : > { %1696 = vmatmul.mubr.msk.bf16.gmra.mxu0 %vm232_vm3, %v207_v37  ;;  %1713 = vmatprep.mubr.msk.bf16.mxu1 %vm1933_vm1, %v1932_v1  ;;  %v722_v37 = vrot.slane %v720_v33, 2  ;;  %v577_v38 = vsel %vm417_vm4, %v574_v23, %v576_v34  ;;  %v579_v49 = vsel %vm417_vm4, %v576_v34, %v578_v44  ;;  %v738_v52 = vshll.u32 %v2164_v48, 16 }
  0x22   : > { %1699 = vmatprep.mubr.msk.bf16.mxu0 %vm1933_vm1, %v1932_v1  ;;  %v728_v45 = vrot.slane %v726_v41, 1  ;;  %v1552_v56 = vcombine.low %v844_v53, %v2096_v62  ;;  %v852_v61 = vrot.slane %v2101_v2, 2  ;;  %v860_v23 = vrot.slane %v2164_v48, 2 }
  0x23   : > { %v723_v40 = vor.u32 %v722_v37, %v719_v36  ;;  %vm1122_vm7 = vsmask.f32 5376 }
  0x25   : > { %v724_v43 = vsel %vm689_vm5, %v714_v31, %v723_v40 }
  0x28   : > { %1714 = vmatmul.mubr.msk.bf16.vlgmr.msra.gmra.mxu1 %vm232_vm3, %v1982_v5  ;;  %v694_v5 = vshll.u32 %v1533_v0, 16 }
  0x29   : > { %1700 = vmatmul.mubr.msk.bf16.gmra.mxu0 %vm232_vm3, %v215_v47  ;;  %1756 = vmatpush3.bf16.msra.mxu1 %v598_v50  ;;  %v731_v47 = vrot.slane %v729_v42, 2 }
  0x2a   : > { %1735 = vmatprep.mubr.msk.bf16.mxu0 %vm1933_vm1, %v1932_v1  ;;  %1717 = vmatprep.mubr.msk.bf16.mxu1 %vm1933_vm1, %v1932_v1  ;;  %v696_v14 = vrot.slane %v694_v5, 2 }
  0x2b   : > { %1799 = vmatprep.subr.bf16.mxu1 %v1932_v1  ;;  %v732_v50 = vor.u32 %v731_v47, %v728_v45 }
  0x2c   : > { %v697_v19 = vor.u32 %v696_v14, %v693_v13  ;;  %v1007_v13 = vrot.slane %v2215_v9, 2  ;;  %v856_v14 = vrot.slane %v2140_v30, 2 }
  0x2d   : > { %v733_v44 = vsel %vm689_vm5, %v723_v40, %v732_v50  ;;  %v1144_v40 = vshll.u32 %v2215_v9, 16 }
  0x2f   : > { %v1146_v47 = vrot.slane %v1144_v40, 3 }
  0x30   : > { %1718 = vmatmul.mubr.msk.bf16.gmra.mxu1 %vm232_vm3, %v1985_v6  ;;  %v699_v6 = vshrl.u32 %v2101_v2, 16 }
  0x31   : > { %1736 = vmatmul.mubr.msk.bf16.vlgmr.msra.gmra.mxu0 %vm232_vm3, %v420_v54  ;;  %1721 = vmatprep.mubr.msk.bf16.mxu1 %vm1933_vm1, %v1932_v1  ;;  %v737_v54 = vrot.slane %v735_v51, 1 }
  0x32   : > { %1778 = vmatpush3.bf16.msra.mxu0 %v759_v55  ;;  %1739 = vmatprep.mubr.msk.bf16.mxu0 %vm1933_vm1, %v1932_v1  ;;  %v701_v15 = vrot.slane %v699_v6, 1  ;;  %v740_v55 = vrot.slane %v738_v52, 2  ;;  %v854_v6 = vrot.slane %v2120_v18, 2 }
  0x33   : > { %1821 = vmatprep.subr.bf16.mxu0 %v1932_v1 }
  0x34   : > { %v705_v20 = vor.u32 %v704_v16, %v701_v15  ;;  %v2229_v16 = vld [vmem:[%s1975_s16 + $0x20] sm:$0xff]  }
  0x35   : > { %v1009_v18 = vrot.slane %v2229_v16, 2  ;;  %v1150_v51 = vshrl.u32 %v2229_v16, 16  ;;  %v1153_v52 = vshll.u32 %v2229_v16, 16 }
  0x36   : > { %v706_v25 = vsel %vm689_vm5, %v697_v19, %v705_v20  ;;  %v715_v35 = vsel %vm689_vm5, %v705_v20, %v714_v31  ;;  %v2242_v20 = vld [vmem:[%s1975_s16 + $0x28] sm:$0xff]  }
  0x37   : > { %v1010_v19 = vsel %vm850_vm6, %v1007_v13, %v1009_v18  ;;  %v1011_v22 = vrot.slane %v2242_v20, 2 }
  0x38   : > { %1722 = vmatmul.mubr.msk.bf16.gmra.mxu1 %vm232_vm3, %v1997_v12  ;;  %v1551_v12 = vld [vmem:[%s2395_s1 + $0x14] sm:$0xf] }
  0x39   : > { %1740 = vmatmul.mubr.msk.bf16.gmra.mxu0 %vm232_vm3, %v422_v57  ;;  %1725 = vmatprep.mubr.msk.bf16.mxu1 %vm1933_vm1, %v1932_v1  ;;  %v741_v57 = vor.u32 %v740_v55, %v737_v54  ;;  %v1012_v27 = vsel %vm850_vm6, %v1009_v18, %v1011_v22  ;;  %v1152_v54 = vrot.slane %v1150_v51, 2  ;;  %v1155_v55 = vrot.slane %v1153_v52, 3 }
  0x3a   : > { %1743 = vmatprep.mubr.msk.bf16.mxu0 %vm1933_vm1, %v1932_v1 }
  0x3b   : > { %v742_v62 = vsel %vm689_vm5, %v732_v50, %v741_v57  ;;  %v1156_v57 = vor.u32 %v1155_v55, %v1152_v54 }
  0x40   : > { %1726 = vmatmul.mubr.msk.bf16.gmra.mxu1 %vm232_vm3, %v1991_v10  ;;  %v428_v10 = vsel %vm417_vm4, %v425_v60, %v427_v3  ;;  %v851_v60 = vrot.slane %v1552_v56, 2  ;;  %v1287_v56 = vrot.slane %v2215_v9, 3 }
  0x41   : > { %1744 = vmatmul.mubr.msk.bf16.gmra.mxu0 %vm232_vm3, %v424_v59  ;;  %1729 = vmatprep.mubr.msk.bf16.mxu1 %vm1933_vm1, %v1932_v1  ;;  %v2187_v59 = vld [vmem:[%s1975_s16 + $0xc] sm:$0xf] }
  0x42   : > { %1747 = vmatprep.mubr.msk.bf16.mxu0 %vm1933_vm1, %v1932_v1  ;;  %v1559_v0 = vcombine.low %v963_v58, %v2187_v59  ;;  %v853_v3 = vsel %vm850_vm6, %v851_v60, %v852_v61  ;;  %v1159_v58 = vshrl.u32 %v2242_v20, 16 }
  0x44   : > { %v1004_v2 = vrot.slane %v1559_v0, 2  ;;  %v1127_v24 = vshll.u32 %v1559_v0, 16 }
  0x46   : > { %v1129_v31 = vrot.slane %v1127_v24, 3 }
  0x48   : > { %1730 = vmatmul.mubr.msk.bf16.gmra.mxu1 %vm232_vm3, %v1994_v11  ;;  %v878_v11 = vsel %vm248_vm0, %v1551_v12, 0  ;;  %v855_v12 = vsel %vm850_vm6, %v852_v61, %v854_v6 }
  0x49   : > { %1748 = vmatmul.mubr.msk.bf16.gmra.mxu0 %vm232_vm3, %v426_v63  ;;  %1757 = vmatprep.mubr.msk.bf16.mxu1 %vm1933_vm1, %v1932_v1  ;;  %v1570_v63 = vld [vmem:[%s2395_s1 + $0x1c] sm:$0xf] }
  0x4a   : > { %1751 = vmatprep.mubr.msk.bf16.mxu0 %vm1933_vm1, %v1932_v1  ;;  %v1192_v4 = vsel %vm248_vm0, %v1570_v63, 0 }
  0x50   : > { %1758 = vmatmul.mubr.msk.bf16.vlgmr.msra.gmra.mxu1 %vm232_vm3, %v573_v17  ;;  %v857_v17 = vsel %vm850_vm6, %v854_v6, %v856_v14 }
  0x51   : > { %1752 = vmatmul.mubr.msk.bf16.gmra.mxu0 %vm232_vm3, %v428_v10  ;;  %1800 = vmatpush3.bf16.msra.mxu1 %v878_v11  ;;  %v1311_v10 = vsel %vm248_vm0, %v1577_v7, 0  ;;  %v858_v11 = vrot.slane %v2030_v39, 2  ;;  %v1124_v39 = vshrl.u32 %v1559_v0, 16  ;;  %v1923_v0 = vld [vmem:[%s1975_s16 + $0x30] ss:$0 sps:$4 sm:$0x77]  }
  0x52   : > { %1779 = vmatprep.mubr.msk.bf16.mxu0 %vm1933_vm1, %v1932_v1  ;;  %1761 = vmatprep.mubr.msk.bf16.mxu1 %vm1933_vm1, %v1932_v1 }
  0x53   : > { %1843 = vmatprep.subr.bf16.mxu1 %v1932_v1  ;;  %v859_v21 = vsel %vm850_vm6, %v856_v14, %v858_v11  ;;  %v1126_v30 = vrot.slane %v1124_v39, 2  ;;  %v1293_v14 = vrot.slane %v1923_v0, 3 }
  0x55   : > { %v1130_v36 = vor.u32 %v1129_v31, %v1126_v30 }
  0x58   : > { %1762 = vmatmul.mubr.msk.bf16.gmra.mxu1 %vm232_vm3, %v575_v29  ;;  %v861_v29 = vsel %vm850_vm6, %v858_v11, %v860_v23 }
  0x59   : > { %1780 = vmatmul.mubr.msk.bf16.vlgmr.msra.gmra.mxu0 %vm232_vm3, %v706_v25  ;;  %1765 = vmatprep.mubr.msk.bf16.mxu1 %vm1933_vm1, %v1932_v1 }
  0x5a   : > { %1822 = vmatpush3.bf16.msra.mxu0 %v1031_v28  ;;  %1783 = vmatprep.mubr.msk.bf16.mxu0 %vm1933_vm1, %v1932_v1  ;;  %v1921_v28 = vld [vmem:[%s1975_s16 + $0x30] ss:$0 sps:$4 sm:$0x33]  }
  0x5b   : > { %1865 = vmatprep.subr.bf16.mxu0 %v1932_v1  ;;  %v1013_v34 = vrot.slane %v1921_v28, 2 }
  0x5d   : > { %v1014_v41 = vsel %vm850_vm6, %v1011_v22, %v1013_v34 }
  0x60   : > { %1766 = vmatmul.mubr.msk.bf16.gmra.mxu1 %vm232_vm3, %v577_v38  ;;  %v1141_v38 = vshrl.u32 %v2215_v9, 16  ;;  %v1291_v9 = vrot.slane %v2242_v20, 3 }
  0x61   : > { %1784 = vmatmul.mubr.msk.bf16.gmra.mxu0 %vm232_vm3, %v715_v35  ;;  %1769 = vmatprep.mubr.msk.bf16.mxu1 %vm1933_vm1, %v1932_v1  ;;  %v1277_v35 = vld [vmem:[%s1975_s16 + $0x8] sm:$0x8] }
  0x62   : > { %1787 = vmatprep.mubr.msk.bf16.mxu0 %vm1933_vm1, %v1932_v1  ;;  %v1578_v42 = vcombine.low %v1277_v35, %v2187_v59  ;;  %v1143_v45 = vrot.slane %v1141_v38, 2  ;;  %v1162_v59 = vshll.u32 %v2242_v20, 16 }
  0x64   : > { %v1284_v48 = vrot.slane %v1578_v42, 3  ;;  %v1147_v50 = vor.u32 %v1146_v47, %v1143_v45  ;;  %v1164_v63 = vrot.slane %v1162_v59, 3 }
  0x66   : > { %v1157_v61 = vsel %vm1122_vm7, %v1147_v50, %v1156_v57 }
  0x68   : > { %1770 = vmatmul.mubr.msk.bf16.gmra.mxu1 %vm232_vm3, %v579_v49 }
  0x69   : > { %1788 = vmatmul.mubr.msk.bf16.gmra.mxu0 %vm232_vm3, %v724_v43  ;;  %1773 = vmatprep.mubr.msk.bf16.mxu1 %vm1933_vm1, %v1932_v1 }
  0x6a   : > { %1791 = vmatprep.mubr.msk.bf16.mxu0 %vm1933_vm1, %v1932_v1 }
  0x70   : > { %1774 = vmatmul.mubr.msk.bf16.gmra.mxu1 %vm232_vm3, %v2045_v46  ;;  %v2198_v46 = vld [vmem:[%s1975_s16 + $0x10] sm:$0xff]  }
  0x71   : > { %1792 = vmatmul.mubr.msk.bf16.gmra.mxu0 %vm232_vm3, %v733_v44  ;;  %1801 = vmatprep.mubr.msk.bf16.mxu1 %vm1933_vm1, %v1932_v1  ;;  %v1005_v5 = vrot.slane %v2198_v46, 2  ;;  %v1132_v25 = vshrl.u32 %v2198_v46, 16  ;;  %v1135_v26 = vshll.u32 %v2198_v46, 16  ;;  %v1285_v49 = vrot.slane %v2198_v46, 3 }
  0x72   : > { %1795 = vmatprep.mubr.msk.bf16.mxu0 %vm1933_vm1, %v1932_v1  ;;  %v1289_v46 = vrot.slane %v2229_v16, 3 }
  0x73   : > { %v1006_v8 = vsel %vm850_vm6, %v1004_v2, %v1005_v5  ;;  %v1008_v15 = vsel %vm850_vm6, %v1005_v5, %v1007_v13  ;;  %v1134_v32 = vrot.slane %v1132_v25, 2  ;;  %v1137_v33 = vrot.slane %v1135_v26, 3 }
  0x74   : > { %v1286_v53 = vsel %vm1283_vm8, %v1284_v48, %v1285_v49  ;;  %v1288_v60 = vsel %vm1283_vm8, %v1285_v49, %v1287_v56  ;;  %v1171_v2 = vshll.u32 %v1923_v0, 16  ;;  %v1290_v5 = vsel %vm1283_vm8, %v1287_v56, %v1289_v46 }
  0x75   : > { %v1138_v37 = vor.u32 %v1137_v33, %v1134_v32 }
  0x77   : > { %v1139_v43 = vsel %vm1122_vm7, %v1130_v36, %v1138_v37  ;;  %v1148_v44 = vsel %vm1122_vm7, %v1138_v37, %v1147_v50 }
  0x78   : > { %1802 = vmatmul.mubr.msk.bf16.vlgmr.msra.gmra.mxu1 %vm232_vm3, %v853_v3 }
  0x79   : > { %1796 = vmatmul.mubr.msk.bf16.gmra.mxu0 %vm232_vm3, %v742_v62  ;;  %1844 = vmatpush3.bf16.msra.mxu1 %v1192_v4  ;;  %v1161_v62 = vrot.slane %v1159_v58, 2  ;;  %v1168_v4 = vshrl.u32 %v1923_v0, 16 }
  0x7a   : > { %1823 = vmatprep.mubr.msk.bf16.mxu0 %vm1933_vm1, %v1932_v1  ;;  %1805 = vmatprep.mubr.msk.bf16.mxu1 %vm1933_vm1, %v1932_v1 }
  0x7b   : > { %v1165_v3 = vor.u32 %v1164_v63, %v1161_v62  ;;  %v1170_v7 = vrot.slane %v1168_v4, 2 }
  0x7d   : > { %v1166_v6 = vsel %vm1122_vm7, %v1156_v57, %v1165_v3 }
  0x80   : > { %1806 = vmatmul.mubr.msk.bf16.gmra.mxu1 %vm232_vm3, %v855_v12  ;;  %v1292_v12 = vsel %vm1283_vm8, %v1289_v46, %v1291_v9 }
  0x81   : > { %1824 = vmatmul.mubr.msk.bf16.vlgmr.msra.gmra.mxu0 %vm232_vm3, %v1006_v8  ;;  %1809 = vmatprep.mubr.msk.bf16.mxu1 %vm1933_vm1, %v1932_v1  ;;  %v1173_v8 = vrot.slane %v1171_v2, 3 }
  0x82   : > { %1866 = vmatpush3.bf16.msra.mxu0 %v1311_v10  ;;  %1827 = vmatprep.mubr.msk.bf16.mxu0 %vm1933_vm1, %v1932_v1 }
  0x83   : > { %v1174_v10 = vor.u32 %v1173_v8, %v1170_v7 }
  0x85   : > { %v1175_v13 = vsel %vm1122_vm7, %v1165_v3, %v1174_v10 }
  0x88   : > { %1810 = vmatmul.mubr.msk.bf16.gmra.mxu1 %vm232_vm3, %v857_v17 }
  0x89   : > { %1828 = vmatmul.mubr.msk.bf16.gmra.mxu0 %vm232_vm3, %v1008_v15  ;;  %1813 = vmatprep.mubr.msk.bf16.mxu1 %vm1933_vm1, %v1932_v1  ;;  %v1294_v15 = vsel %vm1283_vm8, %v1291_v9, %v1293_v14 }
  0x8a   : > { %1831 = vmatprep.mubr.msk.bf16.mxu0 %vm1933_vm1, %v1932_v1 }
  0x90   : > { %1814 = vmatmul.mubr.msk.bf16.gmra.mxu1 %vm232_vm3, %v859_v21 }
  0x91   : > { %1832 = vmatmul.mubr.msk.bf16.gmra.mxu0 %vm232_vm3, %v1010_v19  ;;  %1817 = vmatprep.mubr.msk.bf16.mxu1 %vm1933_vm1, %v1932_v1 }
  0x92   : > { %1835 = vmatprep.mubr.msk.bf16.mxu0 %vm1933_vm1, %v1932_v1 }
  0x98   : > { %1818 = vmatmul.mubr.msk.bf16.gmra.mxu1 %vm232_vm3, %v861_v29 }
  0x99   : > { %1836 = vmatmul.mubr.msk.bf16.gmra.mxu0 %vm232_vm3, %v1012_v27  ;;  %1845 = vmatprep.mubr.msk.bf16.mxu1 %vm1933_vm1, %v1932_v1 }
  0x9a   : > { %1839 = vmatprep.mubr.msk.bf16.mxu0 %vm1933_vm1, %v1932_v1 }
  0xa0   : > { %1846 = vmatmul.mubr.msk.bf16.vlgmr.msra.gmra.mxu1 %vm232_vm3, %v1139_v43 }
  0xa1   : > { %1840 = vmatmul.mubr.msk.bf16.gmra.mxu0 %vm232_vm3, %v1014_v41  ;;  %1849 = vmatprep.mubr.msk.bf16.mxu1 %vm1933_vm1, %v1932_v1 }
  0xa2   : > { %1867 = vmatprep.mubr.msk.bf16.mxu0 %vm1933_vm1, %v1932_v1 }
  0xa8   : > { %1850 = vmatmul.mubr.msk.bf16.gmra.mxu1 %vm232_vm3, %v1148_v44 }
  0xa9   : > { %1868 = vmatmul.mubr.msk.bf16.vlgmr.msra.gmra.mxu0 %vm232_vm3, %v1286_v53  ;;  %1853 = vmatprep.mubr.msk.bf16.mxu1 %vm1933_vm1, %v1932_v1 }
  0xaa   : > { %1871 = vmatprep.mubr.msk.bf16.mxu0 %vm1933_vm1, %v1932_v1 }
  0xb0   : > { %1854 = vmatmul.mubr.msk.bf16.gmra.mxu1 %vm232_vm3, %v1157_v61 }
  0xb1   : > { %1872 = vmatmul.mubr.msk.bf16.gmra.mxu0 %vm232_vm3, %v1288_v60  ;;  %1857 = vmatprep.mubr.msk.bf16.mxu1 %vm1933_vm1, %v1932_v1 }
  0xb2   : > { %1875 = vmatprep.mubr.msk.bf16.mxu0 %vm1933_vm1, %v1932_v1 }
  0xb8   : > { %1858 = vmatmul.mubr.msk.bf16.gmra.mxu1 %vm232_vm3, %v1166_v6 }
  0xb9   : > { %1876 = vmatmul.mubr.msk.bf16.gmra.mxu0 %vm232_vm3, %v1290_v5  ;;  %1861 = vmatprep.mubr.msk.bf16.mxu1 %vm1933_vm1, %v1932_v1 }
  0xba   : > { %1879 = vmatprep.mubr.msk.bf16.mxu0 %vm1933_vm1, %v1932_v1 }
  0xc0   : > { %1862 = vmatmul.mubr.msk.bf16.gmra.mxu1 %vm232_vm3, %v1175_v13 }
  0xc1   : > { %1880 = vmatmul.mubr.msk.bf16.gmra.mxu0 %vm232_vm3, %v1292_v12 }
  0xc2   : > { %1883 = vmatprep.mubr.msk.bf16.mxu0 %vm1933_vm1, %v1932_v1 }
  0xc9   : > { %1884 = vmatmul.mubr.msk.bf16.gmra.mxu0 %vm232_vm3, %v1294_v15 }
  0xd8   : > { %v310_v17 = vpop.f32.mrf.mxu1 }
  0xd9   : > { %v286_v16 = vpop.f32.mrf.mxu0 }
  0xda   : > { %v1705_v11 = vpop.f32.mrf.mxu1 }
  0xdb   : > { %v1693_v18 = vpop.f32.mrf.mxu0 }
  0xdc   : > { %v313_v20 = vpop.f32.mrf.mxu1 }
  0xdd   : > { %v289_v19 = vpop.f32.mrf.mxu0 }
  0xde   : > { %v1706_v22 = vpop.f32.mrf.mxu1 }
  0xdf   : > { %v1694_v21 = vpop.f32.mrf.mxu0 }
  0xe0   : > { %v318_v39 = vpop.f32.mrf.mxu1 }
  0xe1   : > { %v294_v23 = vpop.f32.mrf.mxu0 }
  0xe2   : > { %v1709_v25 = vpop.f32.mrf.mxu1 }
  0xe3   : > { %v1697_v24 = vpop.f32.mrf.mxu0 }
  0xe4   : > { %v321_v26 = vpop.f32.mrf.mxu1 }
  0xe5   : > { %v297_v1 = vpop.f32.mrf.mxu0 }
  0xe6   : > { %v1710_v28 = vpop.f32.mrf.mxu1 }
  0xe7   : > { %v1698_v27 = vpop.f32.mrf.mxu0 }
  0xe8   : > { %v372_v30 = vpop.f32.mrf.mxu1 }
  0xe9   : > { %v302_v29 = vpop.f32.mrf.mxu0  ;;  %v373_v32 = vadd.f32 %v372_v30, %v286_v16 }
  0xea   : > { %v1715_v33 = vpop.f32.mrf.mxu1 }
  0xeb   : > { %v1701_v31 = vpop.f32.mrf.mxu0 }
  0xec   : > { %v375_v35 = vpop.f32.mrf.mxu1 }
  0xed   : > { %v305_v34 = vpop.f32.mrf.mxu0  ;;  %v376_v37 = vadd.f32 %v375_v35, %v289_v19 }
  0xee   : > { %v1716_v38 = vpop.f32.mrf.mxu1 }
  0xef   : > { %v1702_v36 = vpop.f32.mrf.mxu0 }
  0xf0   : > { %v380_v42 = vpop.f32.mrf.mxu1 }
  0xf1   : > { %v481_v40 = vpop.f32.mrf.mxu0  ;;  %v381_v45 = vadd.f32 %v380_v42, %v294_v23 }
  0xf2   : > { %v520_v41 = vadd.f32 %v481_v40, %v373_v32  ;;  %v1719_v47 = vpop.f32.mrf.mxu1 }
  0xf3   : > { %v1737_v43 = vpop.f32.mrf.mxu0 }
  0xf4   : > { %v383_v50 = vpop.f32.mrf.mxu1 }
  0xf5   : > { %v484_v48 = vpop.f32.mrf.mxu0  ;;  %v384_v52 = vadd.f32 %v383_v50, %v297_v1 }
  0xf6   : > { %v521_v49 = vadd.f32 %v484_v48, %v376_v37  ;;  %v1720_v53 = vpop.f32.mrf.mxu1 }
  0xf7   : > { %v1738_v51 = vpop.f32.mrf.mxu0 }
  0xf8   : > { %v388_v55 = vpop.f32.mrf.mxu1 }
  0xf9   : > { %v489_v44 = vpop.f32.mrf.mxu0  ;;  %v389_v57 = vadd.f32 %v388_v55, %v302_v29 }
  0xfa   : > { %v522_v54 = vadd.f32 %v489_v44, %v381_v45  ;;  %v1723_v58 = vpop.f32.mrf.mxu1 }
  0xfb   : > { %v1741_v56 = vpop.f32.mrf.mxu0 }
  0xfc   : > { %v391_v61 = vpop.f32.mrf.mxu1 }
  0xfd   : > { %v492_v59 = vpop.f32.mrf.mxu0  ;;  %v392_v63 = vadd.f32 %v391_v61, %v305_v34 }
  0xfe   : > { %v523_v60 = vadd.f32 %v492_v59, %v384_v52  ;;  %v1724_v0 = vpop.f32.mrf.mxu1 }
  0xff   : > { %v1742_v62 = vpop.f32.mrf.mxu0 }
 0x100   : > { %v396_v4 = vpop.f32.mrf.mxu1 }
 0x101   : > { %v497_v46 = vpop.f32.mrf.mxu0  ;;  %v397_v5 = vadd.f32 %v396_v4, %v310_v17 }
 0x102   : > { %v524_v3 = vadd.f32 %v497_v46, %v389_v57  ;;  %v1727_v6 = vpop.f32.mrf.mxu1 }
 0x103   : > { %v1745_v2 = vpop.f32.mrf.mxu0 }
 0x104   : > { %v399_v9 = vpop.f32.mrf.mxu1 }
 0x105   : > { %v500_v7 = vpop.f32.mrf.mxu0  ;;  %v400_v12 = vadd.f32 %v399_v9, %v313_v20 }
 0x106   : > { %v525_v8 = vadd.f32 %v500_v7, %v392_v63  ;;  %v1728_v13 = vpop.f32.mrf.mxu1 }
 0x107   : > { %v1746_v10 = vpop.f32.mrf.mxu0 }
 0x108   : > { %v404_v16 = vpop.f32.mrf.mxu1 }
 0x109   : > { %v505_v14 = vpop.f32.mrf.mxu0  ;;  %v405_v11 = vadd.f32 %v404_v16, %v318_v39 }
 0x10a   : > { %v526_v15 = vadd.f32 %v505_v14, %v397_v5  ;;  %v1731_v19 = vpop.f32.mrf.mxu1 }
 0x10b   : > { %v1749_v18 = vpop.f32.mrf.mxu0 }
 0x10c   : > { %v407_v23 = vpop.f32.mrf.mxu1 }
 0x10d   : > { %v508_v21 = vpop.f32.mrf.mxu0  ;;  %v408_v25 = vadd.f32 %v407_v23, %v321_v26 }
 0x10e   : > { %v527_v22 = vadd.f32 %v508_v21, %v400_v12  ;;  %v1732_v1 = vpop.f32.mrf.mxu1 }
 0x10f   : > { %v1750_v24 = vpop.f32.mrf.mxu0 }
 0x110   : > { %v634_v28 = vpop.f32.mrf.mxu1 }
 0x111   : > { %v513_v17 = vpop.f32.mrf.mxu0  ;;  %v673_v30 = vadd.f32 %v634_v28, %v520_v41 }
 0x112   : > { %v528_v27 = vadd.f32 %v513_v17, %v405_v11  ;;  %v1759_v31 = vpop.f32.mrf.mxu1 }
 0x113   : > { %v1753_v29 = vpop.f32.mrf.mxu0 }
 0x114   : > { %v637_v33 = vpop.f32.mrf.mxu1 }
 0x115   : > { %v516_v20 = vpop.f32.mrf.mxu0  ;;  %v674_v35 = vadd.f32 %v637_v33, %v521_v49 }
 0x116   : > { %v529_v32 = vadd.f32 %v516_v20, %v408_v25  ;;  %v1760_v36 = vpop.f32.mrf.mxu1 }
 0x117   : > { %v1754_v34 = vpop.f32.mrf.mxu0 }
 0x118   : > { %v642_v38 = vpop.f32.mrf.mxu1 }
 0x119   : > { %v795_v39 = vpop.f32.mrf.mxu0  ;;  %v675_v42 = vadd.f32 %v642_v38, %v522_v54 }
 0x11a   : > { %v2317_v37 = vadd.f32 %v795_v39, %v673_v30  ;;  %v1763_v26 = vpop.f32.mrf.mxu1 }
 0x11b   : > { %v1781_v40 = vpop.f32.mrf.mxu0 }
 0x11c   : > { %v645_v47 = vpop.f32.mrf.mxu1 }
 0x11d   : > { %v798_v43 = vpop.f32.mrf.mxu0  ;;  %v676_v41 = vadd.f32 %v645_v47, %v523_v60 }
 0x11e   : > { %v2319_v45 = vadd.f32 %v798_v43, %v674_v35  ;;  %v1764_v50 = vpop.f32.mrf.mxu1 }
 0x11f   : > { %v1782_v48 = vpop.f32.mrf.mxu0 }
 0x120   : > { %v650_v53 = vpop.f32.mrf.mxu1 }
 0x121   : > { %v803_v51 = vpop.f32.mrf.mxu0  ;;  %v677_v44 = vadd.f32 %v650_v53, %v524_v3 }
 0x122   : > { %v2321_v52 = vadd.f32 %v803_v51, %v675_v42  ;;  %v1767_v55 = vpop.f32.mrf.mxu1 }
 0x123   : > { %v1785_v49 = vpop.f32.mrf.mxu0 }
 0x124   : > { %v653_v58 = vpop.f32.mrf.mxu1 }
 0x125   : > { %v806_v56 = vpop.f32.mrf.mxu0  ;;  %v678_v59 = vadd.f32 %v653_v58, %v525_v8 }
 0x126   : > { %v2323_v57 = vadd.f32 %v806_v56, %v676_v41  ;;  %v1768_v61 = vpop.f32.mrf.mxu1 }
 0x127   : > { %v1786_v54 = vpop.f32.mrf.mxu0 }
 0x128   : > { %v658_v0 = vpop.f32.mrf.mxu1 }
 0x129   : > { %v811_v62 = vpop.f32.mrf.mxu0  ;;  %v679_v46 = vadd.f32 %v658_v0, %v526_v15 }
 0x12a   : > { %v2325_v63 = vadd.f32 %v811_v62, %v677_v44  ;;  %v1771_v4 = vpop.f32.mrf.mxu1 }
 0x12b   : > { %v1789_v60 = vpop.f32.mrf.mxu0 }
 0x12c   : > { %v661_v6 = vpop.f32.mrf.mxu1 }
 0x12d   : > { %v814_v2 = vpop.f32.mrf.mxu0  ;;  %v680_v7 = vadd.f32 %v661_v6, %v527_v22 }
 0x12e   : > { %v2327_v5 = vadd.f32 %v814_v2, %v678_v59  ;;  %v1772_v9 = vpop.f32.mrf.mxu1 }
 0x12f   : > { %v1790_v3 = vpop.f32.mrf.mxu0 }
 0x130   : > { %v666_v13 = vpop.f32.mrf.mxu1 }
 0x131   : > { %v819_v10 = vpop.f32.mrf.mxu0  ;;  %v681_v14 = vadd.f32 %v666_v13, %v528_v27 }
 0x132   : > { %v2329_v12 = vadd.f32 %v819_v10, %v679_v46  ;;  %v1775_v16 = vpop.f32.mrf.mxu1 }
 0x133   : > { %v1793_v8 = vpop.f32.mrf.mxu0 }
 0x134   : > { %v669_v19 = vpop.f32.mrf.mxu1 }
 0x135   : > { %v822_v18 = vpop.f32.mrf.mxu0  ;;  %v682_v21 = vadd.f32 %v669_v19, %v529_v32 }
 0x136   : > { %v2331_v11 = vadd.f32 %v822_v18, %v680_v7  ;;  %v1776_v23 = vpop.f32.mrf.mxu1 }
 0x137   : > { %v1794_v15 = vpop.f32.mrf.mxu0 }
 0x138   : > { %v914_v1 = vpop.f32.mrf.mxu1 }
 0x139   : > { %v827_v24 = vpop.f32.mrf.mxu0 }
 0x13a   : > { %v2333_v25 = vadd.f32 %v827_v24, %v681_v14  ;;  %v1803_v17 = vpop.f32.mrf.mxu1  ;;  %v953_v14 = vadd.f32 %v914_v1, %v2317_v37 }
 0x13b   : > { %v1797_v22 = vpop.f32.mrf.mxu0 }
 0x13c   : > { %v917_v30 = vpop.f32.mrf.mxu1 }
 0x13d   : > { %v830_v28 = vpop.f32.mrf.mxu0  ;;  %v954_v16 = vadd.f32 %v917_v30, %v2319_v45 }
 0x13e   : > { %v2335_v29 = vadd.f32 %v830_v28, %v682_v21  ;;  %v1804_v27 = vpop.f32.mrf.mxu1 }
 0x13f   : > { %v1798_v31 = vpop.f32.mrf.mxu0 }
 0x140   : > { %v922_v33 = vpop.f32.mrf.mxu1 }
 0x141   : > { %v1067_v20 = vpop.f32.mrf.mxu0  ;;  %v955_v45 = vadd.f32 %v922_v33, %v2321_v52 }
 0x142   : > { %v1807_v35 = vpop.f32.mrf.mxu1  ;;  %v1106_v15 = vadd.f32 %v1067_v20, %v953_v14 }
 0x143   : > { %v1825_v34 = vpop.f32.mrf.mxu0 }
 0x144   : > { %v925_v39 = vpop.f32.mrf.mxu1 }
 0x145   : > { %v1070_v36 = vpop.f32.mrf.mxu0  ;;  %v956_v1 = vadd.f32 %v925_v39, %v2323_v57 }
 0x146   : > { %v1808_v38 = vpop.f32.mrf.mxu1  ;;  %v1107_v21 = vadd.f32 %v1070_v36, %v954_v16 }
 0x147   : > { %v1826_v32 = vpop.f32.mrf.mxu0 }
 0x148   : > { %v2337_v42 = vpop.f32.mrf.mxu1 }
 0x149   : > { %v1075_v40 = vpop.f32.mrf.mxu0  ;;  %v957_v52 = vadd.f32 %v2337_v42, %v2325_v63 }
 0x14a   : > { %v1811_v43 = vpop.f32.mrf.mxu1  ;;  %v1108_v32 = vadd.f32 %v1075_v40, %v955_v45 }
 0x14b   : > { %v1829_v26 = vpop.f32.mrf.mxu0 }
 0x14c   : > { %v2339_v48 = vpop.f32.mrf.mxu1 }
 0x14d   : > { %v1078_v47 = vpop.f32.mrf.mxu0  ;;  %v958_v57 = vadd.f32 %v2339_v48, %v2327_v5 }
 0x14e   : > { %v1812_v50 = vpop.f32.mrf.mxu1  ;;  %v1109_v38 = vadd.f32 %v1078_v47, %v956_v1 }
 0x14f   : > { %v1830_v41 = vpop.f32.mrf.mxu0 }
 0x150   : > { %v2343_v53 = vpop.f32.mrf.mxu1 }
 0x151   : > { %v2341_v51 = vpop.f32.mrf.mxu0  ;;  %v959_v5 = vadd.f32 %v2343_v53, %v2329_v12 }
 0x152   : > { %v1815_v44 = vpop.f32.mrf.mxu1  ;;  %v1110_v47 = vadd.f32 %v2341_v51, %v957_v52 }
 0x153   : > { %v1833_v49 = vpop.f32.mrf.mxu0 }
 0x154   : > { %v2345_v56 = vpop.f32.mrf.mxu1 }
 0x155   : > { %v1086_v55 = vpop.f32.mrf.mxu0  ;;  %v960_v48 = vadd.f32 %v2345_v56, %v2331_v11 }
 0x156   : > { %v1816_v54 = vpop.f32.mrf.mxu1 }
 0x157   : > { %v1834_v58 = vpop.f32.mrf.mxu0 }
 0x158   : > { %v2349_v61 = vpop.f32.mrf.mxu1 }
 0x159   : > { %v2347_v59 = vpop.f32.mrf.mxu0  ;;  %v961_v11 = vadd.f32 %v2349_v61, %v2333_v25 }
 0x15a   : > { %v1819_v0 = vpop.f32.mrf.mxu1 }
 0x15b   : > { %v1837_v62 = vpop.f32.mrf.mxu0 }
 0x15c   : > { %v2353_v46 = vpop.f32.mrf.mxu1 }
 0x15d   : > { %v2351_v60 = vpop.f32.mrf.mxu0  ;;  %v962_v56 = vadd.f32 %v2353_v46, %v2335_v29 }
 0x15e   : > { %v1820_v2 = vpop.f32.mrf.mxu1 }
 0x15f   : > { %v1838_v4 = vpop.f32.mrf.mxu0 }
 0x160   : > { %v1228_v3 = vpop.f32.mrf.mxu1  ;;  %v1111_v4 = vadd.f32 %v1086_v55, %v958_v57 }
 0x161   : > { %v2355_v6 = vpop.f32.mrf.mxu0  ;;  %v1267_v22 = vadd.f32 %v1228_v3, %v1106_v15  ;;  %v1113_v15 = vadd.f32 %v2351_v60, %v960_v48 }
 0x162   : > { %v1847_v9 = vpop.f32.mrf.mxu1 }
 0x163   : > { %v1841_v7 = vpop.f32.mrf.mxu0 }
 0x164   : > { %v1231_v13 = vpop.f32.mrf.mxu1 }
 0x165   : > { %v2357_v10 = vpop.f32.mrf.mxu0  ;;  %v1268_v17 = vadd.f32 %v1231_v13, %v1107_v21 }
 0x166   : > { %v1848_v18 = vpop.f32.mrf.mxu1 }
 0x167   : > { %v1842_v8 = vpop.f32.mrf.mxu0 }
 0x168   : > { %v1236_v23 = vpop.f32.mrf.mxu1 }
 0x169   : > { %v1347_v19 = vpop.f32.mrf.mxu0  ;;  %v1269_v41 = vadd.f32 %v1236_v23, %v1108_v32 }
 0x16a   : > { %v1851_v28 = vpop.f32.mrf.mxu1  ;;  %v1386_v27 = vadd.f32 %v1347_v19, %v1267_v22  ;;  %v1112_v19 = vadd.f32 %v2347_v59, %v959_v5 }
 0x16b   : > { %v1869_v24 = vpop.f32.mrf.mxu0 }
 0x16c   : > { %v1239_v35 = vpop.f32.mrf.mxu1 }
 0x16d   : > { %v1350_v31 = vpop.f32.mrf.mxu0  ;;  %v1270_v50 = vadd.f32 %v1239_v35, %v1109_v38  ;;  %v1114_v35 = vadd.f32 %v2355_v6, %v961_v11 }
 0x16e   : > { %v1387_v34 = vadd.f32 %v1350_v31, %v1268_v17  ;;  %v1852_v20 = vpop.f32.mrf.mxu1 }
 0x16f   : > { %v1870_v37 = vpop.f32.mrf.mxu0 }
 0x170   : > { %v1609_v30 = vpack.c.bf16 %v1387_v34, %v1386_v27  ;;  %v1244_v26 = vpop.f32.mrf.mxu1  ;;  %v1115_v37 = vadd.f32 %v2357_v10, %v962_v56 }
 0x171   : > { %v1355_v36 = vpop.f32.mrf.mxu0  ;;  %v1271_v7 = vadd.f32 %v1244_v26, %v1110_v47 }
 0x172   : > { %1610 = vst [vmem:[%s2365_s8] sm:$0xff] %v1609_v30   ;;  %v1855_v49 = vpop.f32.mrf.mxu1  ;;  %v1388_v58 = vadd.f32 %v1355_v36, %v1269_v41 }
 0x173   : > { %v1873_v43 = vpop.f32.mrf.mxu0 }
 0x174   : > { %v1247_v62 = vpop.f32.mrf.mxu1 }
 0x175   : > { %v1358_v44 = vpop.f32.mrf.mxu0  ;;  %v1272_v9 = vadd.f32 %v1247_v62, %v1111_v4 }
 0x176   : > { %v1389_v54 = vadd.f32 %v1358_v44, %v1270_v50  ;;  %v1856_v39 = vpop.f32.mrf.mxu1 }
 0x177   : > { %v1874_v0 = vpop.f32.mrf.mxu0 }
 0x178   : > { %v1614_v33 = vpack.c.bf16 %v1389_v54, %v1388_v58  ;;  %v1252_v2 = vpop.f32.mrf.mxu1 }
 0x179   : > { %v1363_v40 = vpop.f32.mrf.mxu0  ;;  %v1273_v24 = vadd.f32 %v1252_v2, %v1112_v19 }
 0x17a   : > { %1631 = vst [vmem:[%s2365_s8 + $0x8] sm:$0xff] %v1614_v33   ;;  %v1859_v13 = vpop.f32.mrf.mxu1  ;;  %v1390_v14 = vadd.f32 %v1363_v40, %v1271_v7 }
 0x17b   : > { %v1877_v3 = vpop.f32.mrf.mxu0 }
 0x17c   : > { %v1255_v63 = vpop.f32.mrf.mxu1 }
 0x17d   : > { %v1366_v8 = vpop.f32.mrf.mxu0  ;;  %v1274_v22 = vadd.f32 %v1255_v63, %v1113_v15 }
 0x17e   : > { %v1391_v16 = vadd.f32 %v1366_v8, %v1272_v9  ;;  %v1860_v55 = vpop.f32.mrf.mxu1 }
 0x17f   : > { %v1878_v42 = vpop.f32.mrf.mxu0 }
 0x180   : > { %v1619_v51 = vpack.c.bf16 %v1391_v16, %v1390_v14  ;;  %v1260_v21 = vpop.f32.mrf.mxu1 }
 0x181   : > { %v1371_v18 = vpop.f32.mrf.mxu0  ;;  %v1275_v1 = vadd.f32 %v1260_v21, %v1114_v35 }
 0x182   : > { %1632 = vst [vmem:[%s2365_s8 + $0x10] sm:$0xff] %v1619_v51   ;;  %v1863_v17 = vpop.f32.mrf.mxu1  ;;  %v1392_v31 = vadd.f32 %v1371_v18, %v1273_v24 }
 0x183   : > { %v1881_v23 = vpop.f32.mrf.mxu0 }
 0x184   : > { %v1263_v53 = vpop.f32.mrf.mxu1 }
 0x185   : > { %v1374_v28 = vpop.f32.mrf.mxu0  ;;  %v1276_v30 = vadd.f32 %v1263_v53, %v1115_v37 }
 0x186   : > { %v1393_v12 = vadd.f32 %v1374_v28, %v1274_v22  ;;  %v1864_v60 = vpop.f32.mrf.mxu1 }
 0x187   : > { %v1882_v27 = vpop.f32.mrf.mxu0 }
 0x188   : > { %v1624_v59 = vpack.c.bf16 %v1393_v12, %v1392_v31 }
 0x189   : > { %v1379_v34 = vpop.f32.mrf.mxu0 }
 0x18a   : > { %1633 = vst [vmem:[%s2365_s8 + $0x18] sm:$0xff] %v1624_v59   ;;  %v1394_v36 = vadd.f32 %v1379_v34, %v1275_v1 }
 0x18b   : > { %v1885_v45 = vpop.f32.mrf.mxu0 }
 0x18d   : > { %v1382_v20 = vpop.f32.mrf.mxu0 }
 0x18e   : > { %v1395_v32 = vadd.f32 %v1382_v20, %v1276_v30 }
 0x18f   : > { %v1886_v38 = vpop.f32.mrf.mxu0 }
 0x190   : > { %v1629_v25 = vpack.c.bf16 %v1395_v32, %v1394_v36 }
 0x192   : > { %1634 = vst [vmem:[%s2365_s8 + $0x20] sm:$0xff] %v1629_v25  }
 0x193 PF: > { %s12_s9 = sadd.s32 1, %s1930_s9  }
 0x194   : > { %p9_p4 = scmp.ge.s32.totalorder %s12_s9, 10  }
 0x196   :  { %11 = sbr.rel (!%p9_p4) target bundleno = 1 (0x1), region = 66 }

// kernel: basic_block_forward.5
= control target key start
LH: loop header
LB: loop body
LE: loop exit
PB: predicated region body
PF: predicated region fallthrough
CT: control target
= control target key end

     0   :  { %s2102_s15 = smov 0   ;;  %s2104_s16 = smov 0   ;;  %s2449_s0 = inlined_call_operand.vmem [shape: bf16[2,6,64,128], index: 0, kind: input, shape index: {}]   ;;  %s2450_s1 = inlined_call_operand.vmem [shape: bf16[3,128,128], index: 1, kind: input, shape index: {}]   ;;  %s2451_s2 = inlined_call_operand.vmem [shape: f32[1,128], index: 2, kind: input, shape index: {}]   ;;  %s2452_s3 = inlined_call_operand.vmem [shape: f32[1,128], index: 3, kind: input, shape index: {}]   ;;  %s2453_s4 = inlined_call_operand.vmem [shape: bf16[2,4,64,128], index: 4, kind: output, shape index: {}]  }
   0x1   :  { %s2106_s17 = smov 0  }
   0x2 LB: > { %s26_s18 = sadd.s32 1, %s2071_s16  ;;  %p1500_p0 = scmp.ge.s32.totalorder %s2075_s17, 1  ;;  %s2075_s17 = sphi %s2106_s17, %s14_s17   ;;  %s2071_s16 = sphi %s2104_s16, %s2455_s16   ;;  %s2067_s15 = sphi %s2102_s15, %s2454_s15  }
   0x3   : > { %p28_p1 = scmp.ge.s32.totalorder %s26_s18, 2  ;;  %p183_p2 = scmp.lt.s32.totalorder %s2075_s17, 3 }
   0x5   : > { %s2457_s18 = smov (%p28_p1, %s26_s18), 0  ;;  %p184_p3 = pnand %p1500_p0, %p183_p2 }
   0x6   : > { %p218_p4 = scmp.lt.s32.totalorder (!%p184_p3), %s2067_s15, 1 }
   0x7   : > { %187 = sbr.rel (%p184_p3) target bundleno = 345 (0x159), region = 36 }
   0xc   : > { %v2005_v0 = vld [vmem:[%s2450_s1 + $0x78] sm:$0xff]   ;;  %v2006_v1 = vld [vmem:[%s2450_s1 + $0x70] sm:$0xff]   ;;  %s2459_s15 = smov (!%p218_p4, %s2067_s15), 1  ;;  %v2007_v2 = vld [vmem:[%s2450_s1 + $0x68] sm:$0xff]  }
   0xd   : > { %1820 = vmatprep.subr.bf16.mxu0 %v2005_v0  ;;  %1964 = vmatprep.subr.bf16.mxu1 %v2005_v0  ;;  %s1980_s25 = smul.u32 192, %s2459_s15  ;;  %v2008_v3 = vld [vmem:[%s2450_s1 + $0x60] sm:$0xff]   ;;  %v2009_v6 = vld [vmem:[%s2450_s1 + $0x58] sm:$0xff]   ;;  %v2010_v7 = vld [vmem:[%s2450_s1 + $0x50] sm:$0xff]   ;;  %s1620_s6 = sshll.u32 %s2459_s15, 7 }
   0xe   : > { %1821 = vmatpush3.bf16.msra.mxu0 %v2005_v0  ;;  %1972 = vmatpush3.bf16.msra.mxu1 %v2005_v0  ;;  %v2011_v8 = vld [vmem:[%s2450_s1 + $0x48] sm:$0xff]   ;;  %v2012_v9 = vld [vmem:[%s2450_s1 + $0x40] sm:$0xff]   ;;  %v2017_v10 = vld [vmem:[%s2450_s1 + $0x38] sm:$0xff]   ;;  %s2341_s9 = scalar_lea.vmem %s2453_s4, %s1620_s6 }
   0xf   : > { %1822 = vmatprep.subr.bf16.mxu0 %v2006_v1  ;;  %1965 = vmatprep.subr.bf16.mxu1 %v2006_v1  ;;  %s2135_s28 = scalar_lea.vmem %s2449_s0, %s1980_s25  ;;  %v2018_v12 = vld [vmem:[%s2450_s1 + $0xb8] sm:$0xff]   ;;  %v2019_v14 = vld [vmem:[%s2450_s1 + $0x30] sm:$0xff]   ;;  %v2025_v18 = vld [vmem:[%s2450_s1 + $0x28] sm:$0xff]  }
  0x10   : > { %v2141_v4 = vld [vmem:[%s2135_s28 + $0x20] sm:$0xff]   ;;  %v2164_v11 = vld [vmem:[%s2135_s28 + $0x28] sm:$0xff]   ;;  %v2020_v15 = vld [vmem:[%s2450_s1 + $0xb0] sm:$0xff]  }
  0x11   : > { %v2144_v5 = vld [vmem:[%s2135_s28 + $0x60] sm:$0xff]   ;;  %1836 = vmatprep.mubr.bf16.mxu0 %v2141_v4  ;;  %v2170_v13 = vld [vmem:[%s2135_s28 + $0x68] sm:$0xff]   ;;  %v2179_v16 = vld [vmem:[%s2135_s28 + $0x30] sm:$0xff]  }
  0x12   : > { %1823 = vmatpush3.bf16.msra.mxu0 %v2006_v1  ;;  %1973 = vmatpush3.bf16.msra.mxu1 %v2006_v1  ;;  %v2182_v17 = vld [vmem:[%s2135_s28 + $0x70] sm:$0xff]   ;;  %v2190_v19 = vld [vmem:[%s2135_s28 + $0x38] sm:$0xff]   ;;  %v2026_v20 = vld [vmem:[%s2450_s1 + $0xa8] sm:$0xff]  }
  0x13   : > { %1824 = vmatprep.subr.bf16.mxu0 %v2007_v2  ;;  %1966 = vmatprep.subr.bf16.mxu1 %v2007_v2  ;;  %v2198_v21 = vld [vmem:[%s2135_s28 + $0x78] sm:$0xff]   ;;  %v2027_v22 = vld [vmem:[%s2450_s1 + $0x20] sm:$0xff]   ;;  %v2031_v28 = vld [vmem:[%s2135_s28 + $0x48] sm:$0xff]  }
  0x14   : > { %1852 = vmatprep.mubr.bf16.mxu1 %v2144_v5  ;;  %v2028_v23 = vld [vmem:[%s2450_s1 + $0xa0] sm:$0xff]   ;;  %v2033_v26 = vld [vmem:[%s2450_s1 + $0x18] sm:$0xff]   ;;  %v2032_v29 = vld [vmem:[%s2135_s28 + $0x88] sm:$0xff]  }
  0x15   : > { %v2207_v24 = vld [vmem:[%s2135_s28 + $0x40] sm:$0xff]   ;;  %v2034_v27 = vld [vmem:[%s2450_s1 + $0x98] sm:$0xff]   ;;  %v2035_v30 = vld [vmem:[%s2450_s1 + $0x10] sm:$0xff]  }
  0x16   : > { %1825 = vmatpush3.bf16.msra.mxu0 %v2007_v2  ;;  %1974 = vmatpush3.bf16.msra.mxu1 %v2007_v2  ;;  %v2210_v25 = vld [vmem:[%s2135_s28 + $0x80] sm:$0xff]   ;;  %v2036_v31 = vld [vmem:[%s2450_s1 + $0x90] sm:$0xff]   ;;  %v2041_v34 = vld [vmem:[%s2450_s1 + $0x8] sm:$0xff]  }
  0x17   : > { %1826 = vmatprep.subr.bf16.mxu0 %v2008_v3  ;;  %1967 = vmatprep.subr.bf16.mxu1 %v2008_v3  ;;  %v2037_v32 = vld [vmem:[%s2135_s28 + $0x50] sm:$0xff]   ;;  %v2042_v35 = vld [vmem:[%s2450_s1 + $0x88] sm:$0xff]   ;;  %v2039_v36 = vld [vmem:[%s2135_s28 + $0x58] sm:$0xff]  }
  0x18   : > { %v2038_v33 = vld [vmem:[%s2135_s28 + $0x90] sm:$0xff]   ;;  %v2040_v37 = vld [vmem:[%s2135_s28 + $0x98] sm:$0xff]   ;;  %v2043_v38 = vld [vmem:[%s2450_s1] sm:$0xff]  }
  0x19   : > { %v2044_v39 = vld [vmem:[%s2450_s1 + $0x80] sm:$0xff]   ;;  %v2046_v41 = vld [vmem:[%s2135_s28 + $0x8] sm:$0xff]   ;;  %v2047_v42 = vld [vmem:[%s2135_s28 + $0x10] sm:$0xff]  }
  0x1a   : > { %1827 = vmatpush3.bf16.msra.mxu0 %v2008_v3  ;;  %1975 = vmatpush3.bf16.msra.mxu1 %v2008_v3  ;;  %v2045_v40 = vld [vmem:[%s2135_s28] sm:$0xff]   ;;  %v2048_v43 = vld [vmem:[%s2135_s28 + $0x18] sm:$0xff]   ;;  %v2050_v45 = vld [vmem:[%s2135_s28 + $0xa8] sm:$0xff]  }
  0x1b   : > { %1828 = vmatprep.subr.bf16.mxu0 %v2009_v6  ;;  %1968 = vmatprep.subr.bf16.mxu1 %v2009_v6  ;;  %v2049_v44 = vld [vmem:[%s2135_s28 + $0xa0] sm:$0xff]   ;;  %v2051_v46 = vld [vmem:[%s2135_s28 + $0xb0] sm:$0xff]   ;;  %v2052_v47 = vld [vmem:[%s2135_s28 + $0xb8] sm:$0xff]  }
  0x1e   : > { %1829 = vmatpush3.bf16.msra.mxu0 %v2009_v6  ;;  %1976 = vmatpush3.bf16.msra.mxu1 %v2009_v6 }
  0x1f   : > { %1830 = vmatprep.subr.bf16.mxu0 %v2010_v7  ;;  %1969 = vmatprep.subr.bf16.mxu1 %v2010_v7 }
  0x22   : > { %1831 = vmatpush3.bf16.msra.mxu0 %v2010_v7  ;;  %1977 = vmatpush3.bf16.msra.mxu1 %v2010_v7 }
  0x23   : > { %1832 = vmatprep.subr.bf16.mxu0 %v2011_v8  ;;  %1970 = vmatprep.subr.bf16.mxu1 %v2011_v8 }
  0x26   : > { %1833 = vmatpush3.bf16.msra.mxu0 %v2011_v8  ;;  %1978 = vmatpush3.bf16.msra.mxu1 %v2011_v8 }
  0x27   : > { %1834 = vmatprep.subr.bf16.mxu0 %v2012_v9  ;;  %1971 = vmatprep.subr.bf16.mxu1 %v2012_v9 }
  0x2a   : > { %1835 = vmatpush3.bf16.msra.mxu0 %v2012_v9  ;;  %1979 = vmatpush3.bf16.msra.mxu1 %v2012_v9 }
  0x2b   : > { %1868 = vmatprep.subr.bf16.mxu1 %v2017_v10  ;;  %1916 = vmatprep.subr.bf16.mxu0 %v2018_v12 }
  0x2d   : > { %1837 = vmatmul.mubr.bf16.vlgmr.msra.gmra.mxu0 %v2164_v11  ;;  %1853 = vmatmul.mubr.bf16.vlgmr.msra.gmra.mxu1 %v2170_v13 }
  0x2e   : > { %1869 = vmatpush3.bf16.msra.mxu1 %v2017_v10  ;;  %1917 = vmatpush3.bf16.msra.mxu0 %v2018_v12 }
  0x2f   : > { %1870 = vmatprep.subr.bf16.mxu1 %v2019_v14  ;;  %1918 = vmatprep.subr.bf16.mxu0 %v2020_v15 }
  0x30   : > { %1840 = vmatprep.mubr.bf16.mxu0 %v2179_v16  ;;  %1856 = vmatprep.mubr.bf16.mxu1 %v2182_v17 }
  0x32   : > { %1871 = vmatpush3.bf16.msra.mxu1 %v2019_v14  ;;  %1919 = vmatpush3.bf16.msra.mxu0 %v2020_v15 }
  0x33   : > { %1872 = vmatprep.subr.bf16.mxu1 %v2025_v18  ;;  %1920 = vmatprep.subr.bf16.mxu0 %v2026_v20 }
  0x35   : > { %1841 = vmatmul.mubr.bf16.gmra.mxu0 %v2190_v19  ;;  %1857 = vmatmul.mubr.bf16.gmra.mxu1 %v2198_v21 }
  0x36   : > { %1873 = vmatpush3.bf16.msra.mxu1 %v2025_v18  ;;  %1921 = vmatpush3.bf16.msra.mxu0 %v2026_v20 }
  0x37   : > { %1874 = vmatprep.subr.bf16.mxu1 %v2027_v22  ;;  %1922 = vmatprep.subr.bf16.mxu0 %v2028_v23 }
  0x38   : > { %1844 = vmatprep.mubr.bf16.mxu0 %v2207_v24  ;;  %1860 = vmatprep.mubr.bf16.mxu1 %v2210_v25 }
  0x3a   : > { %1875 = vmatpush3.bf16.msra.mxu1 %v2027_v22  ;;  %1923 = vmatpush3.bf16.msra.mxu0 %v2028_v23 }
  0x3b   : > { %1876 = vmatprep.subr.bf16.mxu1 %v2033_v26  ;;  %1924 = vmatprep.subr.bf16.mxu0 %v2034_v27 }
  0x3d   : > { %1845 = vmatmul.mubr.bf16.gmra.mxu0 %v2031_v28  ;;  %1861 = vmatmul.mubr.bf16.gmra.mxu1 %v2032_v29 }
  0x3e   : > { %1877 = vmatpush3.bf16.msra.mxu1 %v2033_v26  ;;  %1925 = vmatpush3.bf16.msra.mxu0 %v2034_v27  ;;  %v2328_v27 = vld [vmem:[%s2452_s3] ss:$0 sm:$0xff] }
  0x3f   : > { %1878 = vmatprep.subr.bf16.mxu1 %v2035_v30  ;;  %1926 = vmatprep.subr.bf16.mxu0 %v2036_v31 }
  0x40   : > { %1848 = vmatprep.mubr.bf16.mxu0 %v2037_v32  ;;  %1864 = vmatprep.mubr.bf16.mxu1 %v2038_v33 }
  0x42   : > { %1879 = vmatpush3.bf16.msra.mxu1 %v2035_v30  ;;  %1927 = vmatpush3.bf16.msra.mxu0 %v2036_v31 }
  0x43   : > { %1880 = vmatprep.subr.bf16.mxu1 %v2041_v34  ;;  %1928 = vmatprep.subr.bf16.mxu0 %v2042_v35 }
  0x45   : > { %1849 = vmatmul.mubr.bf16.gmra.mxu0 %v2039_v36  ;;  %1865 = vmatmul.mubr.bf16.gmra.mxu1 %v2040_v37 }
  0x46   : > { %1881 = vmatpush3.bf16.msra.mxu1 %v2041_v34  ;;  %1929 = vmatpush3.bf16.msra.mxu0 %v2042_v35 }
  0x47   : > { %1882 = vmatprep.subr.bf16.mxu1 %v2043_v38  ;;  %1930 = vmatprep.subr.bf16.mxu0 %v2044_v39 }
  0x48   : > { %1884 = vmatprep.mubr.bf16.mxu1 %v2045_v40  ;;  %1932 = vmatprep.mubr.bf16.mxu0 %v2207_v24 }
  0x4a   : > { %1883 = vmatpush3.bf16.msra.mxu1 %v2043_v38  ;;  %1931 = vmatpush3.bf16.msra.mxu0 %v2044_v39 }
  0x4d   : > { %1885 = vmatmul.mubr.bf16.vlgmr.msra.gmra.mxu1 %v2046_v41  ;;  %1933 = vmatmul.mubr.bf16.vlgmr.msra.gmra.mxu0 %v2031_v28 }
  0x4e   : > { %1888 = vmatprep.mubr.bf16.mxu1 %v2047_v42  ;;  %1936 = vmatprep.mubr.bf16.mxu0 %v2037_v32 }
  0x55   : > { %1889 = vmatmul.mubr.bf16.gmra.mxu1 %v2048_v43  ;;  %1937 = vmatmul.mubr.bf16.gmra.mxu0 %v2039_v36 }
  0x56   : > { %1892 = vmatprep.mubr.bf16.mxu1 %v2141_v4  ;;  %1940 = vmatprep.mubr.bf16.mxu0 %v2144_v5 }
  0x5d   : > { %1893 = vmatmul.mubr.bf16.gmra.mxu1 %v2164_v11  ;;  %1941 = vmatmul.mubr.bf16.gmra.mxu0 %v2170_v13 }
  0x5e   : > { %1896 = vmatprep.mubr.bf16.mxu1 %v2179_v16  ;;  %1944 = vmatprep.mubr.bf16.mxu0 %v2182_v17 }
  0x65   : > { %1897 = vmatmul.mubr.bf16.gmra.mxu1 %v2190_v19  ;;  %1945 = vmatmul.mubr.bf16.gmra.mxu0 %v2198_v21  ;;  %v2322_v19 = vld [vmem:[%s2451_s2] ss:$0 sm:$0xff] }
  0x66   : > { %1900 = vmatprep.mubr.bf16.mxu1 %v2207_v24  ;;  %1948 = vmatprep.mubr.bf16.mxu0 %v2210_v25 }
  0x6d   : > { %1901 = vmatmul.mubr.bf16.gmra.mxu1 %v2031_v28  ;;  %1949 = vmatmul.mubr.bf16.gmra.mxu0 %v2032_v29 }
  0x6e   : > { %1904 = vmatprep.mubr.bf16.mxu1 %v2037_v32  ;;  %1952 = vmatprep.mubr.bf16.mxu0 %v2038_v33 }
  0x75   : > { %1905 = vmatmul.mubr.bf16.gmra.mxu1 %v2039_v36  ;;  %1953 = vmatmul.mubr.bf16.gmra.mxu0 %v2040_v37 }
  0x76   : > { %1908 = vmatprep.mubr.bf16.mxu1 %v2144_v5  ;;  %1956 = vmatprep.mubr.bf16.mxu0 %v2049_v44 }
  0x7d   : > { %1909 = vmatmul.mubr.bf16.gmra.mxu1 %v2170_v13  ;;  %1957 = vmatmul.mubr.bf16.gmra.mxu0 %v2050_v45 }
  0x7e   : > { %1912 = vmatprep.mubr.bf16.mxu1 %v2182_v17  ;;  %1960 = vmatprep.mubr.bf16.mxu0 %v2051_v46 }
  0x85   : > { %1913 = vmatmul.mubr.bf16.gmra.mxu1 %v2198_v21  ;;  %1961 = vmatmul.mubr.bf16.gmra.mxu0 %v2052_v47 }
  0xed   : > { %v1838_v48 = vpop.f32.mrf.mxu0  ;;  %v2269_v49 = vpop.f32.mrf.mxu1 }
  0xef   : > { %v497_v50 = vpop.f32.mrf.mxu0  ;;  %v2271_v51 = vpop.f32.mrf.mxu1 }
  0xf1   : > { %v1839_v52 = vpop.f32.mrf.mxu0  ;;  %v2273_v53 = vpop.f32.mrf.mxu1 }
  0xf3   : > { %v500_v54 = vpop.f32.mrf.mxu0  ;;  %v2275_v55 = vpop.f32.mrf.mxu1 }
  0xf5   : > { %v1842_v56 = vpop.f32.mrf.mxu0  ;;  %v2277_v57 = vpop.f32.mrf.mxu1 }
  0xf7   : > { %v513_v58 = vpop.f32.mrf.mxu0  ;;  %v2279_v59 = vpop.f32.mrf.mxu1 }
  0xf9   : > { %v1843_v60 = vpop.f32.mrf.mxu0  ;;  %v2281_v61 = vpop.f32.mrf.mxu1 }
  0xfb   : > { %v2283_v62 = vpop.f32.mrf.mxu0  ;;  %v2285_v63 = vpop.f32.mrf.mxu1 }
  0xfd   : > { %v2287_v0 = vpop.f32.mrf.mxu0  ;;  %v2289_v1 = vpop.f32.mrf.mxu1 }
  0xff   : > { %v2291_v2 = vpop.f32.mrf.mxu0  ;;  %v2293_v3 = vpop.f32.mrf.mxu1 }
 0x101   : > { %v2295_v4 = vpop.f32.mrf.mxu0  ;;  %v2297_v5 = vpop.f32.mrf.mxu1 }
 0x103   : > { %v2299_v6 = vpop.f32.mrf.mxu0  ;;  %v2301_v7 = vpop.f32.mrf.mxu1 }
 0x105   : > { %v2303_v8 = vpop.f32.mrf.mxu0  ;;  %v2305_v9 = vpop.f32.mrf.mxu1 }
 0x107   : > { %v2307_v10 = vpop.f32.mrf.mxu0  ;;  %v2309_v11 = vpop.f32.mrf.mxu1 }
 0x109   : > { %v2311_v12 = vpop.f32.mrf.mxu0  ;;  %v2313_v13 = vpop.f32.mrf.mxu1 }
 0x10b   : > { %v2315_v14 = vpop.f32.mrf.mxu0  ;;  %v2317_v15 = vpop.f32.mrf.mxu1 }
 0x10d   : > { %v1886_v16 = vpop.f32.mrf.mxu1  ;;  %v1934_v17 = vpop.f32.mrf.mxu0 }
 0x10e   : > { %v739_v18 = vadd.f32 %v1886_v16, %v1838_v48 }
 0x10f   : > { %v730_v20 = vpop.f32.mrf.mxu1  ;;  %v980_v21 = vpop.f32.mrf.mxu0 }
 0x110   : > { %v1109_v22 = vadd.f32 %v1934_v17, %v739_v18  ;;  %v731_v23 = vadd.f32 %v730_v20, %v497_v50 }
 0x111   : > { %v1887_v24 = vpop.f32.mrf.mxu1  ;;  %v1935_v25 = vpop.f32.mrf.mxu0 }
 0x112   : > { %v1148_v26 = vmul.f32 %v2322_v19, %v1109_v22  ;;  %v1107_v28 = vadd.f32 %v980_v21, %v731_v23  ;;  %v742_v29 = vadd.f32 %v1887_v24, %v1839_v52 }
 0x113   : > { %v733_v30 = vpop.f32.mrf.mxu1  ;;  %v983_v31 = vpop.f32.mrf.mxu0 }
 0x114   : > { %v1146_v32 = vmul.f32 %v2322_v19, %v1107_v28  ;;  %v1110_v33 = vadd.f32 %v1935_v25, %v742_v29  ;;  %v734_v34 = vadd.f32 %v733_v30, %v500_v54  ;;  %v1187_v35 = vadd.f32 %v2328_v27, %v1148_v26 }
 0x115   : > { %v1890_v36 = vpop.f32.mrf.mxu1  ;;  %v1938_v37 = vpop.f32.mrf.mxu0 }
 0x116   : > { %v1149_v38 = vmul.f32 %v2322_v19, %v1110_v33  ;;  %v1108_v39 = vadd.f32 %v983_v31, %v734_v34  ;;  %v1185_v40 = vadd.f32 %v2328_v27, %v1146_v32  ;;  %v755_v41 = vadd.f32 %v1890_v36, %v1842_v56 }
 0x117   : > { %v746_v42 = vpop.f32.mrf.mxu1  ;;  %v996_v43 = vpop.f32.mrf.mxu0  ;;  %v1219_v47 = vmax.f32 %v1187_v35, 0.0 }
 0x118   : > { %v1188_v44 = vadd.f32 %v2328_v27, %v1149_v38  ;;  %v1147_v45 = vmul.f32 %v2322_v19, %v1108_v39  ;;  %v747_v46 = vadd.f32 %v746_v42, %v513_v58  ;;  %v1113_v48 = vadd.f32 %v1938_v37, %v755_v41 }
 0x119   : > { %v1891_v50 = vpop.f32.mrf.mxu1  ;;  %v1939_v52 = vpop.f32.mrf.mxu0  ;;  %v1217_v20 = vmax.f32 %v1185_v40, 0.0 }
 0x11a   : > { %v1220_v54 = vmax.f32 %v1188_v44, 0.0  ;;  %v1186_v16 = vadd.f32 %v2328_v27, %v1147_v45  ;;  %v1111_v17 = vadd.f32 %v996_v43, %v747_v46  ;;  %v758_v18 = vadd.f32 %v1891_v50, %v1843_v60 }
 0x11b   : > { %v1152_v56 = vmul.f32 %v2322_v19, %v1113_v48  ;;  %v749_v21 = vpop.f32.mrf.mxu1  ;;  %v999_v58 = vpop.f32.mrf.mxu0 }
 0x11c   : > { %v1661_v22 = vpack.c.bf16 %v1220_v54, %v1219_v47  ;;  %v1218_v23 = vmax.f32 %v1186_v16, 0.0  ;;  %v1150_v24 = vmul.f32 %v2322_v19, %v1111_v17  ;;  %v1114_v25 = vadd.f32 %v1939_v52, %v758_v18 }
 0x11d   : > { %v1191_v26 = vadd.f32 %v2328_v27, %v1152_v56  ;;  %v750_v60 = vadd.f32 %v749_v21, %v2283_v62  ;;  %v1894_v28 = vpop.f32.mrf.mxu1  ;;  %v1942_v29 = vpop.f32.mrf.mxu0 }
 0x11e   : > { %1733 = vst [vmem:[%s2341_s9 + $0x8] sm:$0xff] %v1661_v22   ;;  %v1656_v30 = vpack.c.bf16 %v1218_v23, %v1217_v20  ;;  %v1153_v31 = vmul.f32 %v2322_v19, %v1114_v25  ;;  %v771_v32 = vadd.f32 %v1894_v28, %v2287_v0  ;;  %v1189_v36 = vadd.f32 %v2328_v27, %v1150_v24 }
 0x11f   : > { %v1112_v33 = vadd.f32 %v999_v58, %v750_v60  ;;  %v762_v34 = vpop.f32.mrf.mxu1  ;;  %v1012_v35 = vpop.f32.mrf.mxu0  ;;  %v1223_v62 = vmax.f32 %v1191_v26, 0.0 }
 0x120   : > { %1657 = vst [vmem:[%s2341_s9] sm:$0xff] %v1656_v30   ;;  %v1192_v37 = vadd.f32 %v2328_v27, %v1153_v31  ;;  %v1117_v38 = vadd.f32 %v1942_v29, %v771_v32  ;;  %v763_v39 = vadd.f32 %v762_v34, %v2291_v2  ;;  %v1221_v50 = vmax.f32 %v1189_v36, 0.0 }
 0x121   : > { %v1151_v40 = vmul.f32 %v2322_v19, %v1112_v33  ;;  %v1895_v41 = vpop.f32.mrf.mxu1  ;;  %v1943_v42 = vpop.f32.mrf.mxu0 }
 0x122   : > { %v1224_v43 = vmax.f32 %v1192_v37, 0.0  ;;  %v1156_v0 = vmul.f32 %v2322_v19, %v1117_v38  ;;  %v1115_v44 = vadd.f32 %v1012_v35, %v763_v39  ;;  %v774_v45 = vadd.f32 %v1895_v41, %v2295_v4 }
 0x123   : > { %v1190_v46 = vadd.f32 %v2328_v27, %v1151_v40  ;;  %v765_v47 = vpop.f32.mrf.mxu1  ;;  %v1015_v48 = vpop.f32.mrf.mxu0 }
 0x124   : > { %v1671_v52 = vpack.c.bf16 %v1224_v43, %v1223_v62  ;;  %v1118_v54 = vadd.f32 %v1943_v42, %v774_v45  ;;  %v1195_v16 = vadd.f32 %v2328_v27, %v1156_v0  ;;  %v1154_v17 = vmul.f32 %v2322_v19, %v1115_v44 }
 0x125   : > { %v1222_v2 = vmax.f32 %v1190_v46, 0.0  ;;  %v766_v18 = vadd.f32 %v765_v47, %v2299_v6  ;;  %v1898_v20 = vpop.f32.mrf.mxu1  ;;  %v1946_v56 = vpop.f32.mrf.mxu0 }
 0x126   : > { %1735 = vst [vmem:[%s2341_s9 + $0x18] sm:$0xff] %v1671_v52   ;;  %v1157_v4 = vmul.f32 %v2322_v19, %v1118_v54  ;;  %v787_v21 = vadd.f32 %v1898_v20, %v2303_v8  ;;  %v1227_v28 = vmax.f32 %v1195_v16, 0.0  ;;  %v1193_v6 = vadd.f32 %v2328_v27, %v1154_v17 }
 0x127   : > { %v1666_v58 = vpack.c.bf16 %v1222_v2, %v1221_v50  ;;  %v1116_v22 = vadd.f32 %v1015_v48, %v766_v18  ;;  %v778_v23 = vpop.f32.mrf.mxu1  ;;  %v1028_v24 = vpop.f32.mrf.mxu0 }
 0x128   : > { %v1196_v25 = vadd.f32 %v2328_v27, %v1157_v4  ;;  %v1121_v26 = vadd.f32 %v1946_v56, %v787_v21  ;;  %v779_v60 = vadd.f32 %v778_v23, %v2307_v10  ;;  %v1225_v62 = vmax.f32 %v1193_v6, 0.0 }
 0x129   : > { %1734 = vst [vmem:[%s2341_s9 + $0x10] sm:$0xff] %v1666_v58   ;;  %v1155_v29 = vmul.f32 %v2322_v19, %v1116_v22  ;;  %v1899_v30 = vpop.f32.mrf.mxu1  ;;  %v1947_v31 = vpop.f32.mrf.mxu0 }
 0x12a   : > { %v1228_v32 = vmax.f32 %v1196_v25, 0.0  ;;  %v1160_v8 = vmul.f32 %v2322_v19, %v1121_v26  ;;  %v1119_v33 = vadd.f32 %v1028_v24, %v779_v60  ;;  %v790_v34 = vadd.f32 %v1899_v30, %v2311_v12 }
 0x12b   : > { %v1194_v35 = vadd.f32 %v2328_v27, %v1155_v29  ;;  %v781_v36 = vpop.f32.mrf.mxu1  ;;  %v1031_v37 = vpop.f32.mrf.mxu0 }
 0x12c   : > { %v1681_v10 = vpack.c.bf16 %v1228_v32, %v1227_v28  ;;  %v1158_v38 = vmul.f32 %v2322_v19, %v1119_v33  ;;  %v1122_v39 = vadd.f32 %v1947_v31, %v790_v34  ;;  %v1199_v41 = vadd.f32 %v2328_v27, %v1160_v8 }
 0x12d   : > { %v1226_v40 = vmax.f32 %v1194_v35, 0.0  ;;  %v782_v42 = vadd.f32 %v781_v36, %v2315_v14  ;;  %v1902_v43 = vpop.f32.mrf.mxu1  ;;  %v1950_v0 = vpop.f32.mrf.mxu0 }
 0x12e   : > { %1737 = vst [vmem:[%s2341_s9 + $0x28] sm:$0xff] %v1681_v10   ;;  %v1161_v12 = vmul.f32 %v2322_v19, %v1122_v39  ;;  %v803_v44 = vadd.f32 %v1902_v43, %v2269_v49  ;;  %v1197_v50 = vadd.f32 %v2328_v27, %v1158_v38  ;;  %v1231_v14 = vmax.f32 %v1199_v41, 0.0 }
 0x12f   : > { %v1676_v45 = vpack.c.bf16 %v1226_v40, %v1225_v62  ;;  %v1120_v46 = vadd.f32 %v1031_v37, %v782_v42  ;;  %v794_v47 = vpop.f32.mrf.mxu1  ;;  %v1044_v48 = vpop.f32.mrf.mxu0 }
 0x130   : > { %v1200_v52 = vadd.f32 %v2328_v27, %v1161_v12  ;;  %v1125_v54 = vadd.f32 %v1950_v0, %v803_v44  ;;  %v795_v2 = vadd.f32 %v794_v47, %v2271_v51  ;;  %v1229_v23 = vmax.f32 %v1197_v50, 0.0 }
 0x131   : > { %1736 = vst [vmem:[%s2341_s9 + $0x20] sm:$0xff] %v1676_v45   ;;  %v1159_v16 = vmul.f32 %v2322_v19, %v1120_v46  ;;  %v1903_v17 = vpop.f32.mrf.mxu1  ;;  %v1951_v18 = vpop.f32.mrf.mxu0 }
 0x132   : > { %v1232_v20 = vmax.f32 %v1200_v52, 0.0  ;;  %v1164_v49 = vmul.f32 %v2322_v19, %v1125_v54  ;;  %v1123_v56 = vadd.f32 %v1044_v48, %v795_v2  ;;  %v806_v4 = vadd.f32 %v1903_v17, %v2273_v53 }
 0x133   : > { %v1198_v21 = vadd.f32 %v2328_v27, %v1159_v16  ;;  %v797_v58 = vpop.f32.mrf.mxu1  ;;  %v1047_v22 = vpop.f32.mrf.mxu0 }
 0x134   : > { %v1691_v24 = vpack.c.bf16 %v1232_v20, %v1231_v14  ;;  %v1126_v51 = vadd.f32 %v1951_v18, %v806_v4  ;;  %v1203_v26 = vadd.f32 %v2328_v27, %v1164_v49  ;;  %v1162_v60 = vmul.f32 %v2322_v19, %v1123_v56 }
 0x135   : > { %v1230_v25 = vmax.f32 %v1198_v21, 0.0  ;;  %v798_v28 = vadd.f32 %v797_v58, %v2275_v55  ;;  %v1906_v6 = vpop.f32.mrf.mxu1  ;;  %v1954_v29 = vpop.f32.mrf.mxu0 }
 0x136   : > { %1739 = vst [vmem:[%s2341_s9 + $0x38] sm:$0xff] %v1691_v24   ;;  %v1165_v53 = vmul.f32 %v2322_v19, %v1126_v51  ;;  %v819_v30 = vadd.f32 %v1906_v6, %v2277_v57  ;;  %v1235_v37 = vmax.f32 %v1203_v26, 0.0  ;;  %v1201_v55 = vadd.f32 %v2328_v27, %v1162_v60 }
 0x137   : > { %v1686_v31 = vpack.c.bf16 %v1230_v25, %v1229_v23  ;;  %v1124_v32 = vadd.f32 %v1047_v22, %v798_v28  ;;  %v810_v8 = vpop.f32.mrf.mxu1  ;;  %v1060_v33 = vpop.f32.mrf.mxu0 }
 0x138   : > { %v1204_v34 = vadd.f32 %v2328_v27, %v1165_v53  ;;  %v1129_v35 = vadd.f32 %v1954_v29, %v819_v30  ;;  %v811_v36 = vadd.f32 %v810_v8, %v2279_v59  ;;  %v1233_v45 = vmax.f32 %v1201_v55, 0.0 }
 0x139   : > { %1738 = vst [vmem:[%s2341_s9 + $0x30] sm:$0xff] %v1686_v31   ;;  %v1163_v10 = vmul.f32 %v2322_v19, %v1124_v32  ;;  %v1907_v38 = vpop.f32.mrf.mxu1  ;;  %v1955_v39 = vpop.f32.mrf.mxu0 }
 0x13a   : > { %v1236_v62 = vmax.f32 %v1204_v34, 0.0  ;;  %v1168_v57 = vmul.f32 %v2322_v19, %v1129_v35  ;;  %v1127_v40 = vadd.f32 %v1060_v33, %v811_v36  ;;  %v822_v41 = vadd.f32 %v1907_v38, %v2281_v61 }
 0x13b   : > { %v1202_v42 = vadd.f32 %v2328_v27, %v1163_v10  ;;  %v813_v43 = vpop.f32.mrf.mxu1  ;;  %v1063_v0 = vpop.f32.mrf.mxu0 }
 0x13c   : > { %v1701_v59 = vpack.c.bf16 %v1236_v62, %v1235_v37  ;;  %v1166_v12 = vmul.f32 %v2322_v19, %v1127_v40  ;;  %v1130_v44 = vadd.f32 %v1955_v39, %v822_v41  ;;  %v1207_v47 = vadd.f32 %v2328_v27, %v1168_v57 }
 0x13d   : > { %v1234_v46 = vmax.f32 %v1202_v42, 0.0  ;;  %v814_v48 = vadd.f32 %v813_v43, %v2285_v63  ;;  %v1910_v50 = vpop.f32.mrf.mxu1  ;;  %v1958_v52 = vpop.f32.mrf.mxu0 }
 0x13e   : > { %1741 = vst [vmem:[%s2341_s9 + $0x48] sm:$0xff] %v1701_v59   ;;  %v1169_v61 = vmul.f32 %v2322_v19, %v1130_v44  ;;  %v835_v54 = vadd.f32 %v1910_v50, %v2289_v1  ;;  %v1205_v18 = vadd.f32 %v2328_v27, %v1166_v12  ;;  %v1239_v63 = vmax.f32 %v1207_v47, 0.0 }
 0x13f   : > { %v1696_v2 = vpack.c.bf16 %v1234_v46, %v1233_v45  ;;  %v1128_v14 = vadd.f32 %v1063_v0, %v814_v48  ;;  %v826_v16 = vpop.f32.mrf.mxu1  ;;  %v1076_v17 = vpop.f32.mrf.mxu0 }
 0x140   : > { %v1208_v20 = vadd.f32 %v2328_v27, %v1169_v61  ;;  %v1133_v49 = vadd.f32 %v1958_v52, %v835_v54  ;;  %v827_v56 = vadd.f32 %v826_v16, %v2293_v3  ;;  %v1237_v60 = vmax.f32 %v1205_v18, 0.0 }
 0x141   : > { %1740 = vst [vmem:[%s2341_s9 + $0x40] sm:$0xff] %v1696_v2   ;;  %v1167_v4 = vmul.f32 %v2322_v19, %v1128_v14  ;;  %v1911_v21 = vpop.f32.mrf.mxu1  ;;  %v1959_v58 = vpop.f32.mrf.mxu0 }
 0x142   : > { %v1240_v22 = vmax.f32 %v1208_v20, 0.0  ;;  %v1172_v1 = vmul.f32 %v2322_v19, %v1133_v49  ;;  %v1131_v23 = vadd.f32 %v1076_v17, %v827_v56  ;;  %v838_v24 = vadd.f32 %v1911_v21, %v2297_v5 }
 0x143   : > { %v1206_v51 = vadd.f32 %v2328_v27, %v1167_v4  ;;  %v829_v25 = vpop.f32.mrf.mxu1  ;;  %v1079_v26 = vpop.f32.mrf.mxu0 }
 0x144   : > { %v1711_v28 = vpack.c.bf16 %v1240_v22, %v1239_v63  ;;  %v1134_v3 = vadd.f32 %v1959_v58, %v838_v24  ;;  %v1211_v29 = vadd.f32 %v2328_v27, %v1172_v1  ;;  %v1170_v53 = vmul.f32 %v2322_v19, %v1131_v23 }
 0x145   : > { %v1238_v6 = vmax.f32 %v1206_v51, 0.0  ;;  %v830_v30 = vadd.f32 %v829_v25, %v2301_v7  ;;  %v1914_v31 = vpop.f32.mrf.mxu1  ;;  %v1962_v32 = vpop.f32.mrf.mxu0 }
 0x146   : > { %1743 = vst [vmem:[%s2341_s9 + $0x58] sm:$0xff] %v1711_v28   ;;  %v1173_v5 = vmul.f32 %v2322_v19, %v1134_v3  ;;  %v851_v8 = vadd.f32 %v1914_v31, %v2305_v9  ;;  %v1243_v38 = vmax.f32 %v1211_v29, 0.0  ;;  %v1209_v7 = vadd.f32 %v2328_v27, %v1170_v53 }
 0x147   : > { %v1706_v33 = vpack.c.bf16 %v1238_v6, %v1237_v60  ;;  %v1132_v34 = vadd.f32 %v1079_v26, %v830_v30  ;;  %v842_v35 = vpop.f32.mrf.mxu1  ;;  %v1092_v36 = vpop.f32.mrf.mxu0 }
 0x148   : > { %v1212_v37 = vadd.f32 %v2328_v27, %v1173_v5  ;;  %v1137_v55 = vadd.f32 %v1962_v32, %v851_v8  ;;  %v843_v10 = vadd.f32 %v842_v35, %v2309_v11  ;;  %v1241_v12 = vmax.f32 %v1209_v7, 0.0 }
 0x149   : > { %1742 = vst [vmem:[%s2341_s9 + $0x50] sm:$0xff] %v1706_v33   ;;  %v1171_v39 = vmul.f32 %v2322_v19, %v1132_v34  ;;  %v1915_v62 = vpop.f32.mrf.mxu1  ;;  %v1963_v42 = vpop.f32.mrf.mxu0 }
 0x14a   : > { %v1244_v57 = vmax.f32 %v1212_v37, 0.0  ;;  %v1176_v9 = vmul.f32 %v2322_v19, %v1137_v55  ;;  %v1135_v40 = vadd.f32 %v1092_v36, %v843_v10  ;;  %v854_v41 = vadd.f32 %v1915_v62, %v2313_v13 }
 0x14b   : > { %v1210_v43 = vadd.f32 %v2328_v27, %v1171_v39  ;;  %v845_v0 = vpop.f32.mrf.mxu1  ;;  %v1095_v13 = vpop.f32.mrf.mxu0 }
 0x14c   : > { %v1721_v11 = vpack.c.bf16 %v1244_v57, %v1243_v38  ;;  %v1138_v59 = vadd.f32 %v1963_v42, %v854_v41  ;;  %v1174_v45 = vmul.f32 %v2322_v19, %v1135_v40  ;;  %v846_v46 = vadd.f32 %v845_v0, %v2317_v15 }
 0x14d   : > { %v1242_v44 = vmax.f32 %v1210_v43, 0.0  ;;  %v1215_v47 = vadd.f32 %v2328_v27, %v1176_v9 }
 0x14e   : > { %1745 = vst [vmem:[%s2341_s9 + $0x68] sm:$0xff] %v1721_v11   ;;  %v1177_v48 = vmul.f32 %v2322_v19, %v1138_v59  ;;  %v1136_v52 = vadd.f32 %v1095_v13, %v846_v46  ;;  %v1213_v54 = vadd.f32 %v2328_v27, %v1174_v45 }
 0x14f   : > { %v1716_v50 = vpack.c.bf16 %v1242_v44, %v1241_v12  ;;  %v1247_v14 = vmax.f32 %v1215_v47, 0.0 }
 0x150   : > { %v1216_v61 = vadd.f32 %v2328_v27, %v1177_v48  ;;  %v1175_v2 = vmul.f32 %v2322_v19, %v1136_v52  ;;  %v1245_v18 = vmax.f32 %v1213_v54, 0.0 }
 0x151   : > { %1744 = vst [vmem:[%s2341_s9 + $0x60] sm:$0xff] %v1716_v50  }
 0x152   : > { %v1248_v16 = vmax.f32 %v1216_v61, 0.0  ;;  %v1214_v15 = vadd.f32 %v2328_v27, %v1175_v2 }
 0x154   : > { %v1731_v17 = vpack.c.bf16 %v1248_v16, %v1247_v14  ;;  %v1246_v20 = vmax.f32 %v1214_v15, 0.0 }
 0x156   : > { %1747 = vst [vmem:[%s2341_s9 + $0x78] sm:$0xff] %v1731_v17   ;;  %v1726_v49 = vpack.c.bf16 %v1246_v20, %v1245_v18 }
 0x158   : > { %1746 = vst [vmem:[%s2341_s9 + $0x70] sm:$0xff] %v1726_v49  }
 0x159 PF: > { %s14_s17 = sadd.s32 1, %s2075_s17   ;;  %s2454_s15 = smov %s2071_s16 }
 0x15a   : > { %p11_p5 = scmp.ge.s32.totalorder %s14_s17, 4   ;;  %s2455_s16 = smov %s2457_s18 }
 0x15c   :  { %13 = sbr.rel (!%p11_p5) target bundleno = 2 (0x2), region = 68 }

// kernel: basic_block_forward.6
= control target key start
LH: loop header
LB: loop body
LE: loop exit
PB: predicated region body
PF: predicated region fallthrough
CT: control target
= control target key end

     0   :  { %s2824_s9 = smov 0   ;;  %s3458_s0 = inlined_call_operand.vmem [shape: bf16[8,110,128], index: 0, kind: input, shape index: {}]   ;;  %s3459_s1 = inlined_call_operand.vmem [shape: bf16[9,128,128], index: 1, kind: input, shape index: {}]   ;;  %s3460_s2 = inlined_call_operand.vmem [shape: bf16[8,80,128], index: 2, kind: output, shape index: {}]  }
   0x1 LB: > { %s1954_s10 = sadd.s32 4294967295, %s2805_s9   ;;  %p1958_p0 = scmp.ge.s32.totalorder %s2805_s9, 1  ;;  %s2805_s9 = sphi %s2824_s9, %s12_s9  }
   0x2   : > { %p112_p1 = scmp.lt.s32.totalorder %s2805_s9, 9 }
   0x4   : > { %p113_p2 = pnand %p1958_p0, %p112_p1 }
   0x5   : > { %p134_p3 = scmp.lt.s32.totalorder (!%p113_p2), %s1954_s10, 7 }
   0x6   : > { %116 = sbr.rel (%p113_p2) target bundleno = 422 (0x1a6), region = 28 }
   0xb   : > { %v2704_v0 = vld [vmem:[%s3459_s1 + $0x78] sm:$0xff]   ;;  %v2807_v1 = vmov 0.0   ;;  %v2706_v3 = vld [vmem:[%s3459_s1 + $0x70] sm:$0xff]   ;;  %vm2808_vm0 = vmmov 0   ;;  %s3462_s10 = smov (!%p134_p3, %s1954_s10), 7  ;;  %v2708_v5 = vld [vmem:[%s3459_s1 + $0x68] sm:$0xff]  }
   0xc   : > { %2352 = vmatprep.subr.bf16.mxu0 %v2807_v1  ;;  %2388 = vmatprep.subr.bf16.mxu1 %v2807_v1  ;;  %v2705_v2 = vld [vmem:[%s3459_s1 + $0x38] sm:$0xff]   ;;  %v2707_v4 = vld [vmem:[%s3459_s1 + $0x30] sm:$0xff]   ;;  %v2709_v6 = vld [vmem:[%s3459_s1 + $0x28] sm:$0xff]   ;;  %s2692_s23 = smul.u32 56, %s3462_s10  ;;  %vm217_vm1 = vsmask.f32 7424 }
   0xd   : > { %2353 = vmatpush3.bf16.msra.mxu0 %v2704_v0  ;;  %2368 = vmatprep.mubr.msk.bf16.mxu0 %vm2808_vm0, %v2807_v1  ;;  %v2710_v7 = vld [vmem:[%s3459_s1 + $0x60] sm:$0xff]   ;;  %v2712_v9 = vld [vmem:[%s3459_s1 + $0x58] sm:$0xff]   ;;  %v2714_v13 = vld [vmem:[%s3459_s1 + $0x50] sm:$0xff]   ;;  %vm535_vm2 = vcmask 1046528   ;;  %vm907_vm3 = vsmask.f32 6400 }
   0xe   : > { %2389 = vmatpush3.bf16.msra.mxu1 %v2705_v2  ;;  %2354 = vmatprep.subr.bf16.mxu0 %v2807_v1  ;;  %v2711_v8 = vld [vmem:[%s3459_s1 + $0x20] sm:$0xff]   ;;  %s2874_s30 = scalar_lea.vmem %s3458_s0, %s2692_s23  ;;  %v2713_v10 = vld [vmem:[%s3459_s1 + $0x18] sm:$0xff]   ;;  %v2715_v16 = vld [vmem:[%s3459_s1 + $0x10] sm:$0xff]   ;;  %vm1118_vm4 = vcmask 1045504   ;;  %vm1490_vm5 = vsmask.f32 5376 }
   0xf   : > { %2390 = vmatprep.subr.bf16.mxu1 %v2807_v1  ;;  %2404 = vmatprep.mubr.msk.bf16.mxu1 %vm2808_vm0, %v2807_v1  ;;  %v145_v11 = vld [vmem:[%s2874_s30] sm:$0xf]  ;;  %v2886_v12 = vld [vmem:[%s2874_s30 + $0x4] sm:$0xf]  ;;  %v2893_v15 = vld [vmem:[%s2874_s30 + $0x8] sm:$0xff]   ;;  %vm1701_vm6 = vcmask 1044480  }
  0x10   : > { %v1977_v14 = vcombine.low %v145_v11, %v2886_v12  ;;  %v2716_v18 = vld [vmem:[%s3459_s1 + $0x48] sm:$0xff]   ;;  %v226_v21 = vshll.u32 %v2893_v15, 16  ;;  %v2718_v23 = vld [vmem:[%s3459_s1 + $0x40] sm:$0xff]   ;;  %v2916_v27 = vld [vmem:[%s2874_s30 + $0x10] sm:$0xff]   ;;  %v230_v30 = vshrl.u32 %v2893_v15, 16 }
  0x11   : > { %2355 = vmatpush3.bf16.msra.mxu0 %v2706_v3  ;;  %v2717_v22 = vld [vmem:[%s3459_s1 + $0x8] sm:$0xff]   ;;  %v2719_v24 = vld [vmem:[%s3459_s1] sm:$0xff]   ;;  %v2722_v28 = vld [vmem:[%s3459_s1 + $0xb8] sm:$0xff]   ;;  %v234_v31 = vshll.u32 %v2916_v27, 16  ;;  %v238_v41 = vshrl.u32 %v2916_v27, 16 }
  0x12   : > { %2391 = vmatpush3.bf16.msra.mxu1 %v2707_v4  ;;  %2356 = vmatprep.subr.bf16.mxu0 %v2807_v1  ;;  %v221_v17 = vshll.u32 %v1977_v14, 16  ;;  %v219_v19 = vshrl.u32 %v1977_v14, 16  ;;  %v228_v26 = vrot.slane %v226_v21, 1  ;;  %v2725_v32 = vld [vmem:[%s3459_s1 + $0xf8] sm:$0xff]   ;;  %v2723_v34 = vld [vmem:[%s3459_s1 + $0xb0] sm:$0xff]   ;;  %v2726_v40 = vld [vmem:[%s3459_s1 + $0xa8] sm:$0xff]  }
  0x13   : > { %2392 = vmatprep.subr.bf16.mxu1 %v2807_v1  ;;  %v2932_v33 = vld [vmem:[%s2874_s30 + $0x18] sm:$0xff]   ;;  %v236_v36 = vrot.slane %v234_v31, 1  ;;  %v2727_v37 = vld [vmem:[%s3459_s1 + $0xf0] sm:$0xff]   ;;  %v2730_v42 = vld [vmem:[%s3459_s1 + $0xe8] sm:$0xff]   ;;  %v539_v21 = vrot.slane %v2916_v27, 1 }
  0x14   : > { %v223_v20 = vrot.slane %v221_v17, 1  ;;  %v232_v35 = vor.u32 %v230_v30, %v228_v26  ;;  %v242_v38 = vshll.u32 %v2932_v33, 16  ;;  %v2729_v44 = vld [vmem:[%s3459_s1 + $0xa0] sm:$0xff]   ;;  %v2731_v48 = vld [vmem:[%s3459_s1 + $0x98] sm:$0xff]   ;;  %v246_v50 = vshrl.u32 %v2932_v33, 16  ;;  %v2735_v56 = vld [vmem:[%s3459_s1 + $0x90] sm:$0xff]  }
  0x15   : > { %2357 = vmatpush3.bf16.msra.mxu0 %v2708_v5  ;;  %v2961_v45 = vld [vmem:[%s2874_s30 + $0x20] sm:$0xff]   ;;  %v240_v46 = vor.u32 %v238_v41, %v236_v36  ;;  %v2734_v52 = vld [vmem:[%s3459_s1 + $0xd8] sm:$0xff]   ;;  %v2984_v53 = vld [vmem:[%s2874_s30 + $0x28] ss:$0 sps:$4 sm:$0x11]  }
  0x16   : > { %2393 = vmatpush3.bf16.msra.mxu1 %v2709_v6  ;;  %2358 = vmatprep.subr.bf16.mxu0 %v2807_v1  ;;  %v224_v25 = vor.u32 %v223_v20, %v219_v19  ;;  %v237_v39 = vsel %vm217_vm1, %v232_v35, %v236_v36  ;;  %v244_v43 = vrot.slane %v242_v38, 1  ;;  %v2732_v47 = vld [vmem:[%s3459_s1 + $0xe0] sm:$0xff]   ;;  %v250_v51 = vshll.u32 %v2961_v45, 16  ;;  %v2736_v57 = vld [vmem:[%s3459_s1 + $0xd0] sm:$0xff]   ;;  %v2737_v61 = vld [vmem:[%s3459_s1 + $0x88] sm:$0xff]  }
  0x17   : > { %2394 = vmatprep.subr.bf16.mxu1 %v2807_v1  ;;  %v254_v59 = vshrl.u32 %v2961_v45, 16  ;;  %v258_v60 = vshll.u32 %v2984_v53, 16  ;;  %v2739_v62 = vld [vmem:[%s3459_s1 + $0xc8] sm:$0xff]   ;;  %v2740_v63 = vld [vmem:[%s3459_s1 + $0x80] sm:$0xff]   ;;  %v2745_v17 = vld [vmem:[%s3459_s1 + $0x138] sm:$0xff]   ;;  %v543_v38 = vrot.slane %v2961_v45, 1 }
  0x18   : > { %v229_v29 = vsel %vm217_vm1, %v224_v25, %v228_v26  ;;  %v245_v49 = vsel %vm217_vm1, %v240_v46, %v244_v43  ;;  %v248_v54 = vor.u32 %v246_v50, %v244_v43  ;;  %v252_v55 = vrot.slane %v250_v51, 1  ;;  %v2741_v3 = vld [vmem:[%s3459_s1 + $0xc0] sm:$0xff]   ;;  %v3026_v6 = vld [vmem:[%s2874_s30 + $0x8] sm:$0xf]  ;;  %v3053_v19 = vld [vmem:[%s2874_s30 + $0x14] sm:$0xff]  }
  0x19   : > { %2359 = vmatpush3.bf16.msra.mxu0 %v2710_v7  ;;  %v260_v2 = vrot.slane %v258_v60, 1  ;;  %v514_v4 = vld [vmem:[%s2874_s30] sm:$0xe]  ;;  %v683_v5 = vld [vmem:[%s2874_s30 + $0x4] sm:$0xe]  ;;  %v2746_v20 = vld [vmem:[%s3459_s1 + $0x130] sm:$0xff]  }
  0x1a   : > { %2395 = vmatpush3.bf16.msra.mxu1 %v2711_v8  ;;  %2360 = vmatprep.subr.bf16.mxu0 %v2807_v1  ;;  %v253_v58 = vsel %vm217_vm1, %v248_v54, %v252_v55  ;;  %v256_v0 = vor.u32 %v254_v59, %v252_v55  ;;  %v2015_v8 = vcombine.low %v514_v4, %v2886_v12  ;;  %v537_v12 = vrot.slane %v2893_v15, 1  ;;  %v2749_v25 = vld [vmem:[%s3459_s1 + $0x128] sm:$0xff]   ;;  %v2752_v30 = vld [vmem:[%s3459_s1 + $0x120] sm:$0xff]   ;;  %v2759_v41 = vld [vmem:[%s3459_s1 + $0x150] sm:$0xff]  }
  0x1b   : > { %2396 = vmatprep.subr.bf16.mxu1 %v2807_v1  ;;  %v3106_v36 = vld [vmem:[%s2874_s30 + $0x24] sm:$0xff]   ;;  %v2761_v43 = vld [vmem:[%s2874_s30 + $0x2c] ss:$0 sps:$4 sm:$0x11]  }
  0x1c   : > { %v261_v7 = vsel %vm217_vm1, %v256_v0, %v260_v2  ;;  %v536_v11 = vrot.slane %v2015_v8, 1  ;;  %v2762_v46 = vld [vmem:[%s3459_s1 + $0x148] sm:$0xff]   ;;  %v2764_v54 = vld [vmem:[%s3459_s1 + $0x140] sm:$0xff]   ;;  %v926_v2 = vshrl.u32 %v3053_v19, 16 }
  0x1d   : > { %2361 = vmatpush3.bf16.msra.mxu0 %v2712_v9  ;;  %v3032_v9 = vcombine.low %v683_v5, %v3026_v6  ;;  %v1097_v55 = vld [vmem:[%s2874_s30 + $0x4] sm:$0xc] }
  0x1e   : > { %2397 = vmatpush3.bf16.msra.mxu1 %v2713_v10  ;;  %2362 = vmatprep.subr.bf16.mxu0 %v2807_v1  ;;  %v3035_v10 = vld [vmem:[%s2874_s30 + $0xc] sm:$0xff]   ;;  %v928_v8 = vrot.slane %v926_v2, 1 }
  0x1f   : > { %2398 = vmatprep.subr.bf16.mxu1 %v2807_v1  ;;  %v917_v50 = vshrl.u32 %v3035_v10, 16  ;;  %v920_v51 = vshll.u32 %v3035_v10, 16  ;;  %v1120_v5 = vrot.slane %v3035_v10, 2 }
  0x21   : > { %2363 = vmatpush3.bf16.msra.mxu0 %v2714_v13  ;;  %v739_v13 = vrot.slane %v3032_v9, 1  ;;  %v919_v59 = vrot.slane %v917_v50, 1  ;;  %v922_v60 = vrot.slane %v920_v51, 2  ;;  %v3251_v51 = vld [vmem:[%s2874_s30 + $0x10] sm:$0xff]  }
  0x22   : > { %2399 = vmatpush3.bf16.msra.mxu1 %v2715_v16  ;;  %2364 = vmatprep.subr.bf16.mxu0 %v2807_v1  ;;  %v538_v16 = vsel %vm535_vm2, %v536_v11, %v537_v12 }
  0x23   : > { %2400 = vmatprep.subr.bf16.mxu1 %v2807_v1  ;;  %v923_v0 = vor.u32 %v922_v60, %v919_v59  ;;  %v1503_v59 = vshll.u32 %v3251_v51, 16  ;;  %v2782_v60 = vld [vmem:[%s3459_s1 + $0x1c0] sm:$0xff]  }
  0x25   : > { %2365 = vmatpush3.bf16.msra.mxu0 %v2716_v18 }
  0x26   : > { %2401 = vmatpush3.bf16.msra.mxu1 %v2717_v22  ;;  %2366 = vmatprep.subr.bf16.mxu0 %v2807_v1  ;;  %v742_v22 = vrot.slane %v3053_v19, 1 }
  0x27   : > { %2402 = vmatprep.subr.bf16.mxu1 %v2807_v1 }
  0x29   : > { %2367 = vmatpush3.bf16.msra.mxu0 %v2718_v23  ;;  %v2750_v23 = vld [vmem:[%s3459_s1 + $0x170] sm:$0xff]  }
  0x2a   : > { %2403 = vmatpush3.bf16.msra.mxu1 %v2719_v24  ;;  %2424 = vmatprep.subr.bf16.mxu0 %v2807_v1  ;;  %v540_v24 = vsel %vm535_vm2, %v537_v12, %v539_v21  ;;  %v2768_v12 = vld [vmem:[%s3459_s1 + $0x1f8] sm:$0xff]  }
  0x2b   : > { %2460 = vmatprep.subr.bf16.mxu1 %v2807_v1 }
  0x2c   : > { %2369 = vmatmul.mubr.bf16.vlgmr.msra.gmra.mxu0 %v229_v29  ;;  %v541_v29 = vrot.slane %v2932_v33, 1 }
  0x2d   : > { %2405 = vmatmul.mubr.bf16.vlgmr.msra.gmra.mxu1 %v1977_v14  ;;  %2425 = vmatpush3.bf16.msra.mxu0 %v2722_v28  ;;  %v740_v14 = vrot.slane %v3035_v10, 1  ;;  %v2753_v28 = vld [vmem:[%s3459_s1 + $0x168] sm:$0xff]   ;;  %v2767_v10 = vld [vmem:[%s3459_s1 + $0x1b0] sm:$0xff]  }
  0x2e   : > { %2426 = vmatprep.subr.bf16.mxu0 %v2807_v1  ;;  %2372 = vmatprep.mubr.msk.bf16.mxu0 %vm2808_vm0, %v2807_v1 }
  0x2f   : > { %2408 = vmatprep.mubr.msk.bf16.mxu1 %vm2808_vm0, %v2807_v1  ;;  %2461 = vmatpush3.bf16.msra.mxu1 %v2725_v32  ;;  %v741_v18 = vsel %vm535_vm2, %v739_v13, %v740_v14  ;;  %v743_v26 = vsel %vm535_vm2, %v740_v14, %v742_v22  ;;  %v2755_v32 = vld [vmem:[%s3459_s1 + $0x160] sm:$0xff]  }
  0x30   : > { %2462 = vmatprep.subr.bf16.mxu1 %v2807_v1 }
  0x31   : > { %2427 = vmatpush3.bf16.msra.mxu0 %v2723_v34  ;;  %v2754_v34 = vld [vmem:[%s3459_s1 + $0x118] sm:$0xff]  }
  0x32   : > { %2428 = vmatprep.subr.bf16.mxu0 %v2807_v1 }
  0x33   : > { %2463 = vmatpush3.bf16.msra.mxu1 %v2727_v37  ;;  %v2757_v37 = vld [vmem:[%s3459_s1 + $0x158] sm:$0xff]  }
  0x34   : > { %2373 = vmatmul.mubr.bf16.gmra.mxu0 %v237_v39  ;;  %2464 = vmatprep.subr.bf16.mxu1 %v2807_v1  ;;  %v2758_v39 = vld [vmem:[%s3459_s1 + $0x110] sm:$0xff]  }
  0x35   : > { %2409 = vmatmul.mubr.bf16.gmra.mxu1 %v2893_v15  ;;  %2429 = vmatpush3.bf16.msra.mxu0 %v2726_v40  ;;  %v2748_v15 = vld [vmem:[%s3459_s1 + $0x178] sm:$0xff]   ;;  %v746_v40 = vrot.slane %v3106_v36, 1 }
  0x36   : > { %2376 = vmatprep.mubr.msk.bf16.mxu0 %vm2808_vm0, %v2807_v1  ;;  %2412 = vmatprep.mubr.msk.bf16.mxu1 %vm2808_vm0, %v2807_v1 }
  0x37   : > { %2430 = vmatprep.subr.bf16.mxu0 %v2807_v1  ;;  %2465 = vmatpush3.bf16.msra.mxu1 %v2730_v42  ;;  %v544_v42 = vsel %vm535_vm2, %v541_v29, %v543_v38 }
  0x38   : > { %2466 = vmatprep.subr.bf16.mxu1 %v2807_v1 }
  0x39   : > { %2431 = vmatpush3.bf16.msra.mxu0 %v2729_v44 }
  0x3a   : > { %2432 = vmatprep.subr.bf16.mxu0 %v2807_v1 }
  0x3b   : > { %2467 = vmatpush3.bf16.msra.mxu1 %v2732_v47  ;;  %v545_v47 = vrot.slane %v2984_v53, 1  ;;  %v2763_v53 = vld [vmem:[%s3459_s1 + $0x100] sm:$0xff]  }
  0x3c   : > { %2377 = vmatmul.mubr.bf16.gmra.mxu0 %v245_v49  ;;  %2468 = vmatprep.subr.bf16.mxu1 %v2807_v1  ;;  %v912_v49 = vshll.u32 %v3032_v9, 16 }
  0x3d   : > { %2413 = vmatmul.mubr.bf16.gmra.mxu1 %v2916_v27  ;;  %2433 = vmatpush3.bf16.msra.mxu0 %v2731_v48  ;;  %v3079_v27 = vld [vmem:[%s2874_s30 + $0x1c] sm:$0xff]   ;;  %v909_v48 = vshrl.u32 %v3032_v9, 16 }
  0x3e   : > { %2380 = vmatprep.mubr.msk.bf16.mxu0 %vm2808_vm0, %v2807_v1  ;;  %2416 = vmatprep.mubr.msk.bf16.mxu1 %vm2808_vm0, %v2807_v1  ;;  %v744_v31 = vrot.slane %v3079_v27, 1  ;;  %v935_v14 = vshrl.u32 %v3079_v27, 16 }
  0x3f   : > { %2434 = vmatprep.subr.bf16.mxu0 %v2807_v1  ;;  %2469 = vmatpush3.bf16.msra.mxu1 %v2734_v52  ;;  %v748_v52 = vrot.slane %v2761_v43, 1  ;;  %v2777_v43 = vld [vmem:[%s3459_s1 + $0x1d0] sm:$0xff]  }
  0x40   : > { %2470 = vmatprep.subr.bf16.mxu1 %v2807_v1  ;;  %v745_v35 = vsel %vm535_vm2, %v742_v22, %v744_v31  ;;  %v747_v44 = vsel %vm535_vm2, %v744_v31, %v746_v40 }
  0x41   : > { %2435 = vmatpush3.bf16.msra.mxu0 %v2735_v56  ;;  %v546_v56 = vsel %vm535_vm2, %v543_v38, %v545_v47 }
  0x42   : > { %2436 = vmatprep.subr.bf16.mxu0 %v2807_v1 }
  0x43   : > { %2471 = vmatpush3.bf16.msra.mxu1 %v2736_v57  ;;  %v911_v57 = vrot.slane %v909_v48, 1 }
  0x44   : > { %2381 = vmatmul.mubr.bf16.gmra.mxu0 %v253_v58  ;;  %2472 = vmatprep.subr.bf16.mxu1 %v2807_v1  ;;  %v914_v58 = vrot.slane %v912_v49, 2 }
  0x45   : > { %2417 = vmatmul.mubr.bf16.gmra.mxu1 %v2932_v33  ;;  %2384 = vmatprep.mubr.msk.bf16.mxu0 %vm2808_vm0, %v2807_v1  ;;  %v542_v33 = vsel %vm535_vm2, %v539_v21, %v541_v29  ;;  %v937_v21 = vrot.slane %v935_v14, 1  ;;  %v1124_v29 = vrot.slane %v3079_v27, 2 }
  0x46   : > { %2420 = vmatprep.mubr.msk.bf16.mxu1 %vm2808_vm0, %v2807_v1  ;;  %2437 = vmatpush3.bf16.msra.mxu0 %v2737_v61  ;;  %v749_v61 = vsel %vm535_vm2, %v746_v40, %v748_v52  ;;  %v2780_v52 = vld [vmem:[%s3459_s1 + $0x1c8] sm:$0xff]  }
  0x47   : > { %2473 = vmatpush3.bf16.msra.mxu1 %v2739_v62  ;;  %2438 = vmatprep.subr.bf16.mxu0 %v2807_v1  ;;  %v2095_v62 = vcombine.low %v1097_v55, %v3026_v6  ;;  %v2781_v55 = vld [vmem:[%s3459_s1 + $0x180] sm:$0xff]  }
  0x48   : > { %2474 = vmatprep.subr.bf16.mxu1 %v2807_v1 }
  0x49   : > { %v1119_v4 = vrot.slane %v2095_v62, 2 }
  0x4a   : > { %2439 = vmatpush3.bf16.msra.mxu0 %v2740_v63  ;;  %v915_v63 = vor.u32 %v914_v58, %v911_v57  ;;  %v1500_v58 = vshrl.u32 %v3251_v51, 16 }
  0x4b   : > { %2475 = vmatpush3.bf16.msra.mxu1 %v2741_v3  ;;  %2496 = vmatprep.subr.bf16.mxu0 %v2807_v1  ;;  %v929_v3 = vshll.u32 %v3053_v19, 16  ;;  %v1121_v11 = vsel %vm1118_vm4, %v1119_v4, %v1120_v5  ;;  %v3274_v4 = vld [vmem:[%s2874_s30 + $0x18] sm:$0xff]  }
  0x4c   : > { %2385 = vmatmul.mubr.bf16.gmra.mxu0 %v261_v7  ;;  %2532 = vmatprep.subr.bf16.mxu1 %v2807_v1  ;;  %v924_v6 = vsel %vm907_vm3, %v915_v63, %v923_v0  ;;  %v2766_v7 = vld [vmem:[%s3459_s1 + $0x1b8] sm:$0xff]   ;;  %v1502_v2 = vrot.slane %v1500_v58, 2 }
  0x4d   : > { %2421 = vmatmul.mubr.bf16.gmra.mxu1 %v2961_v45  ;;  %2440 = vmatprep.mubr.msk.bf16.mxu0 %vm2808_vm0, %v2807_v1  ;;  %v2760_v45 = vld [vmem:[%s3459_s1 + $0x108] sm:$0xff]   ;;  %v931_v9 = vrot.slane %v929_v3, 2  ;;  %v1505_v3 = vrot.slane %v1503_v59, 3 }
  0x4e   : > { %2476 = vmatprep.mubr.msk.bf16.mxu1 %vm2808_vm0, %v2807_v1 }
  0x4f   : > { %v932_v13 = vor.u32 %v931_v9, %v928_v8  ;;  %v1506_v8 = vor.u32 %v1505_v3, %v1502_v2  ;;  %v1509_v9 = vshrl.u32 %v3274_v4, 16 }
  0x51   : > { %v1511_v14 = vrot.slane %v1509_v9, 2 }
  0x54   : > { %2441 = vmatmul.mubr.bf16.vlgmr.msra.gmra.mxu0 %v538_v16  ;;  %v938_v16 = vshll.u32 %v3079_v27, 16 }
  0x55   : > { %2477 = vmatmul.mubr.bf16.vlgmr.msra.gmra.mxu1 %v741_v18  ;;  %2497 = vmatpush3.bf16.msra.mxu0 %v2745_v17  ;;  %v1122_v17 = vrot.slane %v3053_v19, 2  ;;  %v2770_v18 = vld [vmem:[%s3459_s1 + $0x1f0] sm:$0xff]  }
  0x56   : > { %2498 = vmatprep.subr.bf16.mxu0 %v2807_v1  ;;  %2444 = vmatprep.mubr.msk.bf16.mxu0 %vm2808_vm0, %v2807_v1  ;;  %v940_v22 = vrot.slane %v938_v16, 2 }
  0x57   : > { %2480 = vmatprep.mubr.msk.bf16.mxu1 %vm2808_vm0, %v2807_v1  ;;  %2533 = vmatpush3.bf16.msra.mxu1 %v2748_v15  ;;  %v933_v15 = vsel %vm907_vm3, %v923_v0, %v932_v13  ;;  %v1123_v19 = vsel %vm1118_vm4, %v1120_v5, %v1122_v17  ;;  %v1125_v27 = vsel %vm1118_vm4, %v1122_v17, %v1124_v29  ;;  %v3291_v17 = vld [vmem:[%s2874_s30 + $0x20] sm:$0xff]  }
  0x58   : > { %2534 = vmatprep.subr.bf16.mxu1 %v2807_v1 }
  0x59   : > { %2499 = vmatpush3.bf16.msra.mxu0 %v2746_v20  ;;  %v2769_v20 = vld [vmem:[%s3459_s1 + $0x1a8] sm:$0xff]  }
  0x5a   : > { %2500 = vmatprep.subr.bf16.mxu0 %v2807_v1 }
  0x5b   : > { %2535 = vmatpush3.bf16.msra.mxu1 %v2750_v23  ;;  %v2772_v23 = vld [vmem:[%s3459_s1 + $0x1e8] sm:$0xff]  }
  0x5c   : > { %2445 = vmatmul.mubr.bf16.gmra.mxu0 %v540_v24  ;;  %2536 = vmatprep.subr.bf16.mxu1 %v2807_v1  ;;  %v941_v24 = vor.u32 %v940_v22, %v937_v21  ;;  %v1518_v21 = vshrl.u32 %v3291_v17, 16  ;;  %v1521_v22 = vshll.u32 %v3291_v17, 16 }
  0x5d   : > { %2481 = vmatmul.mubr.bf16.gmra.mxu1 %v743_v26  ;;  %2501 = vmatpush3.bf16.msra.mxu0 %v2749_v25  ;;  %v2771_v25 = vld [vmem:[%s3459_s1 + $0x1a0] sm:$0xff]   ;;  %v944_v26 = vshrl.u32 %v3106_v36, 16 }
  0x5e   : > { %2448 = vmatprep.mubr.msk.bf16.mxu0 %vm2808_vm0, %v2807_v1  ;;  %2484 = vmatprep.mubr.msk.bf16.mxu1 %vm2808_vm0, %v2807_v1  ;;  %v942_v31 = vsel %vm907_vm3, %v932_v13, %v941_v24 }
  0x5f   : > { %2502 = vmatprep.subr.bf16.mxu0 %v2807_v1  ;;  %2537 = vmatpush3.bf16.msra.mxu1 %v2753_v28  ;;  %v947_v28 = vshll.u32 %v3106_v36, 16 }
  0x60   : > { %2538 = vmatprep.subr.bf16.mxu1 %v2807_v1 }
  0x61   : > { %2503 = vmatpush3.bf16.msra.mxu0 %v2752_v30  ;;  %v2774_v30 = vld [vmem:[%s3459_s1 + $0x1e0] sm:$0xff]  }
  0x62   : > { %2504 = vmatprep.subr.bf16.mxu0 %v2807_v1 }
  0x63   : > { %2539 = vmatpush3.bf16.msra.mxu1 %v2755_v32  ;;  %v2773_v32 = vld [vmem:[%s3459_s1 + $0x198] sm:$0xff]  }
  0x64   : > { %2449 = vmatmul.mubr.bf16.gmra.mxu0 %v542_v33  ;;  %2540 = vmatprep.subr.bf16.mxu1 %v2807_v1  ;;  %v946_v33 = vrot.slane %v944_v26, 1  ;;  %v1523_v26 = vrot.slane %v1521_v22, 3 }
  0x65   : > { %2485 = vmatmul.mubr.bf16.gmra.mxu1 %v745_v35  ;;  %2505 = vmatpush3.bf16.msra.mxu0 %v2754_v34  ;;  %v949_v34 = vrot.slane %v947_v28, 2  ;;  %v2779_v35 = vld [vmem:[%s2874_s30 + $0x2c] ss:$0 sps:$4 sm:$0x33]  }
  0x66   : > { %2452 = vmatprep.mubr.msk.bf16.mxu0 %vm2808_vm0, %v2807_v1  ;;  %2488 = vmatprep.mubr.msk.bf16.mxu1 %vm2808_vm0, %v2807_v1  ;;  %v953_v40 = vshrl.u32 %v2779_v35, 16  ;;  %v3312_v28 = vld [vmem:[%s2874_s30 + $0x28] sm:$0xff]  }
  0x67   : > { %2506 = vmatprep.subr.bf16.mxu0 %v2807_v1  ;;  %2541 = vmatpush3.bf16.msra.mxu1 %v2757_v37  ;;  %v2775_v37 = vld [vmem:[%s3459_s1 + $0x1d8] sm:$0xff]   ;;  %v950_v38 = vor.u32 %v949_v34, %v946_v33  ;;  %v1530_v33 = vshll.u32 %v3312_v28, 16 }
  0x68   : > { %2542 = vmatprep.subr.bf16.mxu1 %v2807_v1  ;;  %v955_v47 = vrot.slane %v953_v40, 1  ;;  %v1329_v40 = vrot.slane %v3312_v28, 2 }
  0x69   : > { %2507 = vmatpush3.bf16.msra.mxu0 %v2758_v39  ;;  %v2776_v39 = vld [vmem:[%s3459_s1 + $0x190] sm:$0xff]  }
  0x6a   : > { %2508 = vmatprep.subr.bf16.mxu0 %v2807_v1 }
  0x6b   : > { %2543 = vmatpush3.bf16.msra.mxu1 %v2759_v41  ;;  %v956_v41 = vshll.u32 %v2779_v35, 16 }
  0x6c   : > { %2453 = vmatmul.mubr.bf16.gmra.mxu0 %v544_v42  ;;  %2544 = vmatprep.subr.bf16.mxu1 %v2807_v1  ;;  %v1126_v42 = vrot.slane %v3106_v36, 2  ;;  %v2778_v36 = vld [vmem:[%s3459_s1 + $0x188] sm:$0xff]  }
  0x6d   : > { %2489 = vmatmul.mubr.bf16.gmra.mxu1 %v747_v44  ;;  %2456 = vmatprep.mubr.msk.bf16.mxu0 %vm2808_vm0, %v2807_v1  ;;  %v1266_v44 = vld [vmem:[%s2874_s30 + $0x8] sm:$0xc]  ;;  %v958_v48 = vrot.slane %v956_v41, 2  ;;  %v2793_v41 = vld [vmem:[%s3459_s1 + $0x210] sm:$0xff]  }
  0x6e   : > { %2492 = vmatprep.mubr.msk.bf16.mxu1 %vm2808_vm0, %v2807_v1  ;;  %2509 = vmatpush3.bf16.msra.mxu0 %v2760_v45  ;;  %v3240_v45 = vld [vmem:[%s2874_s30 + $0xc] sm:$0xf]  ;;  %v1127_v49 = vsel %vm1118_vm4, %v1124_v29, %v1126_v42  ;;  %v1327_v29 = vrot.slane %v3291_v17, 2 }
  0x6f   : > { %2545 = vmatpush3.bf16.msra.mxu1 %v2762_v46  ;;  %2510 = vmatprep.subr.bf16.mxu0 %v2807_v1  ;;  %v951_v46 = vsel %vm907_vm3, %v941_v24, %v950_v38  ;;  %v2120_v50 = vcombine.low %v1266_v44, %v3240_v45 }
  0x70   : > { %2546 = vmatprep.subr.bf16.mxu1 %v2807_v1 }
  0x71   : > { %v1495_v57 = vshll.u32 %v2120_v50, 16  ;;  %v1322_v5 = vrot.slane %v2120_v50, 2 }
  0x72   : > { %2511 = vmatpush3.bf16.msra.mxu0 %v2763_v53  ;;  %v959_v53 = vor.u32 %v958_v48, %v955_v47  ;;  %v2795_v47 = vld [vmem:[%s2874_s30 + $0x30] ss:$0 sps:$4 sm:$0x33]  }
  0x73   : > { %2547 = vmatpush3.bf16.msra.mxu1 %v2764_v54  ;;  %2568 = vmatprep.subr.bf16.mxu0 %v2807_v1  ;;  %v1128_v54 = vrot.slane %v2779_v35, 2  ;;  %v1497_v0 = vrot.slane %v1495_v57, 3  ;;  %v2791_v35 = vld [vmem:[%s3459_s1 + $0x218] sm:$0xff]  }
  0x74   : > { %2457 = vmatmul.mubr.bf16.gmra.mxu0 %v546_v56  ;;  %2604 = vmatprep.subr.bf16.mxu1 %v2807_v1  ;;  %v1492_v56 = vshrl.u32 %v2120_v50, 16 }
  0x75   : > { %2493 = vmatmul.mubr.bf16.gmra.mxu1 %v749_v61  ;;  %2512 = vmatprep.mubr.msk.bf16.mxu0 %vm2808_vm0, %v2807_v1  ;;  %v960_v61 = vsel %vm907_vm3, %v950_v38, %v959_v53  ;;  %v1129_v62 = vsel %vm1118_vm4, %v1126_v42, %v1128_v54  ;;  %v1532_v38 = vrot.slane %v1530_v33, 3  ;;  %v2797_v54 = vld [vmem:[%s3459_s1 + $0x200] sm:$0xff]  }
  0x76   : > { %2548 = vmatprep.mubr.msk.bf16.mxu1 %vm2808_vm0, %v2807_v1  ;;  %v1494_v63 = vrot.slane %v1492_v56, 2 }
  0x7c   : > { %2513 = vmatmul.mubr.bf16.vlgmr.msra.gmra.mxu0 %v924_v6  ;;  %v1323_v6 = vrot.slane %v3251_v51, 2 }
  0x7d   : > { %2549 = vmatmul.mubr.bf16.vlgmr.msra.gmra.mxu1 %v1121_v11  ;;  %2569 = vmatpush3.bf16.msra.mxu0 %v2766_v7  ;;  %v1498_v7 = vor.u32 %v1497_v0, %v1494_v63  ;;  %v1512_v11 = vshll.u32 %v3274_v4, 16  ;;  %v1705_v0 = vrot.slane %v3274_v4, 3 }
  0x7e   : > { %2570 = vmatprep.subr.bf16.mxu0 %v2807_v1  ;;  %2516 = vmatprep.mubr.msk.bf16.mxu0 %vm2808_vm0, %v2807_v1 }
  0x7f   : > { %2552 = vmatprep.mubr.msk.bf16.mxu1 %vm2808_vm0, %v2807_v1  ;;  %2605 = vmatpush3.bf16.msra.mxu1 %v2768_v12  ;;  %v1324_v12 = vsel %vm1118_vm4, %v1322_v5, %v1323_v6  ;;  %v1507_v13 = vsel %vm1490_vm5, %v1498_v7, %v1506_v8  ;;  %v1514_v16 = vrot.slane %v1512_v11, 3 }
  0x80   : > { %2606 = vmatprep.subr.bf16.mxu1 %v2807_v1 }
  0x81   : > { %2571 = vmatpush3.bf16.msra.mxu0 %v2767_v10  ;;  %v2785_v10 = vld [vmem:[%s3459_s1 + $0x238] sm:$0xff]  }
  0x82   : > { %2572 = vmatprep.subr.bf16.mxu0 %v2807_v1 }
  0x83   : > { %2607 = vmatpush3.bf16.msra.mxu1 %v2770_v18  ;;  %v2786_v18 = vld [vmem:[%s3459_s1 + $0x230] sm:$0xff]  }
  0x84   : > { %2517 = vmatmul.mubr.bf16.gmra.mxu0 %v933_v15  ;;  %2608 = vmatprep.subr.bf16.mxu1 %v2807_v1  ;;  %v1325_v15 = vrot.slane %v3274_v4, 2 }
  0x85   : > { %2553 = vmatmul.mubr.bf16.gmra.mxu1 %v1123_v19  ;;  %2573 = vmatpush3.bf16.msra.mxu0 %v2769_v20  ;;  %v1515_v20 = vor.u32 %v1514_v16, %v1511_v14 }
  0x86   : > { %2520 = vmatprep.mubr.msk.bf16.mxu0 %vm2808_vm0, %v2807_v1  ;;  %2556 = vmatprep.mubr.msk.bf16.mxu1 %vm2808_vm0, %v2807_v1  ;;  %v1326_v19 = vsel %vm1118_vm4, %v1323_v6, %v1325_v15  ;;  %v1328_v34 = vsel %vm1118_vm4, %v1325_v15, %v1327_v29 }
  0x87   : > { %2574 = vmatprep.subr.bf16.mxu0 %v2807_v1  ;;  %2609 = vmatpush3.bf16.msra.mxu1 %v2772_v23  ;;  %v2788_v23 = vld [vmem:[%s3459_s1 + $0x228] sm:$0xff]   ;;  %v1516_v24 = vsel %vm1490_vm5, %v1506_v8, %v1515_v20 }
  0x88   : > { %2610 = vmatprep.subr.bf16.mxu1 %v2807_v1 }
  0x89   : > { %2575 = vmatpush3.bf16.msra.mxu0 %v2771_v25  ;;  %v1520_v25 = vrot.slane %v1518_v21, 2 }
  0x8a   : > { %2576 = vmatprep.subr.bf16.mxu0 %v2807_v1 }
  0x8b   : > { %2611 = vmatpush3.bf16.msra.mxu1 %v2774_v30  ;;  %v2790_v30 = vld [vmem:[%s3459_s1 + $0x220] sm:$0xff]  }
  0x8c   : > { %2521 = vmatmul.mubr.bf16.gmra.mxu0 %v942_v31  ;;  %2612 = vmatprep.subr.bf16.mxu1 %v2807_v1  ;;  %v1524_v31 = vor.u32 %v1523_v26, %v1520_v25 }
  0x8d   : > { %2557 = vmatmul.mubr.bf16.gmra.mxu1 %v1125_v27  ;;  %2577 = vmatpush3.bf16.msra.mxu0 %v2773_v32  ;;  %v1527_v32 = vshrl.u32 %v3312_v28, 16 }
  0x8e   : > { %2524 = vmatprep.mubr.msk.bf16.mxu0 %vm2808_vm0, %v2807_v1  ;;  %2560 = vmatprep.mubr.msk.bf16.mxu1 %vm2808_vm0, %v2807_v1  ;;  %v1525_v27 = vsel %vm1490_vm5, %v1515_v20, %v1524_v31 }
  0x8f   : > { %2578 = vmatprep.subr.bf16.mxu0 %v2807_v1  ;;  %2613 = vmatpush3.bf16.msra.mxu1 %v2775_v37  ;;  %v1529_v37 = vrot.slane %v1527_v32, 2 }
  0x90   : > { %2614 = vmatprep.subr.bf16.mxu1 %v2807_v1 }
  0x91   : > { %2579 = vmatpush3.bf16.msra.mxu0 %v2776_v39  ;;  %v3334_v39 = vld [vmem:[%s2874_s30 + $0x30] ss:$0 sps:$4 sm:$0x77]   ;;  %v1533_v42 = vor.u32 %v1532_v38, %v1529_v37 }
  0x92   : > { %2580 = vmatprep.subr.bf16.mxu0 %v2807_v1  ;;  %v1539_v44 = vshll.u32 %v3334_v39, 16 }
  0x93   : > { %2615 = vmatpush3.bf16.msra.mxu1 %v2777_v43  ;;  %v1536_v43 = vshrl.u32 %v3334_v39, 16  ;;  %v1534_v48 = vsel %vm1490_vm5, %v1524_v31, %v1533_v42 }
  0x94   : > { %2525 = vmatmul.mubr.bf16.gmra.mxu0 %v951_v46  ;;  %2616 = vmatprep.subr.bf16.mxu1 %v2807_v1  ;;  %v1330_v46 = vsel %vm1118_vm4, %v1327_v29, %v1329_v40  ;;  %v1541_v50 = vrot.slane %v1539_v44, 3 }
  0x95   : > { %2561 = vmatmul.mubr.bf16.gmra.mxu1 %v1127_v49  ;;  %2528 = vmatprep.mubr.msk.bf16.mxu0 %vm2808_vm0, %v2807_v1  ;;  %v2794_v49 = vld [vmem:[%s3459_s1 + $0x208] sm:$0xff]  }
  0x96   : > { %2564 = vmatprep.mubr.msk.bf16.mxu1 %vm2808_vm0, %v2807_v1  ;;  %2581 = vmatpush3.bf16.msra.mxu0 %v2778_v36  ;;  %v1538_v36 = vrot.slane %v1536_v43, 2 }
  0x97   : > { %2617 = vmatpush3.bf16.msra.mxu1 %v2780_v52  ;;  %2582 = vmatprep.subr.bf16.mxu0 %v2807_v1  ;;  %v1331_v52 = vrot.slane %v2795_v47, 2 }
  0x98   : > { %2618 = vmatprep.subr.bf16.mxu1 %v2807_v1  ;;  %v1542_v53 = vor.u32 %v1541_v50, %v1538_v36 }
  0x99   : > { %v1332_v56 = vsel %vm1118_vm4, %v1329_v40, %v1331_v52 }
  0x9a   : > { %2583 = vmatpush3.bf16.msra.mxu0 %v2781_v55  ;;  %v1680_v55 = vld [vmem:[%s2874_s30 + $0x8] sm:$0x8]  ;;  %v1543_v58 = vsel %vm1490_vm5, %v1533_v42, %v1542_v53  ;;  %s2693_s30 = smul.u32 40, %s3462_s10 }
  0x9b   : > { %2619 = vmatpush3.bf16.msra.mxu1 %v2782_v60  ;;  %2640 = vmatprep.subr.bf16.mxu0 %v2807_v1  ;;  %v2175_v57 = vcombine.low %v1680_v55, %v3240_v45  ;;  %v1703_v60 = vrot.slane %v3251_v51, 3  ;;  %v1709_v45 = vrot.slane %v3312_v28, 3  ;;  %v1711_v51 = vrot.slane %v3334_v39, 3 }
  0x9c   : > { %2529 = vmatmul.mubr.bf16.gmra.mxu0 %v960_v61  ;;  %2676 = vmatprep.subr.bf16.mxu1 %v2807_v1  ;;  %v1707_v61 = vrot.slane %v3291_v17, 3  ;;  %s3438_s8 = scalar_lea.vmem %s3460_s2, %s2693_s30 }
  0x9d   : > { %2565 = vmatmul.mubr.bf16.gmra.mxu1 %v1129_v62  ;;  %2584 = vmatprep.mubr.msk.bf16.mxu0 %vm2808_vm0, %v2807_v1  ;;  %v1702_v59 = vrot.slane %v2175_v57, 3  ;;  %v1706_v2 = vsel %vm1701_vm6, %v1703_v60, %v1705_v0  ;;  %v1712_v3 = vsel %vm1701_vm6, %v1709_v45, %v1711_v51 }
  0x9e   : > { %2620 = vmatprep.mubr.msk.bf16.mxu1 %vm2808_vm0, %v2807_v1  ;;  %v1710_v63 = vsel %vm1701_vm6, %v1707_v61, %v1709_v45  ;;  %v1708_v5 = vsel %vm1701_vm6, %v1705_v0, %v1707_v61 }
  0x9f   : > { %v1704_v62 = vsel %vm1701_vm6, %v1702_v59, %v1703_v60 }
  0xa4   : > { %2585 = vmatmul.mubr.bf16.vlgmr.msra.gmra.mxu0 %v1324_v12 }
  0xa5   : > { %2621 = vmatmul.mubr.bf16.vlgmr.msra.gmra.mxu1 %v1507_v13  ;;  %2641 = vmatpush3.bf16.msra.mxu0 %v2785_v10 }
  0xa6   : > { %2642 = vmatprep.subr.bf16.mxu0 %v2807_v1  ;;  %2588 = vmatprep.mubr.msk.bf16.mxu0 %vm2808_vm0, %v2807_v1 }
  0xa7   : > { %2624 = vmatprep.mubr.msk.bf16.mxu1 %vm2808_vm0, %v2807_v1  ;;  %2684 = vmatpush3.bf16.msra.mxu1 %v2785_v10 }
  0xa8   : > { %2677 = vmatprep.subr.bf16.mxu1 %v2807_v1 }
  0xa9   : > { %2643 = vmatpush3.bf16.msra.mxu0 %v2786_v18 }
  0xaa   : > { %2644 = vmatprep.subr.bf16.mxu0 %v2807_v1 }
  0xab   : > { %2685 = vmatpush3.bf16.msra.mxu1 %v2786_v18 }
  0xac   : > { %2589 = vmatmul.mubr.bf16.gmra.mxu0 %v1326_v19  ;;  %2678 = vmatprep.subr.bf16.mxu1 %v2807_v1 }
  0xad   : > { %2625 = vmatmul.mubr.bf16.gmra.mxu1 %v1516_v24  ;;  %2645 = vmatpush3.bf16.msra.mxu0 %v2788_v23 }
  0xae   : > { %2592 = vmatprep.mubr.msk.bf16.mxu0 %vm2808_vm0, %v2807_v1  ;;  %2628 = vmatprep.mubr.msk.bf16.mxu1 %vm2808_vm0, %v2807_v1 }
  0xaf   : > { %2646 = vmatprep.subr.bf16.mxu0 %v2807_v1  ;;  %2686 = vmatpush3.bf16.msra.mxu1 %v2788_v23 }
  0xb0   : > { %2679 = vmatprep.subr.bf16.mxu1 %v2807_v1 }
  0xb1   : > { %2647 = vmatpush3.bf16.msra.mxu0 %v2790_v30 }
  0xb2   : > { %2648 = vmatprep.subr.bf16.mxu0 %v2807_v1 }
  0xb3   : > { %2687 = vmatpush3.bf16.msra.mxu1 %v2790_v30 }
  0xb4   : > { %2593 = vmatmul.mubr.bf16.gmra.mxu0 %v1328_v34  ;;  %2680 = vmatprep.subr.bf16.mxu1 %v2807_v1 }
  0xb5   : > { %2629 = vmatmul.mubr.bf16.gmra.mxu1 %v1525_v27  ;;  %2649 = vmatpush3.bf16.msra.mxu0 %v2791_v35 }
  0xb6   : > { %2596 = vmatprep.mubr.msk.bf16.mxu0 %vm2808_vm0, %v2807_v1  ;;  %2632 = vmatprep.mubr.msk.bf16.mxu1 %vm2808_vm0, %v2807_v1 }
  0xb7   : > { %2688 = vmatpush3.bf16.msra.mxu1 %v2791_v35  ;;  %2650 = vmatprep.subr.bf16.mxu0 %v2807_v1 }
  0xb8   : > { %2681 = vmatprep.subr.bf16.mxu1 %v2807_v1 }
  0xb9   : > { %2651 = vmatpush3.bf16.msra.mxu0 %v2793_v41 }
  0xba   : > { %2652 = vmatprep.subr.bf16.mxu0 %v2807_v1 }
  0xbb   : > { %2689 = vmatpush3.bf16.msra.mxu1 %v2793_v41 }
  0xbc   : > { %2597 = vmatmul.mubr.bf16.gmra.mxu0 %v1330_v46  ;;  %2682 = vmatprep.subr.bf16.mxu1 %v2807_v1 }
  0xbd   : > { %2633 = vmatmul.mubr.bf16.gmra.mxu1 %v1534_v48  ;;  %2600 = vmatprep.mubr.msk.bf16.mxu0 %vm2808_vm0, %v2807_v1 }
  0xbe   : > { %2636 = vmatprep.mubr.msk.bf16.mxu1 %vm2808_vm0, %v2807_v1  ;;  %2653 = vmatpush3.bf16.msra.mxu0 %v2794_v49 }
  0xbf   : > { %2690 = vmatpush3.bf16.msra.mxu1 %v2794_v49  ;;  %2654 = vmatprep.subr.bf16.mxu0 %v2807_v1 }
  0xc0   : > { %2683 = vmatprep.subr.bf16.mxu1 %v2807_v1 }
  0xc2   : > { %2655 = vmatpush3.bf16.msra.mxu0 %v2797_v54 }
  0xc3   : > { %2691 = vmatpush3.bf16.msra.mxu1 %v2797_v54 }
  0xc4   : > { %2601 = vmatmul.mubr.bf16.gmra.mxu0 %v1332_v56 }
  0xc5   : > { %2637 = vmatmul.mubr.bf16.gmra.mxu1 %v1543_v58  ;;  %2656 = vmatprep.mubr.msk.bf16.mxu0 %vm2808_vm0, %v2807_v1 }
  0xc6   : > { %2668 = vmatprep.mubr.msk.bf16.mxu1 %vm2808_vm0, %v2807_v1 }
  0xcc   : > { %2657 = vmatmul.mubr.bf16.vlgmr.msra.gmra.mxu0 %v1704_v62 }
  0xcd   : > { %2669 = vmatmul.mubr.bf16.vlgmr.msra.gmra.mxu1 %v1710_v63  ;;  %2660 = vmatprep.mubr.msk.bf16.mxu0 %vm2808_vm0, %v2807_v1 }
  0xce   : > { %2672 = vmatprep.mubr.msk.bf16.mxu1 %vm2808_vm0, %v2807_v1 }
  0xd4   : > { %2661 = vmatmul.mubr.bf16.gmra.mxu0 %v1706_v2 }
  0xd5   : > { %2673 = vmatmul.mubr.bf16.gmra.mxu1 %v1712_v3  ;;  %2664 = vmatprep.mubr.msk.bf16.mxu0 %vm2808_vm0, %v2807_v1 }
  0xdc   : > { %2665 = vmatmul.mubr.bf16.gmra.mxu0 %v1708_v5 }
  0xec   : > { %v349_v6 = vpop.f32.mrf.mxu0 }
  0xed   : > { %v475_v7 = vpop.f32.mrf.mxu1 }
  0xee   : > { %v476_v4 = vadd.f32 %v475_v7, %v349_v6  ;;  %v2370_v8 = vpop.f32.mrf.mxu0 }
  0xef   : > { %v2406_v9 = vpop.f32.mrf.mxu1 }
  0xf0   : > { %v352_v11 = vpop.f32.mrf.mxu0 }
  0xf1   : > { %v478_v12 = vpop.f32.mrf.mxu1 }
  0xf2   : > { %v479_v10 = vadd.f32 %v478_v12, %v352_v11  ;;  %v2371_v13 = vpop.f32.mrf.mxu0 }
  0xf3   : > { %v2407_v14 = vpop.f32.mrf.mxu1 }
  0xf4   : > { %v357_v16 = vpop.f32.mrf.mxu0 }
  0xf5   : > { %v483_v17 = vpop.f32.mrf.mxu1 }
  0xf6   : > { %v484_v18 = vadd.f32 %v483_v17, %v357_v16  ;;  %v2374_v15 = vpop.f32.mrf.mxu0 }
  0xf7   : > { %v2410_v20 = vpop.f32.mrf.mxu1 }
  0xf8   : > { %v360_v21 = vpop.f32.mrf.mxu0 }
  0xf9   : > { %v486_v1 = vpop.f32.mrf.mxu1 }
  0xfa   : > { %v487_v22 = vadd.f32 %v486_v1, %v360_v21  ;;  %v2375_v19 = vpop.f32.mrf.mxu0 }
  0xfb   : > { %v2411_v23 = vpop.f32.mrf.mxu1 }
  0xfc   : > { %v365_v24 = vpop.f32.mrf.mxu0 }
  0xfd   : > { %v491_v25 = vpop.f32.mrf.mxu1 }
  0xfe   : > { %v492_v26 = vadd.f32 %v491_v25, %v365_v24  ;;  %v2378_v28 = vpop.f32.mrf.mxu0 }
  0xff   : > { %v2414_v29 = vpop.f32.mrf.mxu1 }
 0x100   : > { %v368_v30 = vpop.f32.mrf.mxu0 }
 0x101   : > { %v494_v31 = vpop.f32.mrf.mxu1 }
 0x102   : > { %v495_v32 = vadd.f32 %v494_v31, %v368_v30  ;;  %v2379_v33 = vpop.f32.mrf.mxu0 }
 0x103   : > { %v2415_v34 = vpop.f32.mrf.mxu1 }
 0x104   : > { %v373_v35 = vpop.f32.mrf.mxu0 }
 0x105   : > { %v499_v27 = vpop.f32.mrf.mxu1 }
 0x106   : > { %v500_v37 = vadd.f32 %v499_v27, %v373_v35  ;;  %v2382_v38 = vpop.f32.mrf.mxu0 }
 0x107   : > { %v2418_v39 = vpop.f32.mrf.mxu1 }
 0x108   : > { %v376_v40 = vpop.f32.mrf.mxu0 }
 0x109   : > { %v502_v41 = vpop.f32.mrf.mxu1 }
 0x10a   : > { %v503_v42 = vadd.f32 %v502_v41, %v376_v40  ;;  %v2383_v43 = vpop.f32.mrf.mxu0 }
 0x10b   : > { %v2419_v44 = vpop.f32.mrf.mxu1 }
 0x10c   : > { %v381_v46 = vpop.f32.mrf.mxu0 }
 0x10d   : > { %v507_v47 = vpop.f32.mrf.mxu1 }
 0x10e   : > { %v508_v48 = vadd.f32 %v507_v47, %v381_v46  ;;  %v2386_v49 = vpop.f32.mrf.mxu0 }
 0x10f   : > { %v2422_v36 = vpop.f32.mrf.mxu1 }
 0x110   : > { %v384_v50 = vpop.f32.mrf.mxu0 }
 0x111   : > { %v510_v52 = vpop.f32.mrf.mxu1 }
 0x112   : > { %v511_v53 = vadd.f32 %v510_v52, %v384_v50  ;;  %v2387_v54 = vpop.f32.mrf.mxu0 }
 0x113   : > { %v2423_v55 = vpop.f32.mrf.mxu1 }
 0x114   : > { %v634_v56 = vpop.f32.mrf.mxu0 }
 0x115   : > { %v673_v57 = vadd.f32 %v634_v56, %v476_v4  ;;  %v837_v58 = vpop.f32.mrf.mxu1 }
 0x116   : > { %v2442_v59 = vpop.f32.mrf.mxu0 }
 0x117   : > { %v876_v60 = vadd.f32 %v837_v58, %v673_v57  ;;  %v2478_v61 = vpop.f32.mrf.mxu1 }
 0x118   : > { %v637_v45 = vpop.f32.mrf.mxu0 }
 0x119   : > { %v674_v62 = vadd.f32 %v637_v45, %v479_v10  ;;  %v840_v63 = vpop.f32.mrf.mxu1 }
 0x11a   : > { %v2443_v0 = vpop.f32.mrf.mxu0 }
 0x11b   : > { %v877_v51 = vadd.f32 %v840_v63, %v674_v62  ;;  %v2479_v2 = vpop.f32.mrf.mxu1 }
 0x11c   : > { %v642_v3 = vpop.f32.mrf.mxu0 }
 0x11d   : > { %v675_v5 = vadd.f32 %v642_v3, %v484_v18  ;;  %v845_v6 = vpop.f32.mrf.mxu1 }
 0x11e   : > { %v2446_v7 = vpop.f32.mrf.mxu0 }
 0x11f   : > { %v878_v8 = vadd.f32 %v845_v6, %v675_v5  ;;  %v2482_v9 = vpop.f32.mrf.mxu1 }
 0x120   : > { %v645_v11 = vpop.f32.mrf.mxu0 }
 0x121   : > { %v676_v12 = vadd.f32 %v645_v11, %v487_v22  ;;  %v848_v13 = vpop.f32.mrf.mxu1 }
 0x122   : > { %v2447_v4 = vpop.f32.mrf.mxu0 }
 0x123   : > { %v879_v14 = vadd.f32 %v848_v13, %v676_v12  ;;  %v2483_v16 = vpop.f32.mrf.mxu1 }
 0x124   : > { %v650_v17 = vpop.f32.mrf.mxu0 }
 0x125   : > { %v677_v15 = vadd.f32 %v650_v17, %v492_v26  ;;  %v853_v20 = vpop.f32.mrf.mxu1 }
 0x126   : > { %v2450_v10 = vpop.f32.mrf.mxu0 }
 0x127   : > { %v880_v21 = vadd.f32 %v853_v20, %v677_v15  ;;  %v2486_v1 = vpop.f32.mrf.mxu1 }
 0x128   : > { %v653_v19 = vpop.f32.mrf.mxu0 }
 0x129   : > { %v678_v23 = vadd.f32 %v653_v19, %v495_v32  ;;  %v856_v24 = vpop.f32.mrf.mxu1 }
 0x12a   : > { %v2451_v18 = vpop.f32.mrf.mxu0 }
 0x12b   : > { %v881_v25 = vadd.f32 %v856_v24, %v678_v23  ;;  %v2487_v28 = vpop.f32.mrf.mxu1 }
 0x12c   : > { %v658_v29 = vpop.f32.mrf.mxu0 }
 0x12d   : > { %v679_v30 = vadd.f32 %v658_v29, %v500_v37  ;;  %v861_v31 = vpop.f32.mrf.mxu1 }
 0x12e   : > { %v2454_v22 = vpop.f32.mrf.mxu0 }
 0x12f   : > { %v3390_v33 = vadd.f32 %v861_v31, %v679_v30  ;;  %v2490_v34 = vpop.f32.mrf.mxu1 }
 0x130   : > { %v661_v35 = vpop.f32.mrf.mxu0 }
 0x131   : > { %v680_v27 = vadd.f32 %v661_v35, %v503_v42  ;;  %v864_v26 = vpop.f32.mrf.mxu1 }
 0x132   : > { %v2455_v38 = vpop.f32.mrf.mxu0 }
 0x133   : > { %v3392_v39 = vadd.f32 %v864_v26, %v680_v27  ;;  %v2491_v40 = vpop.f32.mrf.mxu1 }
 0x134   : > { %v666_v41 = vpop.f32.mrf.mxu0 }
 0x135   : > { %v681_v32 = vadd.f32 %v666_v41, %v508_v48  ;;  %v869_v43 = vpop.f32.mrf.mxu1 }
 0x136   : > { %v2458_v44 = vpop.f32.mrf.mxu0 }
 0x137   : > { %v3394_v46 = vadd.f32 %v869_v43, %v681_v32  ;;  %v2494_v47 = vpop.f32.mrf.mxu1 }
 0x138   : > { %v669_v37 = vpop.f32.mrf.mxu0 }
 0x139   : > { %v682_v49 = vadd.f32 %v669_v37, %v511_v53  ;;  %v872_v36 = vpop.f32.mrf.mxu1 }
 0x13a   : > { %v2459_v50 = vpop.f32.mrf.mxu0 }
 0x13b   : > { %v3396_v52 = vadd.f32 %v872_v36, %v682_v49  ;;  %v2495_v54 = vpop.f32.mrf.mxu1 }
 0x13c   : > { %v1048_v42 = vpop.f32.mrf.mxu0 }
 0x13d   : > { %v1087_v55 = vadd.f32 %v1048_v42, %v876_v60  ;;  %v1217_v56 = vpop.f32.mrf.mxu1 }
 0x13e   : > { %v2514_v57 = vpop.f32.mrf.mxu0 }
 0x13f   : > { %v3398_v58 = vadd.f32 %v1217_v56, %v1087_v55  ;;  %v2550_v59 = vpop.f32.mrf.mxu1 }
 0x140   : > { %v1051_v48 = vpop.f32.mrf.mxu0 }
 0x141   : > { %v1088_v61 = vadd.f32 %v1051_v48, %v877_v51  ;;  %v1220_v45 = vpop.f32.mrf.mxu1 }
 0x142   : > { %v2515_v62 = vpop.f32.mrf.mxu0 }
 0x143   : > { %v3400_v63 = vadd.f32 %v1220_v45, %v1088_v61  ;;  %v2551_v0 = vpop.f32.mrf.mxu1 }
 0x144   : > { %v1056_v53 = vpop.f32.mrf.mxu0 }
 0x145   : > { %v1089_v2 = vadd.f32 %v1056_v53, %v878_v8  ;;  %v1225_v3 = vpop.f32.mrf.mxu1 }
 0x146   : > { %v2518_v5 = vpop.f32.mrf.mxu0 }
 0x147   : > { %v3402_v6 = vadd.f32 %v1225_v3, %v1089_v2  ;;  %v2554_v7 = vpop.f32.mrf.mxu1 }
 0x148   : > { %v1059_v60 = vpop.f32.mrf.mxu0 }
 0x149   : > { %v1090_v9 = vadd.f32 %v1059_v60, %v879_v14  ;;  %v1228_v11 = vpop.f32.mrf.mxu1 }
 0x14a   : > { %v2519_v12 = vpop.f32.mrf.mxu0 }
 0x14b   : > { %v3404_v13 = vadd.f32 %v1228_v11, %v1090_v9  ;;  %v2555_v4 = vpop.f32.mrf.mxu1 }
 0x14c   : > { %v1064_v51 = vpop.f32.mrf.mxu0 }
 0x14d   : > { %v1091_v16 = vadd.f32 %v1064_v51, %v880_v21  ;;  %v1233_v17 = vpop.f32.mrf.mxu1 }
 0x14e   : > { %v2522_v15 = vpop.f32.mrf.mxu0 }
 0x14f   : > { %v3406_v20 = vadd.f32 %v1233_v17, %v1091_v16  ;;  %v2558_v10 = vpop.f32.mrf.mxu1 }
 0x150   : > { %v1067_v8 = vpop.f32.mrf.mxu0 }
 0x151   : > { %v1092_v1 = vadd.f32 %v1067_v8, %v881_v25  ;;  %v1236_v19 = vpop.f32.mrf.mxu1 }
 0x152   : > { %v2523_v23 = vpop.f32.mrf.mxu0 }
 0x153   : > { %v3408_v24 = vadd.f32 %v1236_v19, %v1092_v1  ;;  %v2559_v18 = vpop.f32.mrf.mxu1 }
 0x154   : > { %v1072_v14 = vpop.f32.mrf.mxu0 }
 0x155   : > { %v1241_v28 = vpop.f32.mrf.mxu1  ;;  %v1093_v1 = vadd.f32 %v1072_v14, %v3390_v33 }
 0x156   : > { %v2526_v29 = vpop.f32.mrf.mxu0 }
 0x157   : > { %v2562_v30 = vpop.f32.mrf.mxu1 }
 0x158   : > { %v1075_v31 = vpop.f32.mrf.mxu0 }
 0x159   : > { %v1244_v22 = vpop.f32.mrf.mxu1  ;;  %v1094_v19 = vadd.f32 %v1075_v31, %v3392_v39 }
 0x15a   : > { %v2527_v34 = vpop.f32.mrf.mxu0 }
 0x15b   : > { %v2563_v21 = vpop.f32.mrf.mxu1  ;;  %v1262_v34 = vadd.f32 %v1241_v28, %v1093_v1 }
 0x15c   : > { %v1080_v35 = vpop.f32.mrf.mxu0  ;;  %v1263_v21 = vadd.f32 %v1244_v22, %v1094_v19 }
 0x15d   : > { %v3410_v27 = vpop.f32.mrf.mxu1  ;;  %v1095_v33 = vadd.f32 %v1080_v35, %v3394_v46 }
 0x15e   : > { %v2530_v26 = vpop.f32.mrf.mxu0 }
 0x15f   : > { %v2566_v38 = vpop.f32.mrf.mxu1 }
 0x160   : > { %v1083_v40 = vpop.f32.mrf.mxu0 }
 0x161   : > { %v3412_v25 = vpop.f32.mrf.mxu1  ;;  %v1096_v39 = vadd.f32 %v1083_v40, %v3396_v52 }
 0x162   : > { %v2531_v41 = vpop.f32.mrf.mxu0 }
 0x163   : > { %v2567_v32 = vpop.f32.mrf.mxu1 }
 0x164   : > { %v1420_v43 = vpop.f32.mrf.mxu0 }
 0x165   : > { %v1631_v44 = vpop.f32.mrf.mxu1  ;;  %v1459_v38 = vadd.f32 %v1420_v43, %v3398_v58 }
 0x166   : > { %v2586_v47 = vpop.f32.mrf.mxu0 }
 0x167   : > { %v2622_v37 = vpop.f32.mrf.mxu1  ;;  %v1670_v31 = vadd.f32 %v1631_v44, %v1459_v38 }
 0x168   : > { %v1423_v49 = vpop.f32.mrf.mxu0 }
 0x169   : > { %v1634_v36 = vpop.f32.mrf.mxu1  ;;  %v1460_v41 = vadd.f32 %v1423_v49, %v3400_v63  ;;  %v1264_v49 = vadd.f32 %v3410_v27, %v1095_v33 }
 0x16a   : > { %v2587_v50 = vpop.f32.mrf.mxu0 }
 0x16b   : > { %v2623_v54 = vpop.f32.mrf.mxu1 }
 0x16c   : > { %v1428_v42 = vpop.f32.mrf.mxu0 }
 0x16d   : > { %v3414_v55 = vpop.f32.mrf.mxu1  ;;  %v1461_v35 = vadd.f32 %v1428_v42, %v3402_v6 }
 0x16e   : > { %v2590_v56 = vpop.f32.mrf.mxu0 }
 0x16f   : > { %v2626_v57 = vpop.f32.mrf.mxu1  ;;  %v1671_v56 = vadd.f32 %v1634_v36, %v1460_v41 }
 0x170   : > { %v1431_v59 = vpop.f32.mrf.mxu0 }
 0x171   : > { %v3416_v48 = vpop.f32.mrf.mxu1  ;;  %v1462_v40 = vadd.f32 %v1431_v59, %v3404_v13 }
 0x172   : > { %v2591_v61 = vpop.f32.mrf.mxu0 }
 0x173   : > { %v2627_v45 = vpop.f32.mrf.mxu1 }
 0x174   : > { %v3418_v62 = vpop.f32.mrf.mxu0  ;;  %v1265_v45 = vadd.f32 %v3412_v25, %v1096_v39 }
 0x175   : > { %v3420_v0 = vpop.f32.mrf.mxu1  ;;  %v1463_v1 = vadd.f32 %v3418_v62, %v3406_v20 }
 0x176   : > { %v2594_v53 = vpop.f32.mrf.mxu0 }
 0x177   : > { %v2630_v2 = vpop.f32.mrf.mxu1 }
 0x178   : > { %v3422_v3 = vpop.f32.mrf.mxu0 }
 0x179   : > { %v3424_v5 = vpop.f32.mrf.mxu1 }
 0x17a   : > { %v2595_v7 = vpop.f32.mrf.mxu0 }
 0x17b   : > { %v2631_v60 = vpop.f32.mrf.mxu1 }
 0x17c   : > { %v1444_v9 = vpop.f32.mrf.mxu0 }
 0x17d   : > { %v1655_v11 = vpop.f32.mrf.mxu1  ;;  %v1465_v47 = vadd.f32 %v1444_v9, %v1262_v34 }
 0x17e   : > { %v2598_v12 = vpop.f32.mrf.mxu0 }
 0x17f   : > { %v2634_v4 = vpop.f32.mrf.mxu1  ;;  %v1676_v22 = vadd.f32 %v1655_v11, %v1465_v47  ;;  %v1672_v11 = vadd.f32 %v3414_v55, %v1461_v35  ;;  %v1673_v12 = vadd.f32 %v3416_v48, %v1462_v40  ;;  %v1464_v55 = vadd.f32 %v3422_v3, %v3408_v24 }
 0x180   : > { %v1447_v51 = vpop.f32.mrf.mxu0 }
 0x181   : > { %v1658_v16 = vpop.f32.mrf.mxu1  ;;  %v1466_v37 = vadd.f32 %v1447_v51, %v1263_v21 }
 0x182   : > { %v2599_v17 = vpop.f32.mrf.mxu0 }
 0x183   : > { %v2635_v15 = vpop.f32.mrf.mxu1  ;;  %v1677_v57 = vadd.f32 %v1658_v16, %v1466_v37 }
 0x184   : > { %v1452_v10 = vpop.f32.mrf.mxu0 }
 0x185   : > { %v1663_v8 = vpop.f32.mrf.mxu1  ;;  %v1467_v2 = vadd.f32 %v1452_v10, %v1264_v49 }
 0x186   : > { %v2602_v23 = vpop.f32.mrf.mxu0 }
 0x187   : > { %v2638_v18 = vpop.f32.mrf.mxu1  ;;  %v1678_v51 = vadd.f32 %v1663_v8, %v1467_v2 }
 0x188   : > { %v1455_v29 = vpop.f32.mrf.mxu0 }
 0x189   : > { %v1666_v30 = vpop.f32.mrf.mxu1  ;;  %v1468_v27 = vadd.f32 %v1455_v29, %v1265_v45  ;;  %v1674_v29 = vadd.f32 %v3420_v0, %v1463_v1 }
 0x18a   : > { %v2603_v26 = vpop.f32.mrf.mxu0 }
 0x18b   : > { %v2639_v32 = vpop.f32.mrf.mxu1  ;;  %v1679_v6 = vadd.f32 %v1666_v30, %v1468_v27  ;;  %v1675_v30 = vadd.f32 %v3424_v5, %v1464_v55 }
 0x18c   : > { %v1800_v50 = vpop.f32.mrf.mxu0 }
 0x18d   : > { %v1824_v54 = vpop.f32.mrf.mxu1  ;;  %v1839_v58 = vadd.f32 %v1800_v50, %v1670_v31 }
 0x18e   : > { %v2658_v14 = vpop.f32.mrf.mxu0  ;;  %v1845_v53 = vadd.f32 %v1824_v54, %v1676_v22 }
 0x18f   : > { %v2670_v28 = vpop.f32.mrf.mxu1 }
 0x190   : > { %v1803_v61 = vpop.f32.mrf.mxu0 }
 0x191   : > { %v1840_v43 = vadd.f32 %v1803_v61, %v1671_v56  ;;  %v1827_v63 = vpop.f32.mrf.mxu1 }
 0x192   : > { %v1846_v46 = vadd.f32 %v1827_v63, %v1677_v57  ;;  %v2659_v52 = vpop.f32.mrf.mxu0 }
 0x193   : > { %v2209_v44 = vpack.c.bf16 %v1840_v43, %v1839_v58  ;;  %v2671_v36 = vpop.f32.mrf.mxu1 }
 0x194   : > { %v2224_v7 = vpack.c.bf16 %v1846_v46, %v1845_v53  ;;  %v1808_v25 = vpop.f32.mrf.mxu0 }
 0x195   : > { %2210 = vst [vmem:[%s3438_s8] sm:$0xff] %v2209_v44   ;;  %v1832_v60 = vpop.f32.mrf.mxu1  ;;  %v1841_v42 = vadd.f32 %v1808_v25, %v1672_v11 }
 0x196   : > { %2233 = vst [vmem:[%s3438_s8 + $0x18] sm:$0xff] %v2224_v7   ;;  %v2662_v9 = vpop.f32.mrf.mxu0  ;;  %v1847_v17 = vadd.f32 %v1832_v60, %v1678_v51 }
 0x197   : > { %v2674_v4 = vpop.f32.mrf.mxu1 }
 0x198   : > { %v1811_v13 = vpop.f32.mrf.mxu0 }
 0x199   : > { %v1842_v59 = vadd.f32 %v1811_v13, %v1673_v12  ;;  %v1835_v16 = vpop.f32.mrf.mxu1 }
 0x19a   : > { %v1848_v15 = vadd.f32 %v1835_v16, %v1679_v6  ;;  %v2663_v10 = vpop.f32.mrf.mxu0 }
 0x19b   : > { %v2214_v48 = vpack.c.bf16 %v1842_v59, %v1841_v42  ;;  %v2675_v19 = vpop.f32.mrf.mxu1 }
 0x19c   : > { %v2229_v23 = vpack.c.bf16 %v1848_v15, %v1847_v17  ;;  %v1816_v8 = vpop.f32.mrf.mxu0 }
 0x19d   : > { %2231 = vst [vmem:[%s3438_s8 + $0x8] sm:$0xff] %v2214_v48   ;;  %v1843_v21 = vadd.f32 %v1816_v8, %v1674_v29 }
 0x19e   : > { %2234 = vst [vmem:[%s3438_s8 + $0x20] sm:$0xff] %v2229_v23   ;;  %v2666_v18 = vpop.f32.mrf.mxu0 }
 0x1a0   : > { %v1819_v34 = vpop.f32.mrf.mxu0 }
 0x1a1   : > { %v1844_v26 = vadd.f32 %v1819_v34, %v1675_v30 }
 0x1a2   : > { %v2667_v38 = vpop.f32.mrf.mxu0 }
 0x1a3   : > { %v2219_v20 = vpack.c.bf16 %v1844_v26, %v1843_v21 }
 0x1a5   : > { %2232 = vst [vmem:[%s3438_s8 + $0x10] sm:$0xff] %v2219_v20  }
 0x1a6 PF: > { %s12_s9 = sadd.s32 1, %s2805_s9  }
 0x1a7   : > { %p9_p4 = scmp.ge.s32.totalorder %s12_s9, 10  }
 0x1a9   :  { %11 = sbr.rel (!%p9_p4) target bundleno = 1 (0x1), region = 66 }

// kernel: basic_block_forward.7
= control target key start
LH: loop header
LB: loop body
LE: loop exit
PB: predicated region body
PF: predicated region fallthrough
CT: control target
= control target key end

     0   :  { %s1968_s18 = smov 0   ;;  %s1970_s19 = smov 0   ;;  %s2465_s0 = inlined_call_operand.vmem [shape: bf16[2,6,64,128], index: 0, kind: input, shape index: {}]   ;;  %s2466_s1 = inlined_call_operand.vmem [shape: bf16[3,128,128], index: 1, kind: input, shape index: {}]   ;;  %s2467_s2 = inlined_call_operand.vmem [shape: f32[1,128], index: 2, kind: input, shape index: {}]   ;;  %s2468_s3 = inlined_call_operand.vmem [shape: f32[1,128], index: 3, kind: input, shape index: {}]   ;;  %s2469_s4 = inlined_call_operand.vmem [shape: f32[2,4,64,128], index: 4, kind: input, shape index: {}, may-alias: {4,5}]   ;;  %s2470_s5 = inlined_call_operand.vmem [shape: f32[2,4,64,128], index: 5, kind: output, shape index: {}, may-alias: {4,5}]  }
   0x1   :  { %s1972_s20 = smov 0  }
   0x2 LB: > { %s27_s21 = sadd.s32 1, %s1932_s19  ;;  %p1517_p0 = scmp.ge.s32.totalorder %s1936_s20, 1  ;;  %s1936_s20 = sphi %s1972_s20, %s15_s20   ;;  %s1932_s19 = sphi %s1970_s19, %s2504_s19   ;;  %s1928_s18 = sphi %s1968_s18, %s2503_s18  }
   0x3   : > { %p29_p1 = scmp.ge.s32.totalorder %s27_s21, 2  ;;  %p225_p2 = scmp.lt.s32.totalorder %s1936_s20, 3 }
   0x5   : > { %s2506_s21 = smov (%p29_p1, %s27_s21), 0  ;;  %p226_p3 = pnand %p1517_p0, %p225_p2 }
   0x7   : > { %229 = sbr.rel (%p226_p3) target bundleno = 345 (0x159), region = 40 }
   0xc   : > { %v1866_v0 = vld [vmem:[%s2466_s1 + $0x78] sm:$0xff]   ;;  %p271_p4 = scmp.lt.s32.totalorder %s1928_s18, 1  ;;  %v1867_v1 = vld [vmem:[%s2466_s1 + $0x70] sm:$0xff]   ;;  %v1868_v2 = vld [vmem:[%s2466_s1 + $0x68] sm:$0xff]  }
   0xd   : > { %1681 = vmatprep.subr.bf16.mxu0 %v1866_v0  ;;  %1825 = vmatprep.subr.bf16.mxu1 %v1866_v0  ;;  %v1869_v3 = vld [vmem:[%s2466_s1 + $0x60] sm:$0xff]   ;;  %v1870_v6 = vld [vmem:[%s2466_s1 + $0x58] sm:$0xff]   ;;  %v1871_v7 = vld [vmem:[%s2466_s1 + $0x50] sm:$0xff]  }
   0xe   : > { %s2508_s18 = smov (!%p271_p4, %s1928_s18), 1  ;;  %1682 = vmatpush3.bf16.msra.mxu0 %v1866_v0  ;;  %1833 = vmatpush3.bf16.msra.mxu1 %v1866_v0  ;;  %v1872_v8 = vld [vmem:[%s2466_s1 + $0x48] sm:$0xff]   ;;  %v1873_v9 = vld [vmem:[%s2466_s1 + $0x40] sm:$0xff]   ;;  %v1878_v10 = vld [vmem:[%s2466_s1 + $0x38] sm:$0xff]  }
   0xf   : > { %1683 = vmatprep.subr.bf16.mxu0 %v1867_v1  ;;  %1826 = vmatprep.subr.bf16.mxu1 %v1867_v1  ;;  %s1841_s28 = smul.u32 192, %s2508_s18  ;;  %v1879_v12 = vld [vmem:[%s2466_s1 + $0xb8] sm:$0xff]   ;;  %v1880_v14 = vld [vmem:[%s2466_s1 + $0x30] sm:$0xff]   ;;  %v1886_v18 = vld [vmem:[%s2466_s1 + $0x28] sm:$0xff]  }
  0x10   : > { %v1881_v15 = vld [vmem:[%s2466_s1 + $0xb0] sm:$0xff]   ;;  %v1887_v20 = vld [vmem:[%s2466_s1 + $0xa8] sm:$0xff]   ;;  %v1888_v22 = vld [vmem:[%s2466_s1 + $0x20] sm:$0xff]  }
  0x11   : > { %s2001_s6 = scalar_lea.vmem %s2465_s0, %s1841_s28  ;;  %v1889_v23 = vld [vmem:[%s2466_s1 + $0xa0] sm:$0xff]   ;;  %v1894_v26 = vld [vmem:[%s2466_s1 + $0x18] sm:$0xff]   ;;  %v1896_v30 = vld [vmem:[%s2466_s1 + $0x10] sm:$0xff]  }
  0x12   : > { %1684 = vmatpush3.bf16.msra.mxu0 %v1867_v1  ;;  %1834 = vmatpush3.bf16.msra.mxu1 %v1867_v1  ;;  %v2007_v4 = vld [vmem:[%s2001_s6 + $0x20] sm:$0xff]   ;;  %v2030_v11 = vld [vmem:[%s2001_s6 + $0x28] sm:$0xff]   ;;  %v2045_v16 = vld [vmem:[%s2001_s6 + $0x30] sm:$0xff]  }
  0x13   : > { %1685 = vmatprep.subr.bf16.mxu0 %v1868_v2  ;;  %1827 = vmatprep.subr.bf16.mxu1 %v1868_v2  ;;  %v2010_v5 = vld [vmem:[%s2001_s6 + $0x60] sm:$0xff]   ;;  %v2036_v13 = vld [vmem:[%s2001_s6 + $0x68] sm:$0xff]   ;;  %v2048_v17 = vld [vmem:[%s2001_s6 + $0x70] sm:$0xff]  }
  0x14   : > { %1697 = vmatprep.mubr.bf16.mxu0 %v2007_v4  ;;  %1713 = vmatprep.mubr.bf16.mxu1 %v2010_v5  ;;  %v2056_v19 = vld [vmem:[%s2001_s6 + $0x38] sm:$0xff]   ;;  %v2073_v24 = vld [vmem:[%s2001_s6 + $0x40] sm:$0xff]   ;;  %v1892_v28 = vld [vmem:[%s2001_s6 + $0x48] sm:$0xff]  }
  0x15   : > { %v2064_v21 = vld [vmem:[%s2001_s6 + $0x78] sm:$0xff]   ;;  %v2076_v25 = vld [vmem:[%s2001_s6 + $0x80] sm:$0xff]   ;;  %v1893_v29 = vld [vmem:[%s2001_s6 + $0x88] sm:$0xff]  }
  0x16   : > { %1686 = vmatpush3.bf16.msra.mxu0 %v1868_v2  ;;  %1835 = vmatpush3.bf16.msra.mxu1 %v1868_v2  ;;  %v1895_v27 = vld [vmem:[%s2466_s1 + $0x98] sm:$0xff]   ;;  %v1897_v31 = vld [vmem:[%s2466_s1 + $0x90] sm:$0xff]   ;;  %v1902_v34 = vld [vmem:[%s2466_s1 + $0x8] sm:$0xff]  }
  0x17   : > { %1687 = vmatprep.subr.bf16.mxu0 %v1869_v3  ;;  %1828 = vmatprep.subr.bf16.mxu1 %v1869_v3  ;;  %v1898_v32 = vld [vmem:[%s2001_s6 + $0x50] sm:$0xff]   ;;  %v1903_v35 = vld [vmem:[%s2466_s1 + $0x88] sm:$0xff]   ;;  %v1900_v36 = vld [vmem:[%s2001_s6 + $0x58] sm:$0xff]  }
  0x18   : > { %v1899_v33 = vld [vmem:[%s2001_s6 + $0x90] sm:$0xff]   ;;  %v1901_v37 = vld [vmem:[%s2001_s6 + $0x98] sm:$0xff]   ;;  %v1904_v38 = vld [vmem:[%s2466_s1] sm:$0xff]  }
  0x19   : > { %v1905_v39 = vld [vmem:[%s2466_s1 + $0x80] sm:$0xff]   ;;  %v1907_v41 = vld [vmem:[%s2001_s6 + $0x8] sm:$0xff]   ;;  %v1908_v42 = vld [vmem:[%s2001_s6 + $0x10] sm:$0xff]  }
  0x1a   : > { %1688 = vmatpush3.bf16.msra.mxu0 %v1869_v3  ;;  %1836 = vmatpush3.bf16.msra.mxu1 %v1869_v3  ;;  %v1906_v40 = vld [vmem:[%s2001_s6] sm:$0xff]   ;;  %v1909_v43 = vld [vmem:[%s2001_s6 + $0x18] sm:$0xff]   ;;  %v1911_v45 = vld [vmem:[%s2001_s6 + $0xa8] sm:$0xff]  }
  0x1b   : > { %1689 = vmatprep.subr.bf16.mxu0 %v1870_v6  ;;  %1829 = vmatprep.subr.bf16.mxu1 %v1870_v6  ;;  %v1910_v44 = vld [vmem:[%s2001_s6 + $0xa0] sm:$0xff]   ;;  %v1912_v46 = vld [vmem:[%s2001_s6 + $0xb0] sm:$0xff]   ;;  %v1913_v47 = vld [vmem:[%s2001_s6 + $0xb8] sm:$0xff]   ;;  %s1607_s6 = sshll.u32 %s2508_s18, 8 }
  0x1c   : > { %s2202_s13 = scalar_lea.vmem %s2469_s4, %s1607_s6  ;;  %s2298_s22 = scalar_lea.vmem %s2470_s5, %s1607_s6 }
  0x1e   : > { %1690 = vmatpush3.bf16.msra.mxu0 %v1870_v6  ;;  %1837 = vmatpush3.bf16.msra.mxu1 %v1870_v6 }
  0x1f   : > { %1691 = vmatprep.subr.bf16.mxu0 %v1871_v7  ;;  %1830 = vmatprep.subr.bf16.mxu1 %v1871_v7 }
  0x22   : > { %1692 = vmatpush3.bf16.msra.mxu0 %v1871_v7  ;;  %1838 = vmatpush3.bf16.msra.mxu1 %v1871_v7 }
  0x23   : > { %1693 = vmatprep.subr.bf16.mxu0 %v1872_v8  ;;  %1831 = vmatprep.subr.bf16.mxu1 %v1872_v8 }
  0x26   : > { %1694 = vmatpush3.bf16.msra.mxu0 %v1872_v8  ;;  %1839 = vmatpush3.bf16.msra.mxu1 %v1872_v8 }
  0x27   : > { %1695 = vmatprep.subr.bf16.mxu0 %v1873_v9  ;;  %1832 = vmatprep.subr.bf16.mxu1 %v1873_v9 }
  0x2a   : > { %1696 = vmatpush3.bf16.msra.mxu0 %v1873_v9  ;;  %1840 = vmatpush3.bf16.msra.mxu1 %v1873_v9 }
  0x2b   : > { %1729 = vmatprep.subr.bf16.mxu1 %v1878_v10  ;;  %1777 = vmatprep.subr.bf16.mxu0 %v1879_v12 }
  0x2d   : > { %1698 = vmatmul.mubr.bf16.vlgmr.msra.gmra.mxu0 %v2030_v11  ;;  %1714 = vmatmul.mubr.bf16.vlgmr.msra.gmra.mxu1 %v2036_v13 }
  0x2e   : > { %1730 = vmatpush3.bf16.msra.mxu1 %v1878_v10  ;;  %1778 = vmatpush3.bf16.msra.mxu0 %v1879_v12 }
  0x2f   : > { %1731 = vmatprep.subr.bf16.mxu1 %v1880_v14  ;;  %1779 = vmatprep.subr.bf16.mxu0 %v1881_v15 }
  0x30   : > { %1701 = vmatprep.mubr.bf16.mxu0 %v2045_v16  ;;  %1717 = vmatprep.mubr.bf16.mxu1 %v2048_v17 }
  0x32   : > { %1732 = vmatpush3.bf16.msra.mxu1 %v1880_v14  ;;  %1780 = vmatpush3.bf16.msra.mxu0 %v1881_v15 }
  0x33   : > { %1733 = vmatprep.subr.bf16.mxu1 %v1886_v18  ;;  %1781 = vmatprep.subr.bf16.mxu0 %v1887_v20 }
  0x35   : > { %1702 = vmatmul.mubr.bf16.gmra.mxu0 %v2056_v19  ;;  %1718 = vmatmul.mubr.bf16.gmra.mxu1 %v2064_v21 }
  0x36   : > { %1734 = vmatpush3.bf16.msra.mxu1 %v1886_v18  ;;  %1782 = vmatpush3.bf16.msra.mxu0 %v1887_v20 }
  0x37   : > { %1735 = vmatprep.subr.bf16.mxu1 %v1888_v22  ;;  %1783 = vmatprep.subr.bf16.mxu0 %v1889_v23 }
  0x38   : > { %1705 = vmatprep.mubr.bf16.mxu0 %v2073_v24  ;;  %1721 = vmatprep.mubr.bf16.mxu1 %v2076_v25 }
  0x3a   : > { %1736 = vmatpush3.bf16.msra.mxu1 %v1888_v22  ;;  %1784 = vmatpush3.bf16.msra.mxu0 %v1889_v23 }
  0x3b   : > { %1737 = vmatprep.subr.bf16.mxu1 %v1894_v26  ;;  %1785 = vmatprep.subr.bf16.mxu0 %v1895_v27 }
  0x3d   : > { %1706 = vmatmul.mubr.bf16.gmra.mxu0 %v1892_v28  ;;  %1722 = vmatmul.mubr.bf16.gmra.mxu1 %v1893_v29 }
  0x3e   : > { %1738 = vmatpush3.bf16.msra.mxu1 %v1894_v26  ;;  %1786 = vmatpush3.bf16.msra.mxu0 %v1895_v27 }
  0x3f   : > { %1739 = vmatprep.subr.bf16.mxu1 %v1896_v30  ;;  %1787 = vmatprep.subr.bf16.mxu0 %v1897_v31 }
  0x40   : > { %1709 = vmatprep.mubr.bf16.mxu0 %v1898_v32  ;;  %1725 = vmatprep.mubr.bf16.mxu1 %v1899_v33 }
  0x42   : > { %1740 = vmatpush3.bf16.msra.mxu1 %v1896_v30  ;;  %1788 = vmatpush3.bf16.msra.mxu0 %v1897_v31  ;;  %v1204_v30 = vld [vmem:[%s2202_s13 + $0x10] sm:$0xff] }
  0x43   : > { %1741 = vmatprep.subr.bf16.mxu1 %v1902_v34  ;;  %1789 = vmatprep.subr.bf16.mxu0 %v1903_v35 }
  0x45   : > { %1710 = vmatmul.mubr.bf16.gmra.mxu0 %v1900_v36  ;;  %1726 = vmatmul.mubr.bf16.gmra.mxu1 %v1901_v37 }
  0x46   : > { %1742 = vmatpush3.bf16.msra.mxu1 %v1902_v34  ;;  %1790 = vmatpush3.bf16.msra.mxu0 %v1903_v35  ;;  %v1202_v34 = vld [vmem:[%s2202_s13] sm:$0xff] }
  0x47   : > { %1743 = vmatprep.subr.bf16.mxu1 %v1904_v38  ;;  %1791 = vmatprep.subr.bf16.mxu0 %v1905_v39 }
  0x48   : > { %1745 = vmatprep.mubr.bf16.mxu1 %v1906_v40  ;;  %1793 = vmatprep.mubr.bf16.mxu0 %v2073_v24 }
  0x4a   : > { %1744 = vmatpush3.bf16.msra.mxu1 %v1904_v38  ;;  %1792 = vmatpush3.bf16.msra.mxu0 %v1905_v39  ;;  %v1205_v38 = vld [vmem:[%s2202_s13 + $0x18] sm:$0xff]  ;;  %v1203_v39 = vld [vmem:[%s2202_s13 + $0x8] sm:$0xff] }
  0x4d   : > { %1746 = vmatmul.mubr.bf16.vlgmr.msra.gmra.mxu1 %v1907_v41  ;;  %1794 = vmatmul.mubr.bf16.vlgmr.msra.gmra.mxu0 %v1892_v28 }
  0x4e   : > { %1749 = vmatprep.mubr.bf16.mxu1 %v1908_v42  ;;  %1797 = vmatprep.mubr.bf16.mxu0 %v1898_v32  ;;  %v2217_v42 = vld [vmem:[%s2202_s13 + $0x30] sm:$0xff] }
  0x55   : > { %1750 = vmatmul.mubr.bf16.gmra.mxu1 %v1909_v43  ;;  %1798 = vmatmul.mubr.bf16.gmra.mxu0 %v1900_v36  ;;  %v2220_v43 = vld [vmem:[%s2202_s13 + $0x20] sm:$0xff] }
  0x56   : > { %1753 = vmatprep.mubr.bf16.mxu1 %v2007_v4  ;;  %1801 = vmatprep.mubr.bf16.mxu0 %v2010_v5 }
  0x5d   : > { %1754 = vmatmul.mubr.bf16.gmra.mxu1 %v2030_v11  ;;  %1802 = vmatmul.mubr.bf16.gmra.mxu0 %v2036_v13 }
  0x5e   : > { %1757 = vmatprep.mubr.bf16.mxu1 %v2045_v16  ;;  %1805 = vmatprep.mubr.bf16.mxu0 %v2048_v17 }
  0x65   : > { %1758 = vmatmul.mubr.bf16.gmra.mxu1 %v2056_v19  ;;  %1806 = vmatmul.mubr.bf16.gmra.mxu0 %v2064_v21  ;;  %v2195_v19 = vld [vmem:[%s2467_s2] ss:$0 sm:$0xff] }
  0x66   : > { %1761 = vmatprep.mubr.bf16.mxu1 %v2073_v24  ;;  %1809 = vmatprep.mubr.bf16.mxu0 %v2076_v25  ;;  %v2207_v24 = vld [vmem:[%s2468_s3] ss:$0 sm:$0xff] }
  0x6d   : > { %1762 = vmatmul.mubr.bf16.gmra.mxu1 %v1892_v28  ;;  %1810 = vmatmul.mubr.bf16.gmra.mxu0 %v1893_v29 }
  0x6e   : > { %1765 = vmatprep.mubr.bf16.mxu1 %v1898_v32  ;;  %1813 = vmatprep.mubr.bf16.mxu0 %v1899_v33 }
  0x75   : > { %1766 = vmatmul.mubr.bf16.gmra.mxu1 %v1900_v36  ;;  %1814 = vmatmul.mubr.bf16.gmra.mxu0 %v1901_v37 }
  0x76   : > { %1769 = vmatprep.mubr.bf16.mxu1 %v2010_v5  ;;  %1817 = vmatprep.mubr.bf16.mxu0 %v1910_v44  ;;  %v2223_v44 = vld [vmem:[%s2202_s13 + $0x38] sm:$0xff] }
  0x7d   : > { %1770 = vmatmul.mubr.bf16.gmra.mxu1 %v2036_v13  ;;  %1818 = vmatmul.mubr.bf16.gmra.mxu0 %v1911_v45  ;;  %v2226_v45 = vld [vmem:[%s2202_s13 + $0x28] sm:$0xff] }
  0x7e   : > { %1773 = vmatprep.mubr.bf16.mxu1 %v2048_v17  ;;  %1821 = vmatprep.mubr.bf16.mxu0 %v1912_v46  ;;  %v2229_v46 = vld [vmem:[%s2202_s13 + $0x50] sm:$0xff] }
  0x85   : > { %1774 = vmatmul.mubr.bf16.gmra.mxu1 %v2064_v21  ;;  %1822 = vmatmul.mubr.bf16.gmra.mxu0 %v1913_v47  ;;  %v2232_v47 = vld [vmem:[%s2202_s13 + $0x40] sm:$0xff] }
  0xed   : > { %v1699_v48 = vpop.f32.mrf.mxu0  ;;  %v2135_v49 = vpop.f32.mrf.mxu1 }
  0xef   : > { %v560_v50 = vpop.f32.mrf.mxu0  ;;  %v2137_v51 = vpop.f32.mrf.mxu1 }
  0xf1   : > { %v1700_v52 = vpop.f32.mrf.mxu0  ;;  %v2139_v53 = vpop.f32.mrf.mxu1 }
  0xf3   : > { %v563_v54 = vpop.f32.mrf.mxu0  ;;  %v2141_v55 = vpop.f32.mrf.mxu1 }
  0xf5   : > { %v2143_v56 = vpop.f32.mrf.mxu0  ;;  %v2145_v57 = vpop.f32.mrf.mxu1 }
  0xf7   : > { %v2147_v58 = vpop.f32.mrf.mxu0  ;;  %v2149_v59 = vpop.f32.mrf.mxu1 }
  0xf9   : > { %v2151_v60 = vpop.f32.mrf.mxu0  ;;  %v2153_v61 = vpop.f32.mrf.mxu1 }
  0xfb   : > { %v2155_v62 = vpop.f32.mrf.mxu0  ;;  %v2157_v63 = vpop.f32.mrf.mxu1 }
  0xfd   : > { %v2159_v0 = vpop.f32.mrf.mxu0  ;;  %v2161_v1 = vpop.f32.mrf.mxu1 }
  0xff   : > { %v2163_v2 = vpop.f32.mrf.mxu0  ;;  %v2165_v3 = vpop.f32.mrf.mxu1 }
 0x100   : > { %2471 = vst [vmem:[#allocation2_spill] sm:$0xff] %v2165_v3 }
 0x101   : > { %v2167_v4 = vpop.f32.mrf.mxu0  ;;  %v2169_v5 = vpop.f32.mrf.mxu1 }
 0x102   : > { %2472 = vst [vmem:[#allocation3_spill] sm:$0xff] %v2169_v5  ;;  %v2291_v5 = vld [vmem:[%s2202_s13 + $0xf0] sm:$0xff] }
 0x103   : > { %v2171_v6 = vpop.f32.mrf.mxu0  ;;  %v2173_v7 = vpop.f32.mrf.mxu1  ;;  %2484 = vst [vmem:[#allocation15_spill] sm:$0xff] %v2291_v5 }
 0x104   : > { %2473 = vst [vmem:[#allocation4_spill] sm:$0xff] %v2173_v7  ;;  %v2288_v7 = vld [vmem:[%s2202_s13 + $0xc8] sm:$0xff] }
 0x105   : > { %v2175_v8 = vpop.f32.mrf.mxu0  ;;  %v2177_v9 = vpop.f32.mrf.mxu1  ;;  %2483 = vst [vmem:[#allocation14_spill] sm:$0xff] %v2288_v7 }
 0x106   : > { %2474 = vst [vmem:[#allocation5_spill] sm:$0xff] %v2177_v9  ;;  %v2285_v9 = vld [vmem:[%s2202_s13 + $0xd8] sm:$0xff] }
 0x107   : > { %v2179_v10 = vpop.f32.mrf.mxu0  ;;  %v2181_v11 = vpop.f32.mrf.mxu1  ;;  %2482 = vst [vmem:[#allocation13_spill] sm:$0xff] %v2285_v9 }
 0x108   : > { %2475 = vst [vmem:[#allocation6_spill] sm:$0xff] %v2181_v11 }
 0x109   : > { %v2183_v12 = vpop.f32.mrf.mxu0  ;;  %v2185_v13 = vpop.f32.mrf.mxu1 }
 0x10a   : > { %2476 = vst [vmem:[#allocation7_spill] sm:$0xff] %v2185_v13 }
 0x10b   : > { %v2187_v14 = vpop.f32.mrf.mxu0  ;;  %v2189_v15 = vpop.f32.mrf.mxu1 }
 0x10c   : > { %2477 = vst [vmem:[#allocation8_spill] sm:$0xff] %v2189_v15 }
 0x10d   : > { %v1747_v16 = vpop.f32.mrf.mxu1  ;;  %v1795_v17 = vpop.f32.mrf.mxu0 }
 0x10e   : > { %v802_v18 = vadd.f32 %v1747_v16, %v1699_v48  ;;  %v2235_v48 = vld [vmem:[%s2202_s13 + $0x58] sm:$0xff] }
 0x10f   : > { %v793_v20 = vpop.f32.mrf.mxu1  ;;  %v1043_v21 = vpop.f32.mrf.mxu0  ;;  %v2247_v16 = vld [vmem:[%s2202_s13 + $0x78] sm:$0xff] }
 0x110   : > { %v1172_v22 = vadd.f32 %v1795_v17, %v802_v18  ;;  %v794_v23 = vadd.f32 %v793_v20, %v560_v50  ;;  %v2238_v50 = vld [vmem:[%s2202_s13 + $0x48] sm:$0xff]  ;;  %v2253_v18 = vld [vmem:[%s2202_s13 + $0x90] sm:$0xff]  ;;  %v2256_v20 = vld [vmem:[%s2202_s13 + $0x80] sm:$0xff] }
 0x111   : > { %v1748_v25 = vpop.f32.mrf.mxu1  ;;  %v1796_v26 = vpop.f32.mrf.mxu0  ;;  %v2250_v17 = vld [vmem:[%s2202_s13 + $0x68] sm:$0xff] }
 0x112   : > { %v1243_v27 = vmul.f32 %v2195_v19, %v1172_v22  ;;  %v1170_v28 = vadd.f32 %v1043_v21, %v794_v23  ;;  %v805_v29 = vadd.f32 %v1748_v25, %v1700_v52  ;;  %v2241_v52 = vld [vmem:[%s2202_s13 + $0x70] sm:$0xff]  ;;  %v2259_v21 = vld [vmem:[%s2202_s13 + $0x98] sm:$0xff]  ;;  %v2262_v22 = vld [vmem:[%s2202_s13 + $0x88] sm:$0xff] }
 0x113   : > { %v796_v31 = vpop.f32.mrf.mxu1  ;;  %v1046_v32 = vpop.f32.mrf.mxu0  ;;  %v2265_v23 = vld [vmem:[%s2202_s13 + $0xb0] sm:$0xff]  ;;  %v2268_v25 = vld [vmem:[%s2202_s13 + $0xa0] sm:$0xff] }
 0x114   : > { %v1282_v33 = vadd.f32 %v2207_v24, %v1243_v27  ;;  %v1241_v35 = vmul.f32 %v2195_v19, %v1170_v28  ;;  %v1173_v36 = vadd.f32 %v1796_v26, %v805_v29  ;;  %v797_v37 = vadd.f32 %v796_v31, %v563_v54  ;;  %v2244_v54 = vld [vmem:[%s2202_s13 + $0x60] sm:$0xff]  ;;  %v2271_v26 = vld [vmem:[%s2202_s13 + $0xb8] sm:$0xff]  ;;  %v2274_v27 = vld [vmem:[%s2202_s13 + $0xa8] sm:$0xff] }
 0x115   : > { %v1751_v40 = vpop.f32.mrf.mxu1  ;;  %v1799_v41 = vpop.f32.mrf.mxu0  ;;  %2478 = vst [vmem:[#allocation9_spill] sm:$0xff] %v2271_v26  ;;  %2479 = vst [vmem:[#allocation10_spill] sm:$0xff] %v2274_v27  ;;  %v2277_v28 = vld [vmem:[%s2202_s13 + $0xd0] sm:$0xff]  ;;  %v2280_v29 = vld [vmem:[%s2202_s13 + $0xc0] sm:$0xff] }
 0x116   : > { %2480 = vst [vmem:[#allocation11_spill] sm:$0xff] %v2277_v28  ;;  %2481 = vst [vmem:[#allocation12_spill] sm:$0xff] %v2280_v29  ;;  %v1314_v31 = vadd.f32 %v1282_v33, %v1204_v30  ;;  %v1280_v15 = vadd.f32 %v2207_v24, %v1241_v35  ;;  %v1244_v13 = vmul.f32 %v2195_v19, %v1173_v36  ;;  %v2302_v35 = vld [vmem:[%s2202_s13 + $0xe0] sm:$0xff]  ;;  %v2308_v36 = vld [vmem:[%s2202_s13 + $0xe8] sm:$0xff] }
 0x117   : > { %v1171_v11 = vadd.f32 %v1046_v32, %v797_v37  ;;  %v818_v29 = vadd.f32 %v1751_v40, %v2143_v56  ;;  %v809_v30 = vpop.f32.mrf.mxu1  ;;  %v1059_v33 = vpop.f32.mrf.mxu0  ;;  %2485 = vst [vmem:[#allocation16_spill] sm:$0xff] %v2302_v35  ;;  %v2305_v32 = vld [vmem:[%s2202_s13 + $0xf8] sm:$0xff] }
 0x118   : > { %2486 = vst [vmem:[#allocation17_spill] sm:$0xff] %v2305_v32  ;;  %v1346_v37 = vmax.f32 %v1314_v31, 0.0  ;;  %v1312_v7 = vadd.f32 %v1280_v15, %v1202_v34  ;;  %v1283_v5 = vadd.f32 %v2207_v24, %v1244_v13  ;;  %v810_v27 = vadd.f32 %v809_v30, %v2147_v58 }
 0x119   : > { %v1242_v9 = vmul.f32 %v2195_v19, %v1171_v11  ;;  %v1176_v28 = vadd.f32 %v1799_v41, %v818_v29  ;;  %v1752_v56 = vpop.f32.mrf.mxu1  ;;  %v1800_v40 = vpop.f32.mrf.mxu0 }
 0x11a   : > { %v1344_v26 = vmax.f32 %v1312_v7, 0.0  ;;  %v1315_v3 = vadd.f32 %v1283_v5, %v1205_v38  ;;  %v821_v32 = vadd.f32 %v1752_v56, %v2151_v60  ;;  %1378 = vst [vmem:[%s2298_s22 + $0x10] sm:$0xff] %v1346_v37  ;;  %v1174_v15 = vadd.f32 %v1059_v33, %v810_v27 }
 0x11b   : > { %v1281_v35 = vadd.f32 %v2207_v24, %v1242_v9  ;;  %v1247_v31 = vmul.f32 %v2195_v19, %v1176_v28  ;;  %v812_v13 = vpop.f32.mrf.mxu1  ;;  %v1062_v34 = vpop.f32.mrf.mxu0 }
 0x11c   : > { %v1347_v11 = vmax.f32 %v1315_v3, 0.0  ;;  %v1177_v29 = vadd.f32 %v1800_v40, %v821_v32  ;;  %v813_v58 = vadd.f32 %v812_v13, %v2155_v62  ;;  %1376 = vst [vmem:[%s2298_s22] sm:$0xff] %v1344_v26  ;;  %v1245_v5 = vmul.f32 %v2195_v19, %v1174_v15 }
 0x11d   : > { %v1313_v41 = vadd.f32 %v1281_v35, %v1203_v39  ;;  %v1286_v7 = vadd.f32 %v2207_v24, %v1247_v31  ;;  %v1755_v9 = vpop.f32.mrf.mxu1  ;;  %v1803_v60 = vpop.f32.mrf.mxu0 }
 0x11e   : > { %v1248_v28 = vmul.f32 %v2195_v19, %v1177_v29  ;;  %v1175_v27 = vadd.f32 %v1062_v34, %v813_v58  ;;  %v834_v30 = vadd.f32 %v1755_v9, %v2159_v0  ;;  %1379 = vst [vmem:[%s2298_s22 + $0x18] sm:$0xff] %v1347_v11  ;;  %v1284_v39 = vadd.f32 %v2207_v24, %v1245_v5 }
 0x11f   : > { %v1345_v38 = vmax.f32 %v1313_v41, 0.0  ;;  %v1318_v3 = vadd.f32 %v1286_v7, %v2217_v42  ;;  %v825_v62 = vpop.f32.mrf.mxu1  ;;  %v1075_v26 = vpop.f32.mrf.mxu0 }
 0x120   : > { %v1287_v33 = vadd.f32 %v2207_v24, %v1248_v28  ;;  %v1246_v35 = vmul.f32 %v2195_v19, %v1175_v27  ;;  %v1180_v32 = vadd.f32 %v1803_v60, %v834_v30  ;;  %v826_v37 = vadd.f32 %v825_v62, %v2163_v2 }
 0x121   : > { %1377 = vst [vmem:[%s2298_s22 + $0x8] sm:$0xff] %v1345_v38  ;;  %v1350_v56 = vmax.f32 %v1318_v3, 0.0  ;;  %v1316_v40 = vadd.f32 %v1284_v39, %v2220_v43  ;;  %v1756_v0 = vpop.f32.mrf.mxu1  ;;  %v1804_v31 = vpop.f32.mrf.mxu0 }
 0x122   : > { %v1319_v42 = vadd.f32 %v1287_v33, %v2223_v44  ;;  %v1285_v15 = vadd.f32 %v2207_v24, %v1246_v35  ;;  %v1251_v13 = vmul.f32 %v2195_v19, %v1180_v32  ;;  %v1178_v34 = vadd.f32 %v1075_v26, %v826_v37 }
 0x123   : > { %v1348_v11 = vmax.f32 %v1316_v40, 0.0  ;;  %v837_v41 = vadd.f32 %v1756_v0, %v2167_v4  ;;  %v828_v29 = vpop.f32.mrf.mxu1  ;;  %v1078_v2 = vpop.f32.mrf.mxu0  ;;  %1382 = vst [vmem:[%s2298_s22 + $0x30] sm:$0xff] %v1350_v56 }
 0x124   : > { %v1351_v58 = vmax.f32 %v1319_v42, 0.0  ;;  %v1317_v43 = vadd.f32 %v1285_v15, %v2226_v45  ;;  %v1290_v7 = vadd.f32 %v2207_v24, %v1251_v13  ;;  %v1249_v44 = vmul.f32 %v2195_v19, %v1178_v34 }
 0x125   : > { %v1181_v5 = vadd.f32 %v1804_v31, %v837_v41  ;;  %v829_v9 = vadd.f32 %v828_v29, %v2171_v6  ;;  %v1759_v60 = vpop.f32.mrf.mxu1  ;;  %v1807_v38 = vpop.f32.mrf.mxu0  ;;  %1380 = vst [vmem:[%s2298_s22 + $0x20] sm:$0xff] %v1348_v11 }
 0x126   : > { %v1349_v28 = vmax.f32 %v1317_v43, 0.0  ;;  %v1322_v4 = vadd.f32 %v1290_v7, %v2229_v46  ;;  %v1288_v27 = vadd.f32 %v2207_v24, %v1249_v44  ;;  %v850_v30 = vadd.f32 %v1759_v60, %v2175_v8  ;;  %1383 = vst [vmem:[%s2298_s22 + $0x38] sm:$0xff] %v1351_v58 }
 0x127   : > { %v1252_v45 = vmul.f32 %v2195_v19, %v1181_v5  ;;  %v1179_v3 = vadd.f32 %v1078_v2, %v829_v9  ;;  %v841_v39 = vpop.f32.mrf.mxu1  ;;  %v1091_v62 = vpop.f32.mrf.mxu0 }
 0x128   : > { %v1354_v26 = vmax.f32 %v1322_v4, 0.0  ;;  %v1320_v6 = vadd.f32 %v1288_v27, %v2232_v47  ;;  %v1184_v33 = vadd.f32 %v1807_v38, %v850_v30  ;;  %v842_v35 = vadd.f32 %v841_v39, %v2179_v10  ;;  %1381 = vst [vmem:[%s2298_s22 + $0x28] sm:$0xff] %v1349_v28 }
 0x129   : > { %v1291_v46 = vadd.f32 %v2207_v24, %v1252_v45  ;;  %v1250_v32 = vmul.f32 %v2195_v19, %v1179_v3  ;;  %v1760_v8 = vpop.f32.mrf.mxu1  ;;  %v1808_v37 = vpop.f32.mrf.mxu0 }
 0x12a   : > { %v1352_v56 = vmax.f32 %v1320_v6, 0.0  ;;  %v1255_v40 = vmul.f32 %v2195_v19, %v1184_v33  ;;  %v1182_v0 = vadd.f32 %v1091_v62, %v842_v35  ;;  %v853_v31 = vadd.f32 %v1760_v8, %v2183_v12  ;;  %1386 = vst [vmem:[%s2298_s22 + $0x50] sm:$0xff] %v1354_v26 }
 0x12b   : > { %v1323_v47 = vadd.f32 %v1291_v46, %v2235_v48  ;;  %v1289_v42 = vadd.f32 %v2207_v24, %v1250_v32  ;;  %v844_v10 = vpop.f32.mrf.mxu1  ;;  %v1094_v15 = vpop.f32.mrf.mxu0 }
 0x12c   : > { %v1294_v13 = vadd.f32 %v2207_v24, %v1255_v40  ;;  %v1253_v34 = vmul.f32 %v2195_v19, %v1182_v0  ;;  %v1185_v11 = vadd.f32 %v1808_v37, %v853_v31  ;;  %v845_v41 = vadd.f32 %v844_v10, %v2187_v14  ;;  %1384 = vst [vmem:[%s2298_s22 + $0x40] sm:$0xff] %v1352_v56 }
 0x12d   : > { %v1355_v29 = vmax.f32 %v1323_v47, 0.0  ;;  %v1321_v2 = vadd.f32 %v1289_v42, %v2238_v50  ;;  %v1763_v12 = vpop.f32.mrf.mxu1  ;;  %v1811_v58 = vpop.f32.mrf.mxu0 }
 0x12e   : > { %v1326_v48 = vadd.f32 %v1294_v13, %v2241_v52  ;;  %v1292_v43 = vadd.f32 %v2207_v24, %v1253_v34  ;;  %v1256_v7 = vmul.f32 %v2195_v19, %v1185_v11  ;;  %v1183_v44 = vadd.f32 %v1094_v15, %v845_v41 }
 0x12f   : > { %v1353_v5 = vmax.f32 %v1321_v2, 0.0  ;;  %v866_v9 = vadd.f32 %v1763_v12, %v2135_v49  ;;  %v857_v60 = vpop.f32.mrf.mxu1  ;;  %v1107_v14 = vpop.f32.mrf.mxu0  ;;  %1387 = vst [vmem:[%s2298_s22 + $0x58] sm:$0xff] %v1355_v29 }
 0x130   : > { %v1358_v38 = vmax.f32 %v1326_v48, 0.0  ;;  %v1324_v50 = vadd.f32 %v1292_v43, %v2244_v54  ;;  %v1295_v28 = vadd.f32 %v2207_v24, %v1256_v7  ;;  %v1254_v52 = vmul.f32 %v2195_v19, %v1183_v44 }
 0x131   : > { %v1188_v4 = vadd.f32 %v1811_v58, %v866_v9  ;;  %v858_v27 = vadd.f32 %v857_v60, %v2137_v51  ;;  %v1764_v30 = vpop.f32.mrf.mxu1  ;;  %v1812_v45 = vpop.f32.mrf.mxu0  ;;  %1385 = vst [vmem:[%s2298_s22 + $0x48] sm:$0xff] %v1353_v5 }
 0x132   : > { %v1356_v3 = vmax.f32 %v1324_v50, 0.0  ;;  %v1327_v49 = vadd.f32 %v1295_v28, %v2247_v16  ;;  %v1293_v39 = vadd.f32 %v2207_v24, %v1254_v52  ;;  %v869_v62 = vadd.f32 %v1764_v30, %v2139_v53  ;;  %1390 = vst [vmem:[%s2298_s22 + $0x70] sm:$0xff] %v1358_v38 }
 0x133   : > { %v1259_v54 = vmul.f32 %v2195_v19, %v1188_v4  ;;  %v1186_v26 = vadd.f32 %v1107_v14, %v858_v27  ;;  %v860_v6 = vpop.f32.mrf.mxu1  ;;  %v1110_v33 = vpop.f32.mrf.mxu0 }
 0x134   : > { %v1359_v35 = vmax.f32 %v1327_v49, 0.0  ;;  %v1325_v51 = vadd.f32 %v1293_v39, %v2250_v17  ;;  %v1189_v46 = vadd.f32 %v1812_v45, %v869_v62  ;;  %v861_v32 = vadd.f32 %v860_v6, %v2141_v55  ;;  %1388 = vst [vmem:[%s2298_s22 + $0x60] sm:$0xff] %v1356_v3  ;;  %v2487_v49 = vld [vmem:[#allocation2_spill] sm:$0xff] }
 0x135   : > { %v1298_v16 = vadd.f32 %v2207_v24, %v1259_v54  ;;  %v1257_v8 = vmul.f32 %v2195_v19, %v1186_v26  ;;  %v1767_v53 = vpop.f32.mrf.mxu1  ;;  %v1815_v37 = vpop.f32.mrf.mxu0 }
 0x136   : > { %v1357_v56 = vmax.f32 %v1325_v51, 0.0  ;;  %v1260_v40 = vmul.f32 %v2195_v19, %v1189_v46  ;;  %v1187_v0 = vadd.f32 %v1110_v33, %v861_v32  ;;  %v882_v31 = vadd.f32 %v1767_v53, %v2145_v57  ;;  %1391 = vst [vmem:[%s2298_s22 + $0x78] sm:$0xff] %v1359_v35  ;;  %v2488_v35 = vld [vmem:[#allocation3_spill] sm:$0xff]  ;;  %v2489_v46 = vld [vmem:[#allocation9_spill] sm:$0xff] }
 0x137   : > { %v1330_v17 = vadd.f32 %v1298_v16, %v2253_v18  ;;  %v1296_v47 = vadd.f32 %v2207_v24, %v1257_v8  ;;  %v873_v55 = vpop.f32.mrf.mxu1  ;;  %v1123_v42 = vpop.f32.mrf.mxu0 }
 0x138   : > { %v1299_v10 = vadd.f32 %v2207_v24, %v1260_v40  ;;  %v1258_v15 = vmul.f32 %v2195_v19, %v1187_v0  ;;  %v1192_v13 = vadd.f32 %v1815_v37, %v882_v31  ;;  %v874_v34 = vadd.f32 %v873_v55, %v2149_v59  ;;  %1389 = vst [vmem:[%s2298_s22 + $0x68] sm:$0xff] %v1357_v56  ;;  %v2490_v40 = vld [vmem:[#allocation4_spill] sm:$0xff] }
 0x139   : > { %v1362_v11 = vmax.f32 %v1330_v17, 0.0  ;;  %v1328_v41 = vadd.f32 %v1296_v47, %v2256_v20  ;;  %v1768_v57 = vpop.f32.mrf.mxu1  ;;  %v1816_v29 = vpop.f32.mrf.mxu0  ;;  %v2491_v17 = vld [vmem:[#allocation10_spill] sm:$0xff] }
 0x13a   : > { %v1331_v18 = vadd.f32 %v1299_v10, %v2259_v21  ;;  %v1297_v2 = vadd.f32 %v2207_v24, %v1258_v15  ;;  %v1263_v12 = vmul.f32 %v2195_v19, %v1192_v13  ;;  %v1190_v58 = vadd.f32 %v1123_v42, %v874_v34  ;;  %v2492_v10 = vld [vmem:[#allocation11_spill] sm:$0xff] }
 0x13b   : > { %v1360_v48 = vmax.f32 %v1328_v41, 0.0  ;;  %v885_v43 = vadd.f32 %v1768_v57, %v2153_v61  ;;  %v876_v7 = vpop.f32.mrf.mxu1  ;;  %v1126_v59 = vpop.f32.mrf.mxu0  ;;  %1394 = vst [vmem:[%s2298_s22 + $0x90] sm:$0xff] %v1362_v11  ;;  %v2493_v57 = vld [vmem:[#allocation5_spill] sm:$0xff] }
 0x13c   : > { %v1363_v44 = vmax.f32 %v1331_v18, 0.0  ;;  %v1329_v20 = vadd.f32 %v1297_v2, %v2262_v22  ;;  %v1302_v5 = vadd.f32 %v2207_v24, %v1263_v12  ;;  %v1261_v21 = vmul.f32 %v2195_v19, %v1190_v58  ;;  %v2494_v58 = vld [vmem:[#allocation12_spill] sm:$0xff] }
 0x13d   : > { %v1193_v9 = vadd.f32 %v1816_v29, %v885_v43  ;;  %v877_v60 = vadd.f32 %v876_v7, %v2157_v63  ;;  %v1771_v14 = vpop.f32.mrf.mxu1  ;;  %v1819_v38 = vpop.f32.mrf.mxu0  ;;  %1392 = vst [vmem:[%s2298_s22 + $0x80] sm:$0xff] %v1360_v48 }
 0x13e   : > { %v1361_v50 = vmax.f32 %v1329_v20, 0.0  ;;  %v1334_v61 = vadd.f32 %v1302_v5, %v2265_v23  ;;  %v1300_v28 = vadd.f32 %v2207_v24, %v1261_v21  ;;  %v898_v52 = vadd.f32 %v1771_v14, %v2161_v1  ;;  %1395 = vst [vmem:[%s2298_s22 + $0x98] sm:$0xff] %v1363_v44  ;;  %v2495_v44 = vld [vmem:[#allocation6_spill] sm:$0xff] }
 0x13f   : > { %v1264_v22 = vmul.f32 %v2195_v19, %v1193_v9  ;;  %v1191_v4 = vadd.f32 %v1126_v59, %v877_v60  ;;  %v889_v27 = vpop.f32.mrf.mxu1  ;;  %v1139_v30 = vpop.f32.mrf.mxu0  ;;  %v2496_v60 = vld [vmem:[#allocation13_spill] sm:$0xff] }
 0x140   : > { %v1366_v45 = vmax.f32 %v1334_v61, 0.0  ;;  %v1332_v63 = vadd.f32 %v1300_v28, %v2268_v25  ;;  %v1196_v3 = vadd.f32 %v1819_v38, %v898_v52  ;;  %v890_v39 = vadd.f32 %v889_v27, %v2487_v49  ;;  %1393 = vst [vmem:[%s2298_s22 + $0x88] sm:$0xff] %v1361_v50  ;;  %v2497_v50 = vld [vmem:[#allocation7_spill] sm:$0xff]  ;;  %v2498_v27 = vld [vmem:[#allocation14_spill] sm:$0xff] }
 0x141   : > { %v1303_v23 = vadd.f32 %v2207_v24, %v1264_v22  ;;  %v1262_v62 = vmul.f32 %v2195_v19, %v1191_v4  ;;  %v1772_v1 = vpop.f32.mrf.mxu1  ;;  %v1820_v54 = vpop.f32.mrf.mxu0 }
 0x142   : > { %v1364_v26 = vmax.f32 %v1332_v63, 0.0  ;;  %v1267_v6 = vmul.f32 %v2195_v19, %v1196_v3  ;;  %v1194_v33 = vadd.f32 %v1139_v30, %v890_v39  ;;  %v901_v51 = vadd.f32 %v1772_v1, %v2488_v35  ;;  %1398 = vst [vmem:[%s2298_s22 + $0xb0] sm:$0xff] %v1366_v45  ;;  %v2499_v63 = vld [vmem:[#allocation8_spill] sm:$0xff] }
 0x143   : > { %v1335_v25 = vadd.f32 %v1303_v23, %v2489_v46  ;;  %v1301_v32 = vadd.f32 %v2207_v24, %v1262_v62  ;;  %v892_v16 = vpop.f32.mrf.mxu1  ;;  %v1142_v8 = vpop.f32.mrf.mxu0 }
 0x144   : > { %v1306_v53 = vadd.f32 %v2207_v24, %v1267_v6  ;;  %v1265_v37 = vmul.f32 %v2195_v19, %v1194_v33  ;;  %v1197_v56 = vadd.f32 %v1820_v54, %v901_v51  ;;  %v893_v0 = vadd.f32 %v892_v16, %v2490_v40  ;;  %1396 = vst [vmem:[%s2298_s22 + $0xa0] sm:$0xff] %v1364_v26  ;;  %v2500_v26 = vld [vmem:[#allocation15_spill] sm:$0xff]  ;;  %v2502_v16 = vld [vmem:[#allocation17_spill] sm:$0xff] }
 0x145   : > { %v1367_v31 = vmax.f32 %v1335_v25, 0.0  ;;  %v1333_v47 = vadd.f32 %v1301_v32, %v2491_v17  ;;  %v1775_v55 = vpop.f32.mrf.mxu1  ;;  %v1823_v42 = vpop.f32.mrf.mxu0  ;;  %v2501_v25 = vld [vmem:[#allocation16_spill] sm:$0xff] }
 0x146   : > { %v1338_v15 = vadd.f32 %v1306_v53, %v2492_v10  ;;  %v1304_v13 = vadd.f32 %v2207_v24, %v1265_v37  ;;  %v1268_v34 = vmul.f32 %v2195_v19, %v1197_v56  ;;  %v1195_v11 = vadd.f32 %v1142_v8, %v893_v0 }
 0x147   : > { %v1365_v41 = vmax.f32 %v1333_v47, 0.0  ;;  %v914_v29 = vadd.f32 %v1775_v55, %v2493_v57  ;;  %v905_v18 = vpop.f32.mrf.mxu1  ;;  %v1155_v2 = vpop.f32.mrf.mxu0  ;;  %1399 = vst [vmem:[%s2298_s22 + $0xb8] sm:$0xff] %v1367_v31 }
 0x148   : > { %v1370_v12 = vmax.f32 %v1338_v15, 0.0  ;;  %v1336_v48 = vadd.f32 %v1304_v13, %v2494_v58  ;;  %v1307_v43 = vadd.f32 %v2207_v24, %v1268_v34  ;;  %v1266_v7 = vmul.f32 %v2195_v19, %v1195_v11 }
 0x149   : > { %v1200_v59 = vadd.f32 %v1823_v42, %v914_v29  ;;  %v906_v20 = vadd.f32 %v905_v18, %v2495_v44  ;;  %v1776_v5 = vpop.f32.mrf.mxu1  ;;  %v1824_v21 = vpop.f32.mrf.mxu0  ;;  %1397 = vst [vmem:[%s2298_s22 + $0xa8] sm:$0xff] %v1365_v41 }
 0x14a   : > { %v1368_v9 = vmax.f32 %v1336_v48, 0.0  ;;  %v1339_v14 = vadd.f32 %v1307_v43, %v2496_v60  ;;  %v1305_v38 = vadd.f32 %v2207_v24, %v1266_v7  ;;  %v917_v61 = vadd.f32 %v1776_v5, %v2497_v50  ;;  %1402 = vst [vmem:[%s2298_s22 + $0xd0] sm:$0xff] %v1370_v12 }
 0x14b   : > { %v1271_v28 = vmul.f32 %v2195_v19, %v1200_v59  ;;  %v1198_v52 = vadd.f32 %v1155_v2, %v906_v20  ;;  %v908_v22 = vpop.f32.mrf.mxu1  ;;  %v1158_v23 = vpop.f32.mrf.mxu0 }
 0x14c   : > { %v1371_v4 = vmax.f32 %v1339_v14, 0.0  ;;  %v1337_v30 = vadd.f32 %v1305_v38, %v2498_v27  ;;  %v1201_v45 = vadd.f32 %v1824_v21, %v917_v61  ;;  %v909_v3 = vadd.f32 %v908_v22, %v2499_v63  ;;  %1400 = vst [vmem:[%s2298_s22 + $0xc0] sm:$0xff] %v1368_v9 }
 0x14d   : > { %v1310_v49 = vadd.f32 %v2207_v24, %v1271_v28  ;;  %v1269_v39 = vmul.f32 %v2195_v19, %v1198_v52 }
 0x14e   : > { %v1369_v62 = vmax.f32 %v1337_v30, 0.0  ;;  %v1272_v1 = vmul.f32 %v2195_v19, %v1201_v45  ;;  %v1199_v54 = vadd.f32 %v1158_v23, %v909_v3  ;;  %1403 = vst [vmem:[%s2298_s22 + $0xd8] sm:$0xff] %v1371_v4 }
 0x14f   : > { %v1342_v6 = vadd.f32 %v1310_v49, %v2500_v26  ;;  %v1308_v33 = vadd.f32 %v2207_v24, %v1269_v39 }
 0x150   : > { %v1311_v35 = vadd.f32 %v2207_v24, %v1272_v1  ;;  %v1270_v51 = vmul.f32 %v2195_v19, %v1199_v54  ;;  %1401 = vst [vmem:[%s2298_s22 + $0xc8] sm:$0xff] %v1369_v62 }
 0x151   : > { %v1374_v46 = vmax.f32 %v1342_v6, 0.0  ;;  %v1340_v32 = vadd.f32 %v1308_v33, %v2501_v25 }
 0x152   : > { %v1343_v8 = vadd.f32 %v1311_v35, %v2502_v16  ;;  %v1309_v53 = vadd.f32 %v2207_v24, %v1270_v51 }
 0x153   : > { %v1372_v37 = vmax.f32 %v1340_v32, 0.0  ;;  %1406 = vst [vmem:[%s2298_s22 + $0xf0] sm:$0xff] %v1374_v46 }
 0x154   : > { %v1375_v56 = vmax.f32 %v1343_v8, 0.0  ;;  %v1341_v40 = vadd.f32 %v1309_v53, %v2308_v36 }
 0x155   : > { %1404 = vst [vmem:[%s2298_s22 + $0xe0] sm:$0xff] %v1372_v37 }
 0x156   : > { %v1373_v0 = vmax.f32 %v1341_v40, 0.0  ;;  %1407 = vst [vmem:[%s2298_s22 + $0xf8] sm:$0xff] %v1375_v56 }
 0x158   : > { %1405 = vst [vmem:[%s2298_s22 + $0xe8] sm:$0xff] %v1373_v0 }
 0x159 PF: > { %s15_s20 = sadd.s32 1, %s1936_s20   ;;  %s2503_s18 = smov %s1932_s19 }
 0x15a   : > { %p12_p5 = scmp.ge.s32.totalorder %s15_s20, 4   ;;  %s2504_s19 = smov %s2506_s21 }
 0x15c   :  { %14 = sbr.rel (!%p12_p5) target bundleno = 2 (0x2), region = 75 }

</bundles_post_ra>
